<compile_context>
chip_gen: v7x
topology: tpu7x:2x2x1
jax: 0.10.0
libtpu: 0.0.40
codegen_flags: <defaults>
</compile_context>

<pallas_src>
import functools

import jax
import jax.numpy as jnp
from jax import lax
from jax.experimental import pallas as pl
from jax.experimental.pallas import tpu as pltpu


_BLOCK_BYTES = 12 * 1024 * 1024       # activation-tile byte budget (x2 for double buffer)
_MAX_TB = 2048                        # hard cap on batch-tile rows
_MIN_BATCH_TILES = 4                  # keep >=4 tiles on the parallel axis (megacore + pipelining)
_FAST_PATH_ELEMS = 64 * 1024          # below this, XLA's fused matvec beats the kernel launch
_VMEM_LIMIT_BYTES = 40 * 1024 * 1024  # > 2x12 MiB blocks + small buffers, < v7x 64 MiB physical


def _round_up(x: int, m: int) -> int:
    return ((x + m - 1) // m) * m


def _concept_kernel(v_ref, x_ref, o_ref, *acc_refs, total_h, tile_h):
    # v_ref    : (1, TH)   concept-vector tile (activation dtype, zero-padded host-side)
    # x_ref    : (TB, TH)  activation tile (may be ragged at the B and H edges)
    # o_ref    : (TB, 1)   per-row dot products
    # acc_refs : optional ((TB, 1) f32 accumulator) when the H reduction spans >1 step
    k = pl.program_id(1)

    x = x_ref[...]
    if total_h is not None:
        # Ragged hidden dim: the OOB tail lanes of the block hold unspecified VMEM
        # contents (possibly NaN/Inf) and must be zeroed before the contraction.
        lane = lax.broadcasted_iota(jnp.int32, x.shape, 1)
        x = jnp.where(lane < (total_h - k * tile_h), x, jnp.zeros_like(x))

    # MXU contraction (x @ v.T) with hardware f32 accumulation; keeps the VPU free.
    part = lax.dot_general(
        x,
        v_ref[...],
        dimension_numbers=(((1,), (1,)), ((), ())),
        preferred_element_type=jnp.float32,
    )  # (TB, 1) float32

    if not acc_refs:
        # Single reduction step (common case): write out directly, no scratch RMW.
        o_ref[...] = part.astype(o_ref.dtype)
        return

    (acc_ref,) = acc_refs

    @pl.when(k == 0)
    def _init():
        acc_ref[...] = jnp.zeros_like(acc_ref)

    acc_ref[...] += part

    @pl.when(k == pl.num_programs(1) - 1)
    def _finalize():
        o_ref[...] = acc_ref[...].astype(o_ref.dtype)


def _concept_matvec_2d(vector: jax.Array, activations: jax.Array) -> jax.Array:
    """vector: (H,), activations: (B, H)  ->  (B,)  (== vector @ activations.T)."""
    B, H = activations.shape
    dtype = activations.dtype
    v = vector.astype(dtype)

    # Fast path: per-step grid + launch overhead dominates for tiny inputs.
    if B * H <= _FAST_PATH_ELEMS:
        return activations @ v

    itemsize = jnp.dtype(dtype).itemsize
    sub = max(8, 32 // itemsize)             # sublane multiple: 8 f32 / 16 bf16 / 32 int8
    max_th = max(128, (32 * 1024) // itemsize)  # 8192 f32 / 16384 bf16 per reduction step

    # Hidden (reduction) tile: multiple of 128; whole hidden dim when it fits.
    TH = min(_round_up(H, 128), max_th)
    num_k = pl.cdiv(H, TH)
    Hv = num_k * TH
    needs_mask = Hv != H

    # Zero-pad only the tiny concept vector so every (1, TH) vector block is in-bounds.
    if Hv != H:
        v = jnp.pad(v, (0, Hv - H))
    v2d = v.reshape(1, Hv)

    # Batch tile: amortize the ~0.35us/step overhead, but keep >= _MIN_BATCH_TILES
    # tiles on the parallel axis so both TensorCores (v7x) get work and the DMA
    # pipeline has something to prefetch.
    rows_fit = max(sub, (_BLOCK_BYTES // (TH * itemsize)) // sub * sub)
    tb_split = _round_up(pl.cdiv(B, _MIN_BATCH_TILES), sub)
    TB = max(sub, min(rows_fit, _MAX_TB, tb_split))
    num_b = pl.cdiv(B, TB)

    kernel = functools.partial(
        _concept_kernel,
        total_h=H if needs_mask else None,
        tile_h=TH,
    )

    out = pl.pallas_call(
        kernel,
        out_shape=jax.ShapeDtypeStruct((B, 1), dtype),
        grid=(num_b, num_k),
        in_specs=[
            pl.BlockSpec((1, TH), lambda i, k: (0, k)),     # concept-vector tile
            pl.BlockSpec((TB, TH), lambda i, k: (i, k)),    # activation tile
        ],
        out_specs=pl.BlockSpec((TB, 1), lambda i, k: (i, 0)),
        scratch_shapes=(
            [pltpu.VMEM((TB, 1), jnp.float32)] if num_k > 1 else []
        ),
        compiler_params=pltpu.CompilerParams(
            dimension_semantics=("parallel", "arbitrary"),
            vmem_limit_bytes=_VMEM_LIMIT_BYTES,
        ),
    )(v2d, activations)
    return out[:, 0]


class Concept:
    """JAX/Pallas port of the Linear Relation Concept (LRC) module."""

    def __init__(self, layer, vector, object, relation, metadata=None, name=None):
        self.layer = layer
        self.vector = vector
        self.object = object
        self.relation = relation
        self.metadata = metadata or {}
        self.name = name or f"{self.relation}: {self.object}"

    def __call__(self, activations: jax.Array) -> jax.Array:
        v = self.vector.astype(activations.dtype)
        if activations.ndim == 1:
            # Single activation vector -> scalar; a lone matvec has nothing to
            # pipeline against, XLA's fused dot is strictly faster.
            return jnp.dot(v, activations)
        if activations.ndim == 2:
            return _concept_matvec_2d(self.vector, activations)
        # Rank > 2 is not part of the documented contract; mirror torch's `@ .T`.
        return jnp.matmul(v, activations.T)


if __name__ == "__main__":
    key = jax.random.PRNGKey(0)
    k1, k2, k3, k4, k5, k6 = jax.random.split(key, 6)

    # --- Small shapes consistent with the module (fast path). ---
    H, B = 32, 8
    vector = jax.random.normal(k1, (H,), dtype=jnp.float32)
    acts = jax.random.normal(k2, (B, H), dtype=jnp.float32)
    concept = Concept(layer=5, vector=vector, object="paris", relation="capital_of")

    out_2d = jax.block_until_ready(concept(acts))
    ref_2d = acts @ vector
    assert out_2d.shape == (B,)
    assert jnp.allclose(out_2d, ref_2d, atol=1e-5, rtol=1e-5)

    out_1d = jax.block_until_ready(concept(acts[0]))
    ref_1d = jnp.dot(vector, acts[0])
    assert out_1d.shape == ()
    assert jnp.allclose(out_1d, ref_1d, atol=1e-5, rtol=1e-5)

    # --- Ragged f32, single reduction step: exercises the Pallas path with in-kernel
    #     H-tail masking, ragged batch blocks and the direct (no-scratch) writeback. ---
    Hb, Bb = 4000, 1000
    vec_b = jax.random.normal(k3, (Hb,), dtype=jnp.float32)
    act_b = jax.random.normal(k4, (Bb, Hb), dtype=jnp.float32)
    concept_b = Concept(layer=7, vector=vec_b, object="rome", relation="capital_of")
    out_b = jax.block_until_ready(concept_b(act_b))
    ref_b = act_b @ vec_b
    assert out_b.shape == (Bb,)
    # f32 matmuls run as bf16 MXU passes at default precision on both sides.
    assert jnp.allclose(out_b, ref_b, atol=1.5, rtol=1e-2)

    # --- bf16, multi-step reduction: exercises the f32 scratch accumulator with
    #     pl.when init/finalize plus the ragged last H tile. ---
    Hc, Bc = 20000, 320
    vec_c = jax.random.normal(k5, (Hc,), dtype=jnp.bfloat16)
    act_c = jax.random.normal(k6, (Bc, Hc), dtype=jnp.bfloat16)
    concept_c = Concept(layer=11, vector=vec_c, object="tokyo", relation="capital_of")
    out_c = jax.block_until_ready(concept_c(act_c))
    ref_c = act_c.astype(jnp.float32) @ vec_c.astype(jnp.float32)
    assert out_c.shape == (Bc,)
    assert jnp.allclose(out_c.astype(jnp.float32), ref_c, atol=2.0, rtol=2e-2)

    print("KERNEL_OK")
</pallas_src>

<mosaic_0001>
module attributes {stable_mosaic.version = 11 : i64} {
  func.func @_concept_kernel(%arg0: i32, %arg1: i32, %arg2: memref<1x4096xf32, #tpu.memory_space<vmem>>, %arg3: memref<256x4096xf32, #tpu.memory_space<vmem>>, %arg4: memref<256x1xf32, #tpu.memory_space<vmem>>) attributes {dimension_semantics = [#tpu.dimension_semantics<parallel>, #tpu.dimension_semantics<arbitrary>], iteration_bounds = array<i64: 4, 1>, scalar_prefetch = 0 : i64, scratch_operands = 0 : i64, tpu.core_type = #tpu.core_type<tc>, window_params = [{transform_indices = @transform_0, window_bounds = array<i64: 1, 4096>}, {transform_indices = @transform_1, window_bounds = array<i64: 256, 4096>}, {transform_indices = @transform_2, window_bounds = array<i64: 256, 1>}]} {
    %c0 = arith.constant 0 : index
    %c0_0 = arith.constant 0 : index
    %0 = vector.load %arg3[%c0, %c0_0] : memref<256x4096xf32, #tpu.memory_space<vmem>>, vector<256x4096xf32>
    %1 = tpu.iota {dimensions = array<i32: 1>} : vector<256x4096xi32>
    %c4096_i32 = arith.constant 4096 : i32
    %2 = arith.muli %arg1, %c4096_i32 : i32
    %c4000_i32 = arith.constant 4000 : i32
    %3 = arith.subi %c4000_i32, %2 : i32
    %4 = vector.broadcast %3 : i32 to vector<256x4096xi32>
    %5 = arith.cmpi slt, %1, %4 : vector<256x4096xi32>
    %cst = arith.constant 0.000000e+00 : f32
    %6 = vector.broadcast %cst : f32 to vector<256x4096xf32>
    %7 = arith.select %5, %0, %6 : vector<256x4096xi1>, vector<256x4096xf32>
    %c0_1 = arith.constant 0 : index
    %c0_2 = arith.constant 0 : index
    %8 = vector.load %arg2[%c0_1, %c0_2] : memref<1x4096xf32, #tpu.memory_space<vmem>>, vector<1x4096xf32>
    %cst_3 = arith.constant dense<0.000000e+00> : vector<256x1xf32>
    %9 = tpu.matmul %7, %8, %cst_3 {dimension_numbers = #tpu.dot_dimension_numbers<[1], [1], [0], [0], [0, 0, 1, 0], [], []>} : vector<256x4096xf32>, vector<1x4096xf32>, vector<256x1xf32> -> vector<256x1xf32>
    %c0_4 = arith.constant 0 : index
    %c0_5 = arith.constant 0 : index
    %10 = vector.load %arg4[%c0_4, %c0_5] : memref<256x1xf32, #tpu.memory_space<vmem>>, vector<256x1xf32>
    tpu.vector_store %arg4[%c0_4, %c0_5], %9 {strides = array<i32>} : memref<256x1xf32, #tpu.memory_space<vmem>>, vector<256x1xf32>,
    return
  }
  func.func @transform_0(%arg0: i32, %arg1: i32) -> (i32, i32) {
    %c0_i32 = arith.constant 0 : i32
    %c0_i32_0 = arith.constant 0 : i32
    return %c0_i32, %arg1 : i32, i32
  }
  func.func @transform_1(%arg0: i32, %arg1: i32) -> (i32, i32) {
    %c0_i32 = arith.constant 0 : i32
    return %arg0, %arg1 : i32, i32
  }
  func.func @transform_2(%arg0: i32, %arg1: i32) -> (i32, i32) {
    %c0_i32 = arith.constant 0 : i32
    %c0_i32_0 = arith.constant 0 : i32
    return %arg0, %c0_i32 : i32, i32
  }
}

</mosaic_0001>

<bundles_post_ra>
// kernel: tpu_custom_call.1
= control target key start
LH: loop header
LB: loop body
LE: loop exit
PB: predicated region body
PF: predicated region fallthrough
CT: control target
= control target key end

     0   :  { %7 = vsyncpa [#allocation3], 0  ;;  %s8185_s0 = inlined_call_operand.hbm [shape: f32[1,4096], index: 0, kind: input, shape index: {}]   ;;  %s8186_s1 = inlined_call_operand.hbm [shape: f32[1000,4000], index: 1, kind: input, shape index: {}]   ;;  %s8187_s2 = inlined_call_operand.vmem [shape: f32[1000,1], index: 2, kind: output, shape index: {}]  }
   0x1   :  { %8 = vsyncpa [#allocation5], 0 }
   0x2   :  { %10 = vsyncpa [#allocation5 + $0x1], 0  ;;  %s5350_s9 = smov 0   ;;  %s5352_s10 = smov 0  }
   0x3   :  { %s5354_s11 = smov 0   ;;  %s5356_s12 = smov 0  }
   0x4   :  { %s5358_s13 = smov 0   ;;  %s5360_s14 = smov 0  }
   0x5 LB: > { %s4988_s15 = sadd.s32 4294967295, %s5297_s14   ;;  %s28_s16 = sadd.s32 1, %s5293_s13  ;;  %s5297_s14 = sphi %s5360_s14, %s16_s14   ;;  %s5293_s13 = sphi %s5358_s13, %s8507_s13   ;;  %s5289_s12 = sphi %s5356_s12, %s8506_s12   ;;  %s5285_s11 = sphi %s5354_s11, %s8505_s11   ;;  %s5281_s10 = sphi %s5352_s10, %s8504_s10   ;;  %s5277_s9 = sphi %s5350_s9, %s8503_s9  }
   0x6   : > { %p30_p0 = scmp.ge.s32.totalorder %s28_s16, 4  ;;  %s63_s17 = sadd.s32 1, %s5285_s11 }
   0x7   : > { %p70_p1 = scmp.ne.s32.totalorder %s5285_s11, %s5281_s10  ;;  %p71_p2 = scmp.eq.s32.totalorder %s5297_s14, 0 }
   0x8   : > { %s8509_s16 = smov (%p30_p0, %s28_s16), 0  ;;  %p76_p4 = scmp.ne.s32.totalorder %s5281_s10, %s5277_s9 }
   0x9   : > { %p5386_p3 = por %p71_p2, %p70_p1  ;;  %s58_s19 = ssub.s32 %s5293_s13, %s8509_s16 }
   0xa   : > { %p5393_p5 = scmp.eq.s32.totalorder %s4988_s15, 0  ;;  %p61_p6 = scmp.eq.s32.totalorder %s58_s19, 0 }
   0xb   : > { %s8276_s18 = scalar_select %p5386_p3, 1, 0 }
   0xc   : > { %s8277_s20 = scalar_select %p5393_p5, 1, 0 }
   0xd   : > { %p100_p7 = scmp.eq.s32.totalorder %s4988_s15, 3  ;;  %p5399_p8 = por %p5393_p5, %p76_p4 }
   0xe   : > { %p4990_p9 = scmp.ge.s32.totalorder %s5297_s14, 1  ;;  %p113_p11 = scmp.lt.s32.totalorder %s5297_s14, 5 }
   0xf   : > { %s8278_s21 = scalar_select %p5399_p8, 1, 0 }
  0x10   : > { %s5405_s22 = scalar_select %p61_p6, %s5285_s11, %s63_s17  }
  0x11   : > { %p5407_p10 = por %p100_p7, %p70_p1  ;;  %p5412_p12 = pnand %p4990_p9, %p113_p11 }
  0x12   : > { %s5331_s25 = smov [#allocation2]   ;;  %s5155_s30 = scalar_lea.hbm %s8185_s0, 512 }
  0x13   : > { %s8279_s23 = scalar_select %p5407_p10, 1, 0 }
  0x14   : > { %s8280_s24 = scalar_select %p5412_p12, 1, 0 }
  0x15   : > { %s129_s26 = sshll.u32 %s5331_s25, 4  ;;  %p5034_p13 = pneg %p5412_p12  ;;  %s130_s26 = int_to_ptr.vmem [resolvable:$true] %s129_s26 }
  0x16   : > { %p5156_p1 = scmp.ne.s32.totalorder %s8185_s0, %s5155_s30  ;;  %p5162_p7 = scmp.lt.u32.totalorder %s5155_s30, %s8185_s0 }
  0x17   : > { %p5420_p0 = pnand %p5034_p13, %p5393_p5 }
  0x19   : > { %p5157_p2 = pneg %p5420_p0 }
  0x1b   : > { %p5158_p4 = pnand %p5157_p2, %p5156_p1 }
  0x1d   : > { %p5159_p6 = pneg %p5158_p4 }
  0x1f   : > { %p5164_p9 = pnand %p5162_p7, %p5159_p6 }
  0x21   : > { %5167 = shalt.err (!%p5164_p9)
}
  0x22   : > { %s5168_s7 = scalar_lea.vmem %s130_s26, 512  ;;  %p5176_p8 = scmp.lt.s32.totalorder %s130_s26, %s130_s26 }
  0x23   : > { %p5169_p11 = scmp.ne.s32.totalorder %s130_s26, %s5168_s7  ;;  %p5177_p5 = scmp.lt.s32.totalorder %s5168_s7, %s5168_s7 }
  0x25   : > { %p5171_p13 = pnand %p5169_p11, %p5157_p2  ;;  %p5178_p12 = por %p5177_p5, %p5176_p8 }
  0x27   : > { %p5172_p10 = pneg %p5171_p13 }
  0x29   : > { %p5179_p3 = pnand %p5178_p12, %p5172_p10 }
  0x2b   : > { %5182 = shalt.err (!%p5179_p3)
}
  0x2c   : > { %5037 = dma.hbm_to_vmem [thread:$0]  (!%p5420_p0), %s8185_s0, 512, %s130_s26, [#allocation3]  }
  0x2d   : > { %p4992_p1 = scmp.ge.s32.totalorder %s5297_s14, 4 }
  0x2e   : > { %p8282_p4 = scmp.ne.s32.totalorder (!%p4992_p1), %s8276_s18, 0 }
  0x2f   : > { %136 = sbr.rel (%p4992_p1) target bundleno = 89 (0x59), region = 20 }
  0x36   : > { %139 = sbr.rel (!%p8282_p4) target bundleno = 89 (0x59), region = 24  ;;  %s140_s15 = sand.u32 (%p8282_p4), 1, %s5285_s11  }
  0x37   : > { %s4994_s17 = sshll.u32 (%p8282_p4), %s5293_s13, 5  ;;  %s4993_s19 = sshll.u32 (%p8282_p4), %s140_s15, 13 }
  0x38   : > { %s147_s25 = ssub.s32 (%p8282_p4), 125, %s4994_s17  ;;  %s5448_s29 = scalar_lea.sflag (%p8282_p4), [#allocation5], %s140_s15 }
  0x39   : > { %p148_p5 = scmp.lt.s32.totalorder (%p8282_p4), %s147_s25, 32  ;;  %s144_s26 = scalar_lea.vmem (%p8282_p4), [#allocation4], %s4993_s19 }
  0x3d   : > { %s8511_s25 = smov (!%p148_p5, %s147_s25), 32 }
  0x3e   : > { %s5445_s28 = sshll.u32 %s8511_s25, 12 }
  0x3f   : > { %s153_s27 = ssub.s32 131072, %s5445_s28 }
  0x40   : > { %154 = vsyncadd %s5448_s29, %s153_s27  ;;  %p4997_p3 = scmp.ne.s32.totalorder %s5445_s28, 0  ;;  %s5025_s18 = sshll.u32 %s5293_s13, 17 }
  0x41   : > { %s5456_s4 = scalar_lea.hbm %s8186_s1, %s5025_s18  ;;  %s161_s5 = sshll.u32 %s144_s26, 4  ;;  %s5458_s5 = int_to_ptr.vmem [resolvable:$true] %s161_s5 }
  0x42   : > { %s5183_s6 = scalar_lea.hbm %s5456_s4, %s5445_s28  ;;  %s5187_s9 = scalar_lea.hbm %s8186_s1, 512000 }
  0x43   : > { %p5184_p8 = scmp.ne.s32.totalorder %s5456_s4, %s5183_s6  ;;  %p5188_p0 = scmp.lt.u32.totalorder %s5456_s4, %s8186_s1 }
  0x44   : > { %p5189_p2 = scmp.lt.u32.totalorder %s5187_s9, %s5183_s6  ;;  %p5191_p7 = scmp.lt.u32.totalorder %s5183_s6, %s5456_s4 }
  0x45   : > { %p5185_p10 = pnand %p5184_p8, %p4997_p3 }
  0x46   : > { %p5190_p6 = por %p5189_p2, %p5188_p0 }
  0x47   : > { %p5186_p12 = pneg %p5185_p10 }
  0x48   : > { %p5192_p9 = por %p5191_p7, %p5190_p6 }
  0x4a   : > { %p5193_p11 = pnand %p5192_p9, %p5186_p12 }
  0x4c   : > { %5196 = shalt.err (!%p5193_p11)
}
  0x4d   : > { %s5197_s19 = scalar_lea.vmem %s5458_s5, %s5445_s28  ;;  %s5332_s25 = smov [#allocation4]  }
  0x4e   : > { %p5198_p13 = scmp.ne.s32.totalorder %s5458_s5, %s5197_s19  ;;  %s5201_s27 = sshll.u32 %s5332_s25, 4  ;;  %s5202_s27 = int_to_ptr.vmem [resolvable:$false] %s5201_s27 }
  0x4f   : > { %s5203_s26 = scalar_lea.vmem %s5202_s27, 262144  ;;  %p5204_p5 = scmp.lt.s32.totalorder %s5458_s5, %s5202_s27 }
  0x50   : > { %p5199_p1 = pnand %p5198_p13, %p4997_p3  ;;  %p5205_p8 = scmp.lt.s32.totalorder %s5203_s26, %s5197_s19 }
  0x52   : > { %p5200_p4 = pneg %p5199_p1  ;;  %p5206_p10 = por %p5205_p8, %p5204_p5 }
  0x54   : > { %p5207_p0 = pnand %p5206_p10, %p5200_p4 }
  0x56   : > { %5210 = shalt.err (!%p5207_p0)
}
  0x57   : > { %s5333_s18 = smov 4096   ;;  %s5334_s30 = smov 256  }
  0x58   : > { %167 = dma.hbm_to_vmem [thread:$0]  (%p4997_p3), %s5456_s4, %s5445_s28, %s5458_s5, %s5448_s29, %s5333_s18, %s5333_s18, %s5334_s30  }
  0x59 PF: > { %p8283_p12 = scmp.ne.s32.totalorder %s8280_s24, 0 }
  0x5b   : > { %173 = sbr.rel (%p8283_p12) target bundleno = 862 (0x35e), region = 28 }
  0x62   : > { %p8284_p2 = scmp.ne.s32.totalorder %s8277_s20, 0 }
  0x64   : > { %5268 = dma.done.wait (%p8284_p2), [#allocation3], 512  }
  0x65   : > { %5270 = vsyncadd (%p8284_p2), [#allocation3], 4294966784  ;;  %s5492_s3 = sand.u32 1, %s5281_s10   ;;  %p8285_p3 = scmp.ne.s32.totalorder %s8278_s21, 0 }
  0x66   : > { %s5004_s6 = sshll.u32 %s5492_s3, 13  ;;  %s180_s7 = scalar_lea.sflag [#allocation5], %s5492_s3 }
  0x67   : > { %s5496_s28 = scalar_lea.vmem [#allocation4], %s5004_s6 }
  0x68   : > { %5272 = dma.done.wait (%p8285_p3), %s180_s7, 131072  }
  0x69   : > { %5274 = vsyncadd (%p8285_p3), %s180_s7, 4294836224  ;;  %v1240_v0 = vlaneseq  ;;  %v2332_v4 = vld [vmem:[#allocation2] sm:$0xff]  ;;  %v281_v11 = vld [vmem:[%s5496_s28 + $0x208] sm:$0xff]  ;;  %s5005_s20 = sshll.u32 %s5492_s3, 8  ;;  %vm4580_vm1 = vcmask 7168   ;;  %p8497_p6 = scmp.ne.s32.totalorder %s8279_s23, 0 }
  0x6a   : > { %v280_v10 = vld [vmem:[%s5496_s28 + $0x200] sm:$0xff]  ;;  %v282_v14 = vld [vmem:[%s5496_s28 + $0x210] sm:$0xff]  ;;  %v283_v20 = vld [vmem:[%s5496_s28 + $0x218] sm:$0xff]  ;;  %s7837_s21 = scalar_lea.vmem [#allocation6], %s5005_s20   ;;  %s5007_s24 = sshll.u32 (%p8497_p6), %s5289_s12, 5 }
  0x6b   : > { %v2341_v1 = vshrl.u32 %v1240_v0, 7  ;;  %v1241_v6 = vand.u32 127, %v1240_v0  ;;  %v284_v24 = vld [vmem:[%s5496_s28 + $0x220] sm:$0xff]  ;;  %v311_v25 = vld [vmem:[%s5496_s28 + $0x2f8] sm:$0xff]  ;;  %v285_v30 = vld [vmem:[%s5496_s28 + $0x228] sm:$0xff]  ;;  %s5026_s29 = sshll.u32 (%p8497_p6), %s5289_s12, 8 }
  0x6c   : > { %v2333_v31 = vld [vmem:[#allocation2 + $0x8] sm:$0xff]  ;;  %v216_v35 = vld [vmem:[%s5496_s28] sm:$0xff]  ;;  %v286_v37 = vld [vmem:[%s5496_s28 + $0x230] sm:$0xff]  ;;  %s4621_s4 = ssub.s32 (%p8497_p6), 125, %s5007_s24  ;;  %s8045_s9 = scalar_lea.vmem (%p8497_p6), %s8187_s2, %s5026_s29  }
  0x6d   : > { %v5502_v2 = vsub.s32 0, %v2341_v1  ;;  %v5504_v3 = vsub.s32 1, %v2341_v1  ;;  %v5506_v5 = vsub.s32 2, %v2341_v1  ;;  %v5514_v9 = vsub.s32 3, %v2341_v1  ;;  %v217_v36 = vld [vmem:[%s5496_s28 + $0x8] sm:$0xff]  ;;  %v218_v43 = vld [vmem:[%s5496_s28 + $0x10] sm:$0xff] }
  0x6e   : > { %v5521_v13 = vsub.s32 4, %v2341_v1  ;;  %v5524_v15 = vadd.s32 3968, %v1241_v6  ;;  %v5529_v17 = vsub.s32 5, %v2341_v1  ;;  %v5537_v22 = vsub.s32 6, %v2341_v1  ;;  %v287_v44 = vld [vmem:[%s5496_s28 + $0x238] sm:$0xff]  ;;  %v2334_v45 = vld [vmem:[#allocation2 + $0x10] sm:$0xff] }
  0x6f   : > { %v5509_v7 = vrot.slane %v2332_v4, %v5502_v2  ;;  %v5512_v8 = vrot.slane %v2332_v4, %v5504_v3  ;;  %v5519_v12 = vrot.slane %v2332_v4, %v5506_v5  ;;  %v5527_v16 = vrot.slane %v2332_v4, %v5514_v9  ;;  %v219_v54 = vld [vmem:[%s5496_s28 + $0x18] sm:$0xff]  ;;  %v288_v55 = vld [vmem:[%s5496_s28 + $0x240] sm:$0xff]  ;;  %p4622_p7 = scmp.lt.s32.totalorder (%p8497_p6), %s4621_s4, 32 }
  0x70   : > { %8288 = vst [vmem:[#allocation11_spill] sm:$0xff] %v5524_v15  ;;  %v5535_v21 = vrot.slane %v2332_v4, %v5521_v13  ;;  %vm1307_vm0 = vcmp.lt.s32.totalorder %v5524_v15, 4000  ;;  %v5544_v26 = vrot.slane %v2332_v4, %v5529_v17  ;;  %v5546_v27 = vsub.s32 7, %v2341_v1  ;;  %v220_v0 = vld [vmem:[%s5496_s28 + $0x20] sm:$0xff]  ;;  %v289_v1 = vld [vmem:[%s5496_s28 + $0x248] sm:$0xff] }
  0x71   : > { %8286 = vst [vmem:[#allocation9_spill] sm:$0xff] %v5509_v7  ;;  %8287 = vst [vmem:[#allocation10_spill] sm:$0xff] %v5519_v12  ;;  %v2564_v18 = vmul.f32 %v5509_v7, %v280_v10  ;;  %v2565_v19 = vmul.f32 %v5512_v8, %v281_v11  ;;  %v2566_v23 = vmul.f32 %v5519_v12, %v282_v14  ;;  %v5559_v38 = vsel %vm1307_vm0, %v311_v25, 0.0  ;;  %v290_v25 = vld [vmem:[%s5496_s28 + $0x250] sm:$0xff] }
  0x72   : > { %8289 = vst [vmem:[#allocation12_spill] sm:$0xff] %v5527_v16  ;;  %v2567_v28 = vmul.f32 %v5527_v16, %v283_v20  ;;  %v5551_v32 = vrot.slane %v2332_v4, %v5537_v22  ;;  %v2568_v33 = vmul.f32 %v5535_v21, %v284_v24  ;;  %v5562_v39 = vrot.slane %v2332_v4, %v5546_v27  ;;  %v2335_v4 = vld [vmem:[#allocation2 + $0x18] sm:$0xff]  ;;  %v221_v24 = vld [vmem:[%s5496_s28 + $0x28] sm:$0xff] }
  0x73   : > { %v3590_v29 = vadd.f32 %v2565_v19, %v2564_v18  ;;  %v5565_v40 = vrot.slane %v2333_v31, %v5502_v2  ;;  %v2569_v41 = vmul.f32 %v5544_v26, %v285_v30  ;;  %v5571_v46 = vrot.slane %v2333_v31, %v5504_v3 }
  0x74   : > { %8290 = vst [vmem:[#allocation13_spill] sm:$0xff] %v5551_v32  ;;  %8291 = vst [vmem:[#allocation14_spill] sm:$0xff] %v5562_v39  ;;  %v5574_v47 = vrot.slane %v2333_v31, %v5506_v5  ;;  %v2500_v48 = vmul.f32 %v5509_v7, %v216_v35  ;;  %v2501_v49 = vmul.f32 %v5512_v8, %v217_v36 }
  0x75   : > { %v3591_v34 = vadd.f32 %v3590_v29, %v2566_v23  ;;  %8292 = vst [vmem:[#allocation15_spill] sm:$0xff] %v5565_v40  ;;  %8293 = vst [vmem:[#allocation16_spill] sm:$0xff] %v5571_v46  ;;  %v5579_v50 = vrot.slane %v2333_v31, %v5514_v9  ;;  %v5582_v51 = vrot.slane %v2333_v31, %v5521_v13 }
  0x76   : > { %8294 = vst [vmem:[#allocation17_spill] sm:$0xff] %v5574_v47  ;;  %v2570_v52 = vmul.f32 %v5551_v32, %v286_v37  ;;  %v5588_v56 = vrot.slane %v2333_v31, %v5529_v17  ;;  %v5591_v57 = vrot.slane %v2333_v31, %v5537_v22  ;;  %v5594_v58 = vrot.slane %v2333_v31, %v5546_v27  ;;  %v222_v37 = vld [vmem:[%s5496_s28 + $0x30] sm:$0xff] }
  0x77   : > { %v3592_v42 = vadd.f32 %v3591_v34, %v2567_v28  ;;  %8295 = vst [vmem:[#allocation18_spill] sm:$0xff] %v5579_v50  ;;  %v2502_v59 = vmul.f32 %v5519_v12, %v218_v43  ;;  %v5598_v60 = vrot.slane %v2334_v45, %v5502_v2  ;;  %v5601_v61 = vrot.slane %v2334_v45, %v5504_v3  ;;  %v293_v43 = vld [vmem:[%s5496_s28 + $0x268] sm:$0xff] }
  0x78   : > { %8296 = vst [vmem:[#allocation19_spill] sm:$0xff] %v5591_v57  ;;  %8297 = vst [vmem:[#allocation20_spill] sm:$0xff] %v5594_v58  ;;  %v2571_v62 = vmul.f32 %v5562_v39, %v287_v44  ;;  %v5607_v6 = vrot.slane %v2334_v45, %v5506_v5  ;;  %v5610_v10 = vrot.slane %v2334_v45, %v5514_v9 }
  0x79   : > { %v3593_v53 = vadd.f32 %v3592_v42, %v2568_v33  ;;  %8298 = vst [vmem:[#allocation21_spill] sm:$0xff] %v5598_v60  ;;  %8299 = vst [vmem:[#allocation22_spill] sm:$0xff] %v5601_v61  ;;  %v2503_v11 = vmul.f32 %v5527_v16, %v219_v54  ;;  %v3524_v14 = vadd.f32 %v2501_v49, %v2500_v48  ;;  %v292_v42 = vld [vmem:[%s5496_s28 + $0x260] sm:$0xff]  ;;  %v223_v54 = vld [vmem:[%s5496_s28 + $0x38] sm:$0xff] }
  0x7a   : > { %8300 = vst [vmem:[#allocation23_spill] sm:$0xff] %v5607_v6  ;;  %8301 = vst [vmem:[#allocation24_spill] sm:$0xff] %v5610_v10  ;;  %v5614_v18 = vrot.slane %v2334_v45, %v5521_v13  ;;  %v5617_v19 = vrot.slane %v2334_v45, %v5529_v17  ;;  %v2572_v20 = vmul.f32 %v5565_v40, %v288_v55  ;;  %v294_v55 = vld [vmem:[%s5496_s28 + $0x270] sm:$0xff] }
  0x7b   : > { %v3594_v63 = vadd.f32 %v3593_v53, %v2569_v41  ;;  %v5623_v28 = vrot.slane %v2334_v45, %v5537_v22  ;;  %v5626_v29 = vrot.slane %v2334_v45, %v5546_v27  ;;  %v2504_v30 = vmul.f32 %v5535_v21, %v220_v0  ;;  %v291_v41 = vld [vmem:[%s5496_s28 + $0x258] sm:$0xff] }
  0x7c   : > { %8302 = vst [vmem:[#allocation25_spill] sm:$0xff] %v5617_v19  ;;  %v3525_v31 = vadd.f32 %v3524_v14, %v2502_v59  ;;  %v5630_v33 = vrot.slane %v2335_v4, %v5502_v2  ;;  %v5633_v34 = vrot.slane %v2335_v4, %v5504_v3  ;;  %v2573_v35 = vmul.f32 %v5571_v46, %v289_v1  ;;  %v295_v59 = vld [vmem:[%s5496_s28 + $0x278] sm:$0xff]  ;;  %v297_v1 = vld [vmem:[%s5496_s28 + $0x288] sm:$0xff] }
  0x7d   : > { %v3595_v23 = vadd.f32 %v3594_v63, %v2570_v52  ;;  %8303 = vst [vmem:[#allocation26_spill] sm:$0xff] %v5623_v28  ;;  %8304 = vst [vmem:[#allocation27_spill] sm:$0xff] %v5626_v29  ;;  %v5641_v44 = vrot.slane %v2335_v4, %v5506_v5  ;;  %v5644_v2 = vrot.slane %v2335_v4, %v5514_v9  ;;  %v312_v5 = vld [vmem:[%s5496_s28 + $0x300] sm:$0xff]  ;;  %v313_v9 = vld [vmem:[%s5496_s28 + $0x308] sm:$0xff] }
  0x7e   : > { %8305 = vst [vmem:[#allocation28_spill] sm:$0xff] %v5630_v33  ;;  %8306 = vst [vmem:[#allocation29_spill] sm:$0xff] %v5633_v34  ;;  %v2505_v3 = vmul.f32 %v5544_v26, %v221_v24  ;;  %v3526_v45 = vadd.f32 %v3525_v31, %v2503_v11  ;;  %v5648_v48 = vrot.slane %v2335_v4, %v5521_v13  ;;  %v224_v24 = vld [vmem:[%s5496_s28 + $0x40] sm:$0xff] }
  0x7f   : > { %v3596_v36 = vadd.f32 %v3595_v23, %v2571_v62  ;;  %8307 = vst [vmem:[#allocation30_spill] sm:$0xff] %v5641_v44  ;;  %8308 = vst [vmem:[#allocation31_spill] sm:$0xff] %v5644_v2  ;;  %v5651_v49 = vrot.slane %v2335_v4, %v5529_v17  ;;  %v2574_v52 = vmul.f32 %v5574_v47, %v290_v25  ;;  %v296_v62 = vld [vmem:[%s5496_s28 + $0x280] sm:$0xff] }
  0x80   : > { %8309 = vst [vmem:[#allocation32_spill] sm:$0xff] %v5648_v48  ;;  %v5661_v13 = vrot.slane %v2335_v4, %v5537_v22  ;;  %v5664_v17 = vrot.slane %v2335_v4, %v5546_v27  ;;  %v2506_v63 = vmul.f32 %v5551_v32, %v222_v37  ;;  %v3527_v0 = vadd.f32 %v3526_v45, %v2504_v30  ;;  %v314_v22 = vld [vmem:[%s5496_s28 + $0x310] sm:$0xff]  ;;  %v299_v4 = vld [vmem:[%s5496_s28 + $0x298] sm:$0xff]  ;;  %v300_v25 = vld [vmem:[%s5496_s28 + $0x2a0] sm:$0xff] }
  0x81   : > { %8310 = vst [vmem:[#allocation33_spill] sm:$0xff] %v5651_v49  ;;  %v3597_v53 = vadd.f32 %v3596_v36, %v2572_v20  ;;  %v2575_v11 = vmul.f32 %v5579_v50, %v291_v41  ;;  %v2576_v14 = vmul.f32 %v5582_v51, %v292_v42  ;;  %v2577_v20 = vmul.f32 %v5588_v56, %v293_v43  ;;  %v298_v27 = vld [vmem:[%s5496_s28 + $0x290] sm:$0xff]  ;;  %v225_v45 = vld [vmem:[%s5496_s28 + $0x48] sm:$0xff] }
  0x82   : > { %8311 = vst [vmem:[#allocation34_spill] sm:$0xff] %v5661_v13  ;;  %8312 = vst [vmem:[#allocation35_spill] sm:$0xff] %v5664_v17  ;;  %v2507_v30 = vmul.f32 %v5562_v39, %v223_v54  ;;  %v3528_v31 = vadd.f32 %v3527_v0, %v2505_v3  ;;  %v2596_v36 = vmul.f32 %v5509_v7, %v312_v5  ;;  %v301_v3 = vld [vmem:[%s5496_s28 + $0x2a8] sm:$0xff]  ;;  %v302_v54 = vld [vmem:[%s5496_s28 + $0x2b0] sm:$0xff] }
  0x83   : > { %v3598_v23 = vadd.f32 %v3597_v53, %v2573_v35  ;;  %v2597_v37 = vmul.f32 %v5512_v8, %v313_v9  ;;  %v2578_v41 = vmul.f32 %v5591_v57, %v294_v55  ;;  %v5681_v42 = vmul.f32 %v5594_v58, %v295_v59  ;;  %v315_v53 = vld [vmem:[%s5496_s28 + $0x318] sm:$0xff] }
  0x84   : > { %v5684_v35 = vmul.f32 %v5598_v60, %v296_v62  ;;  %v303_v5 = vld [vmem:[%s5496_s28 + $0x2b8] sm:$0xff]  ;;  %v5692_v9 = vmul.f32 %v5601_v61, %v297_v1  ;;  %v2508_v55 = vmul.f32 %v5565_v40, %v224_v24  ;;  %v3529_v59 = vadd.f32 %v3528_v31, %v2506_v63  ;;  %v226_v1 = vld [vmem:[%s5496_s28 + $0x50] sm:$0xff]  ;;  %v316_v61 = vld [vmem:[%s5496_s28 + $0x320] sm:$0xff] }
  0x85   : > { %v3599_v43 = vadd.f32 %v3598_v23, %v2574_v52  ;;  %v2598_v0 = vmul.f32 %v5519_v12, %v314_v22  ;;  %v5697_v62 = vmul.f32 %v5607_v6, %v298_v27  ;;  %v5700_v52 = vmul.f32 %v5610_v10, %v299_v4  ;;  %v304_v63 = vld [vmem:[%s5496_s28 + $0x2c0] sm:$0xff]  ;;  %v305_v24 = vld [vmem:[%s5496_s28 + $0x2c8] sm:$0xff]  ;;  %v306_v22 = vld [vmem:[%s5496_s28 + $0x2d0] sm:$0xff] }
  0x86   : > { %v5703_v23 = vmul.f32 %v5614_v18, %v300_v25  ;;  %v2509_v27 = vmul.f32 %v5571_v46, %v225_v45  ;;  %v3530_v31 = vadd.f32 %v3529_v59, %v2507_v30  ;;  %v2599_v4 = vmul.f32 %v5527_v16, %v315_v53  ;;  %v317_v45 = vld [vmem:[%s5496_s28 + $0x328] sm:$0xff]  ;;  %v307_v30 = vld [vmem:[%s5496_s28 + $0x2d8] sm:$0xff]  ;;  %v308_v59 = vld [vmem:[%s5496_s28 + $0x2e0] sm:$0xff] }
  0x87   : > { %8313 = vst [vmem:[#allocation36_spill] sm:$0xff] %v5700_v52  ;;  %v3600_v60 = vadd.f32 %v3599_v43, %v2575_v11  ;;  %v3623_v52 = vadd.f32 %v2597_v37, %v2596_v36  ;;  %v5713_v10 = vmul.f32 %v5617_v19, %v301_v3  ;;  %v5716_v25 = vmul.f32 %v5623_v28, %v302_v54  ;;  %v309_v53 = vld [vmem:[%s5496_s28 + $0x2e8] sm:$0xff] }
  0x88   : > { %8314 = vst [vmem:[#allocation37_spill] sm:$0xff] %v5703_v23  ;;  %v5719_v11 = vmul.f32 %v5626_v29, %v303_v5  ;;  %v227_v23 = vld [vmem:[%s5496_s28 + $0x58] sm:$0xff]  ;;  %v2510_v36 = vmul.f32 %v5574_v47, %v226_v1  ;;  %v3531_v37 = vadd.f32 %v3530_v31, %v2508_v55  ;;  %v2600_v3 = vmul.f32 %v5535_v21, %v316_v61  ;;  %v310_v1 = vld [vmem:[%s5496_s28 + $0x2f0] sm:$0xff] }
  0x89   : > { %8315 = vst [vmem:[#allocation38_spill] sm:$0xff] %v5713_v10  ;;  %8316 = vst [vmem:[#allocation39_spill] sm:$0xff] %v5716_v25  ;;  %v3601_v43 = vadd.f32 %v3600_v60, %v2576_v14  ;;  %v3624_v54 = vadd.f32 %v3623_v52, %v2598_v0  ;;  %v5729_v25 = vmul.f32 %v5630_v33, %v304_v63  ;;  %v318_v10 = vld [vmem:[%s5496_s28 + $0x330] sm:$0xff]  ;;  %v247_v55 = vld [vmem:[%s5496_s28 + $0xf8] sm:$0xff] }
  0x8a   : > { %8317 = vst [vmem:[#allocation40_spill] sm:$0xff] %v5719_v11  ;;  %v5732_v5 = vmul.f32 %v5633_v34, %v305_v24  ;;  %v5735_v60 = vmul.f32 %v5641_v44, %v306_v22  ;;  %v228_v11 = vld [vmem:[%s5496_s28 + $0x60] sm:$0xff]  ;;  %v2511_v61 = vmul.f32 %v5579_v50, %v227_v23  ;;  %v3532_v0 = vadd.f32 %v3531_v37, %v2509_v27  ;;  %v319_v23 = vld [vmem:[%s5496_s28 + $0x338] sm:$0xff]  ;;  %v230_v27 = vld [vmem:[%s5496_s28 + $0x70] sm:$0xff] }
  0x8b   : > { %v3602_v14 = vadd.f32 %v3601_v43, %v2577_v20  ;;  %v2601_v52 = vmul.f32 %v5544_v26, %v317_v45  ;;  %v3625_v63 = vadd.f32 %v3624_v54, %v2599_v4  ;;  %v5744_v24 = vmul.f32 %v5644_v2, %v307_v30  ;;  %v229_v43 = vld [vmem:[%s5496_s28 + $0x68] sm:$0xff]  ;;  %v248_v54 = vld [vmem:[%s5496_s28 + $0x100] sm:$0xff] }
  0x8c   : > { %8318 = vst [vmem:[#allocation41_spill] sm:$0xff] %v5735_v60  ;;  %v5747_v22 = vmul.f32 %v5648_v48, %v308_v59  ;;  %v5750_v20 = vmul.f32 %v5651_v49, %v309_v53  ;;  %v2512_v45 = vmul.f32 %v5582_v51, %v228_v11  ;;  %v3533_v4 = vadd.f32 %v3532_v0, %v2510_v36  ;;  %v249_v59 = vld [vmem:[%s5496_s28 + $0x108] sm:$0xff]  ;;  %v320_v11 = vld [vmem:[%s5496_s28 + $0x340] sm:$0xff] }
  0x8d   : > { %8319 = vst [vmem:[#allocation42_spill] sm:$0xff] %v5744_v24  ;;  %v3603_v31 = vadd.f32 %v3602_v14, %v2578_v41  ;;  %v2602_v30 = vmul.f32 %v5551_v32, %v318_v10  ;;  %v3626_v37 = vadd.f32 %v3625_v63, %v2600_v3  ;;  %v5760_v53 = vmul.f32 %v5661_v13, %v310_v1  ;;  %v232_v36 = vld [vmem:[%s5496_s28 + $0x80] sm:$0xff]  ;;  %v233_v3 = vld [vmem:[%s5496_s28 + $0x88] sm:$0xff] }
  0x8e   : > { %8320 = vst [vmem:[#allocation43_spill] sm:$0xff] %v5747_v22  ;;  %8321 = vst [vmem:[#allocation44_spill] sm:$0xff] %v5750_v20  ;;  %v5764_v41 = vmul.f32 %v5664_v17, %v5559_v38  ;;  %v231_v20 = vld [vmem:[%s5496_s28 + $0x78] sm:$0xff]  ;;  %v5770_v10 = vsel %vm1307_vm0, %v247_v55, 0.0  ;;  %v2513_v0 = vmul.f32 %v5588_v56, %v229_v43  ;;  %v3534_v1 = vadd.f32 %v3533_v4, %v2511_v61  ;;  %v321_v55 = vld [vmem:[%s5496_s28 + $0x348] sm:$0xff] }
  0x8f   : > { %8322 = vst [vmem:[#allocation45_spill] sm:$0xff] %v5760_v53  ;;  %v3604_v14 = vadd.f32 %v3603_v31, %v5681_v42  ;;  %8324 = vst [vmem:[#allocation47_spill] sm:$0xff] %v5770_v10  ;;  %v2603_v63 = vmul.f32 %v5562_v39, %v319_v23  ;;  %v3627_v38 = vadd.f32 %v3626_v37, %v2601_v52  ;;  %v234_v31 = vld [vmem:[%s5496_s28 + $0x90] sm:$0xff]  ;;  %v235_v43 = vld [vmem:[%s5496_s28 + $0x98] sm:$0xff] }
  0x90   : > { %8323 = vst [vmem:[#allocation46_spill] sm:$0xff] %v5764_v41  ;;  %v250_v41 = vld [vmem:[%s5496_s28 + $0x110] sm:$0xff]  ;;  %v2514_v15 = vmul.f32 %v5591_v57, %v230_v27  ;;  %v2532_v53 = vmul.f32 %v5509_v7, %v248_v54  ;;  %v2533_v22 = vmul.f32 %v5512_v8, %v249_v59  ;;  %v2515_v61 = vmul.f32 %v5594_v58, %v231_v20  ;;  %v236_v27 = vld [vmem:[%s5496_s28 + $0xa0] sm:$0xff]  ;;  %v8326_v60 = vld [vmem:[#allocation22_spill] sm:$0xff] }
  0x91   : > { %v3605_v42 = vadd.f32 %v3604_v14, %v5684_v35  ;;  %v3535_v23 = vadd.f32 %v3534_v1, %v2512_v45  ;;  %v2604_v52 = vmul.f32 %v5565_v40, %v320_v11  ;;  %v3628_v4 = vadd.f32 %v3627_v38, %v2602_v30  ;;  %v251_v35 = vld [vmem:[%s5496_s28 + $0x118] sm:$0xff]  ;;  %v8325_v14 = vld [vmem:[#allocation21_spill] sm:$0xff]  ;;  %v322_v59 = vld [vmem:[%s5496_s28 + $0x350] sm:$0xff] }
  0x92   : > { %v2516_v24 = vmul.f32 %v8325_v14, %v232_v36  ;;  %v2517_v54 = vmul.f32 %v8326_v60, %v233_v3  ;;  %v2534_v17 = vmul.f32 %v5519_v12, %v250_v41  ;;  %v237_v20 = vld [vmem:[%s5496_s28 + $0xa8] sm:$0xff]  ;;  %v2518_v45 = vmul.f32 %v5607_v6, %v234_v31  ;;  %v252_v38 = vld [vmem:[%s5496_s28 + $0x120] sm:$0xff]  ;;  %v238_v36 = vld [vmem:[%s5496_s28 + $0xb0] sm:$0xff] }
  0x93   : > { %v3606_v37 = vadd.f32 %v3605_v42, %v5692_v9  ;;  %v3536_v11 = vadd.f32 %v3535_v23, %v2513_v0  ;;  %v2605_v30 = vmul.f32 %v5571_v46, %v321_v55  ;;  %v3629_v1 = vadd.f32 %v3628_v4, %v2603_v63  ;;  %v8327_v42 = vld [vmem:[#allocation24_spill] sm:$0xff] }
  0x94   : > { %v5801_v10 = vmul.f32 %v8327_v42, %v235_v43  ;;  %v323_v3 = vld [vmem:[%s5496_s28 + $0x358] sm:$0xff]  ;;  %v2535_v41 = vmul.f32 %v5527_v16, %v251_v35  ;;  %v3557_v12 = vadd.f32 %v2533_v22, %v2532_v53  ;;  %v5807_v0 = vmul.f32 %v5614_v18, %v236_v27  ;;  %v324_v22 = vld [vmem:[%s5496_s28 + $0x360] sm:$0xff]  ;;  %v241_v27 = vld [vmem:[%s5496_s28 + $0xc8] sm:$0xff] }
  0x95   : > { %v3607_v9 = vadd.f32 %v3606_v37, %v5697_v62  ;;  %v239_v31 = vld [vmem:[%s5496_s28 + $0xb8] sm:$0xff]  ;;  %v3537_v55 = vadd.f32 %v3536_v11, %v2514_v15  ;;  %v2606_v63 = vmul.f32 %v5574_v47, %v322_v59  ;;  %v3630_v23 = vadd.f32 %v3629_v1, %v2604_v52  ;;  %v253_v62 = vld [vmem:[%s5496_s28 + $0x128] sm:$0xff]  ;;  %v240_v37 = vld [vmem:[%s5496_s28 + $0xc0] sm:$0xff] }
  0x96   : > { %v8328_v4 = vld [vmem:[#allocation36_spill] sm:$0xff]  ;;  %v5814_v42 = vmul.f32 %v5617_v19, %v237_v20  ;;  %v2536_v53 = vmul.f32 %v5535_v21, %v252_v38  ;;  %v3558_v35 = vadd.f32 %v3557_v12, %v2534_v17  ;;  %v5820_v15 = vmul.f32 %v5623_v28, %v238_v36  ;;  %v254_v1 = vld [vmem:[%s5496_s28 + $0x130] sm:$0xff]  ;;  %v325_v12 = vld [vmem:[%s5496_s28 + $0x368] sm:$0xff] }
  0x97   : > { %v3608_v43 = vadd.f32 %v3607_v9, %v8328_v4  ;;  %v3538_v59 = vadd.f32 %v3537_v55, %v2515_v61  ;;  %v2607_v52 = vmul.f32 %v5579_v50, %v323_v3  ;;  %v3631_v11 = vadd.f32 %v3630_v23, %v2605_v30  ;;  %v8329_v9 = vld [vmem:[#allocation37_spill] sm:$0xff]  ;;  %v242_v4 = vld [vmem:[%s5496_s28 + $0xd0] sm:$0xff]  ;;  %v243_v36 = vld [vmem:[%s5496_s28 + $0xd8] sm:$0xff] }
  0x98   : > { %v5827_v19 = vmul.f32 %v5626_v29, %v239_v31  ;;  %v2537_v17 = vmul.f32 %v5544_v26, %v253_v62  ;;  %v3559_v38 = vadd.f32 %v3558_v35, %v2535_v41  ;;  %v5833_v61 = vmul.f32 %v5630_v33, %v240_v37  ;;  %v255_v23 = vld [vmem:[%s5496_s28 + $0x138] sm:$0xff]  ;;  %v326_v62 = vld [vmem:[%s5496_s28 + $0x370] sm:$0xff]  ;;  %v245_v35 = vld [vmem:[%s5496_s28 + $0xe8] sm:$0xff] }
  0x99   : > { %v3609_v20 = vadd.f32 %v3608_v43, %v8329_v9  ;;  %v3539_v3 = vadd.f32 %v3538_v59, %v2516_v24  ;;  %v2608_v30 = vmul.f32 %v5582_v51, %v324_v22  ;;  %v3632_v55 = vadd.f32 %v3631_v11, %v2606_v63  ;;  %v8330_v43 = vld [vmem:[#allocation38_spill] sm:$0xff]  ;;  %v244_v9 = vld [vmem:[%s5496_s28 + $0xe0] sm:$0xff] }
  0x9a   : > { %v5840_v29 = vmul.f32 %v5633_v34, %v241_v27  ;;  %v2538_v41 = vmul.f32 %v5551_v32, %v254_v1  ;;  %v3560_v37 = vadd.f32 %v3559_v38, %v2536_v53  ;;  %v5846_v24 = vmul.f32 %v5641_v44, %v242_v4  ;;  %v256_v11 = vld [vmem:[%s5496_s28 + $0x140] sm:$0xff]  ;;  %v246_v27 = vld [vmem:[%s5496_s28 + $0xf0] sm:$0xff]  ;;  %v327_v1 = vld [vmem:[%s5496_s28 + $0x378] sm:$0xff] }
  0x9b   : > { %v3610_v31 = vadd.f32 %v3609_v20, %v8330_v43  ;;  %v3540_v22 = vadd.f32 %v3539_v3, %v2517_v54  ;;  %v2609_v63 = vmul.f32 %v5588_v56, %v325_v12  ;;  %v3633_v59 = vadd.f32 %v3632_v55, %v2607_v52  ;;  %v8331_v20 = vld [vmem:[#allocation39_spill] sm:$0xff]  ;;  %v328_v12 = vld [vmem:[%s5496_s28 + $0x380] sm:$0xff]  ;;  %v257_v55 = vld [vmem:[%s5496_s28 + $0x148] sm:$0xff] }
  0x9c   : > { %v5853_v34 = vmul.f32 %v5644_v2, %v243_v36  ;;  %v2539_v53 = vmul.f32 %v5562_v39, %v255_v23  ;;  %v3561_v38 = vadd.f32 %v3560_v37, %v2537_v17  ;;  %v5858_v4 = vmul.f32 %v5648_v48, %v244_v9  ;;  %v376_v9 = vld [vmem:[%s5496_s28 + $0x500] sm:$0xff]  ;;  %v377_v37 = vld [vmem:[%s5496_s28 + $0x508] sm:$0xff] }
  0x9d   : > { %v3611_v43 = vadd.f32 %v3610_v31, %v8331_v20  ;;  %v3541_v54 = vadd.f32 %v3540_v22, %v2518_v45  ;;  %v2610_v52 = vmul.f32 %v5591_v57, %v326_v62  ;;  %v3634_v3 = vadd.f32 %v3633_v59, %v2608_v30  ;;  %v8332_v31 = vld [vmem:[#allocation40_spill] sm:$0xff]  ;;  %v258_v59 = vld [vmem:[%s5496_s28 + $0x150] sm:$0xff] }
  0x9e   : > { %v5865_v36 = vmul.f32 %v5651_v49, %v245_v35  ;;  %v2540_v23 = vmul.f32 %v5565_v40, %v256_v11  ;;  %v3562_v17 = vadd.f32 %v3561_v38, %v2538_v41  ;;  %v5871_v45 = vmul.f32 %v5661_v13, %v246_v27  ;;  %v329_v35 = vld [vmem:[%s5496_s28 + $0x388] sm:$0xff]  ;;  %v330_v13 = vld [vmem:[%s5496_s28 + $0x390] sm:$0xff] }
  0x9f   : > { %v3612_v20 = vadd.f32 %v3611_v43, %v8332_v31  ;;  %v3542_v62 = vadd.f32 %v3541_v54, %v5801_v10  ;;  %v2611_v30 = vmul.f32 %v5594_v58, %v327_v1  ;;  %v3635_v22 = vadd.f32 %v3634_v3, %v2609_v63  ;;  %v378_v31 = vld [vmem:[%s5496_s28 + $0x510] sm:$0xff]  ;;  %v259_v54 = vld [vmem:[%s5496_s28 + $0x158] sm:$0xff] }
  0xa0   : > { %v2612_v11 = vmul.f32 %v8325_v14, %v328_v12  ;;  %v2541_v41 = vmul.f32 %v5571_v46, %v257_v55  ;;  %v3563_v38 = vadd.f32 %v3562_v17, %v2539_v53  ;;  %v2660_v63 = vmul.f32 %v5509_v7, %v376_v9  ;;  %v8333_v3 = vld [vmem:[#allocation47_spill] sm:$0xff]  ;;  %v331_v17 = vld [vmem:[%s5496_s28 + $0x398] sm:$0xff] }
  0xa1   : > { %v3613_v43 = vadd.f32 %v3612_v20, %v5729_v25  ;;  %v3543_v27 = vadd.f32 %v3542_v62, %v5807_v0  ;;  %v3636_v10 = vadd.f32 %v3635_v22, %v2610_v52  ;;  %v2661_v1 = vmul.f32 %v5512_v8, %v377_v37  ;;  %v8334_v12 = vld [vmem:[#allocation35_spill] sm:$0xff]  ;;  %v379_v0 = vld [vmem:[%s5496_s28 + $0x518] sm:$0xff]  ;;  %v260_v37 = vld [vmem:[%s5496_s28 + $0x160] sm:$0xff] }
  0xa2   : > { %v5889_v20 = vmul.f32 %v8334_v12, %v8333_v3  ;;  %v2542_v53 = vmul.f32 %v5574_v47, %v258_v59  ;;  %v3564_v55 = vadd.f32 %v3563_v38, %v2540_v23  ;;  %v2613_v9 = vmul.f32 %v8326_v60, %v329_v35  ;;  %v8335_v22 = vld [vmem:[#allocation10_spill] sm:$0xff]  ;;  %v380_v38 = vld [vmem:[%s5496_s28 + $0x520] sm:$0xff] }
  0xa3   : > { %v3614_v25 = vadd.f32 %v3613_v43, %v5732_v5  ;;  %v3544_v52 = vadd.f32 %v3543_v27, %v5814_v42  ;;  %v3637_v62 = vadd.f32 %v3636_v10, %v2611_v30  ;;  %v2662_v49 = vmul.f32 %v8335_v22, %v378_v31  ;;  %v8336_v5 = vld [vmem:[#allocation41_spill] sm:$0xff]  ;;  %v261_v35 = vld [vmem:[%s5496_s28 + $0x168] sm:$0xff] }
  0xa4   : > { %v2614_v3 = vmul.f32 %v5607_v6, %v330_v13  ;;  %v2543_v59 = vmul.f32 %v5579_v50, %v259_v54  ;;  %v3565_v23 = vadd.f32 %v3564_v55, %v2541_v41  ;;  %v332_v27 = vld [vmem:[%s5496_s28 + $0x3a0] sm:$0xff]  ;;  %v2663_v30 = vmul.f32 %v5527_v16, %v379_v0  ;;  %v8337_v31 = vld [vmem:[#allocation42_spill] sm:$0xff] }
  0xa5   : > { %v3615_v43 = vadd.f32 %v3614_v25, %v8336_v5  ;;  %v3545_v42 = vadd.f32 %v3544_v52, %v5820_v15  ;;  %v3638_v12 = vadd.f32 %v3637_v62, %v2612_v11  ;;  %v3689_v10 = vadd.f32 %v2661_v1, %v2660_v63  ;;  %v8338_v25 = vld [vmem:[#allocation24_spill] sm:$0xff]  ;;  %v381_v41 = vld [vmem:[%s5496_s28 + $0x528] sm:$0xff]  ;;  %v262_v11 = vld [vmem:[%s5496_s28 + $0x170] sm:$0xff] }
  0xa6   : > { %v2615_v5 = vmul.f32 %v8338_v25, %v331_v17  ;;  %v2544_v13 = vmul.f32 %v5582_v51, %v260_v37  ;;  %v3566_v54 = vadd.f32 %v3565_v23, %v2542_v53  ;;  %v333_v15 = vld [vmem:[%s5496_s28 + $0x3a8] sm:$0xff]  ;;  %v2664_v62 = vmul.f32 %v5535_v21, %v380_v38  ;;  %v8339_v63 = vld [vmem:[#allocation43_spill] sm:$0xff] }
  0xa7   : > { %v3616_v48 = vadd.f32 %v3615_v43, %v8337_v31  ;;  %v3546_v55 = vadd.f32 %v3545_v42, %v5827_v19  ;;  %v3639_v52 = vadd.f32 %v3638_v12, %v2613_v9  ;;  %v3690_v0 = vadd.f32 %v3689_v10, %v2662_v49  ;;  %v382_v53 = vld [vmem:[%s5496_s28 + $0x530] sm:$0xff]  ;;  %v263_v12 = vld [vmem:[%s5496_s28 + $0x178] sm:$0xff] }
  0xa8   : > { %v2616_v43 = vmul.f32 %v5614_v18, %v332_v27  ;;  %v2545_v17 = vmul.f32 %v5588_v56, %v261_v35  ;;  %v3567_v37 = vadd.f32 %v3566_v54, %v2543_v59  ;;  %v334_v19 = vld [vmem:[%s5496_s28 + $0x3b0] sm:$0xff]  ;;  %v2665_v9 = vmul.f32 %v5544_v26, %v381_v41  ;;  %v8340_v49 = vld [vmem:[#allocation44_spill] sm:$0xff] }
  0xa9   : > { %v3617_v1 = vadd.f32 %v3616_v48, %v8339_v63  ;;  %v3547_v23 = vadd.f32 %v3546_v55, %v5833_v61  ;;  %v3640_v42 = vadd.f32 %v3639_v52, %v2614_v3  ;;  %v3691_v38 = vadd.f32 %v3690_v0, %v2663_v30  ;;  %v8341_v48 = vld [vmem:[#allocation25_spill] sm:$0xff]  ;;  %v383_v35 = vld [vmem:[%s5496_s28 + $0x538] sm:$0xff] }
  0xaa   : > { %v2617_v31 = vmul.f32 %v8341_v48, %v333_v15  ;;  %v2546_v27 = vmul.f32 %v5591_v57, %v262_v11  ;;  %v3568_v59 = vadd.f32 %v3567_v37, %v2544_v13  ;;  %v335_v54 = vld [vmem:[%s5496_s28 + $0x3b8] sm:$0xff]  ;;  %v264_v55 = vld [vmem:[%s5496_s28 + $0x180] sm:$0xff]  ;;  %v2666_v41 = vmul.f32 %v5551_v32, %v382_v53 }
  0xab   : > { %v3618_v10 = vadd.f32 %v3617_v1, %v8340_v49  ;;  %v3548_v61 = vadd.f32 %v3547_v23, %v5840_v29  ;;  %v3641_v3 = vadd.f32 %v3640_v42, %v2615_v5  ;;  %v3692_v30 = vadd.f32 %v3691_v38, %v2664_v62  ;;  %v8342_v52 = vld [vmem:[#allocation45_spill] sm:$0xff]  ;;  %v343_v5 = vld [vmem:[%s5496_s28 + $0x3f8] sm:$0xff]  ;;  %v265_v23 = vld [vmem:[%s5496_s28 + $0x188] sm:$0xff] }
  0xac   : > { %v2618_v15 = vmul.f32 %v5623_v28, %v334_v19  ;;  %v2547_v63 = vmul.f32 %v5594_v58, %v263_v12  ;;  %v3569_v11 = vadd.f32 %v3568_v59, %v2545_v17  ;;  %v384_v13 = vld [vmem:[%s5496_s28 + $0x540] sm:$0xff]  ;;  %v2667_v62 = vmul.f32 %v5562_v39, %v383_v35  ;;  %v8343_v42 = vld [vmem:[#allocation46_spill] sm:$0xff]  ;;  %v8344_v49 = vld [vmem:[#allocation27_spill] sm:$0xff] }
  0xad   : > { %v3619_v0 = vadd.f32 %v3618_v10, %v8342_v52  ;;  %v3549_v1 = vadd.f32 %v3548_v61, %v5846_v24  ;;  %v336_v29 = vld [vmem:[%s5496_s28 + $0x3c0] sm:$0xff]  ;;  %v3642_v37 = vadd.f32 %v3641_v3, %v2616_v43  ;;  %v3693_v53 = vadd.f32 %v3692_v30, %v2665_v9  ;;  %v385_v10 = vld [vmem:[%s5496_s28 + $0x548] sm:$0xff]  ;;  %v338_v61 = vld [vmem:[%s5496_s28 + $0x3d0] sm:$0xff] }
  0xae   : > { %v2619_v19 = vmul.f32 %v8344_v49, %v335_v54  ;;  %v2548_v12 = vmul.f32 %v8325_v14, %v264_v55  ;;  %v3570_v17 = vadd.f32 %v3569_v11, %v2546_v27  ;;  %v337_v59 = vld [vmem:[%s5496_s28 + $0x3c8] sm:$0xff]  ;;  %v266_v3 = vld [vmem:[%s5496_s28 + $0x190] sm:$0xff]  ;;  %v2668_v9 = vmul.f32 %v5565_v40, %v384_v13  ;;  %v267_v11 = vld [vmem:[%s5496_s28 + $0x198] sm:$0xff] }
  0xaf   : > { %v3620_v38 = vadd.f32 %v3619_v0, %v8343_v42  ;;  %v3550_v24 = vadd.f32 %v3549_v1, %v5853_v34  ;;  %v3643_v43 = vadd.f32 %v3642_v37, %v2617_v31  ;;  %v3694_v35 = vadd.f32 %v3693_v53, %v2666_v41  ;;  %v386_v52 = vld [vmem:[%s5496_s28 + $0x550] sm:$0xff]  ;;  %v344_v1 = vld [vmem:[%s5496_s28 + $0x400] sm:$0xff]  ;;  %v387_v42 = vld [vmem:[%s5496_s28 + $0x558] sm:$0xff] }
  0xb0   : > { %v5950_v54 = vsel %vm1307_vm0, %v343_v5, 0.0  ;;  %v2620_v27 = vmul.f32 %v5630_v33, %v336_v29  ;;  %v2549_v55 = vmul.f32 %v8326_v60, %v265_v23  ;;  %v3571_v34 = vadd.f32 %v3570_v17, %v2547_v63  ;;  %v345_v5 = vld [vmem:[%s5496_s28 + $0x408] sm:$0xff]  ;;  %v8346_v37 = vld [vmem:[#allocation29_spill] sm:$0xff] }
  0xb1   : > { %3621 = vadd.xlane.f32.xlu1 %v3620_v38  ;;  %v3551_v31 = vadd.f32 %v3550_v24, %v5858_v4  ;;  %v3644_v0 = vadd.f32 %v3643_v43, %v2618_v15  ;;  %v2669_v41 = vmul.f32 %v5571_v46, %v385_v10  ;;  %v3695_v13 = vadd.f32 %v3694_v35, %v2667_v62  ;;  %v339_v15 = vld [vmem:[%s5496_s28 + $0x3d8] sm:$0xff]  ;;  %v268_v17 = vld [vmem:[%s5496_s28 + $0x1a0] sm:$0xff]  ;;  %v346_v24 = vld [vmem:[%s5496_s28 + $0x410] sm:$0xff] }
  0xb2   : > { %v2621_v53 = vmul.f32 %v8346_v37, %v337_v59  ;;  %v2622_v29 = vmul.f32 %v5641_v44, %v338_v61  ;;  %v2550_v23 = vmul.f32 %v5607_v6, %v266_v3  ;;  %v3572_v63 = vadd.f32 %v3571_v34, %v2548_v12  ;;  %v388_v43 = vld [vmem:[%s5496_s28 + $0x560] sm:$0xff] }
  0xb3   : > { %v3552_v4 = vadd.f32 %v3551_v31, %v5865_v36  ;;  %v3645_v38 = vadd.f32 %v3644_v0, %v2619_v19  ;;  %v2670_v62 = vmul.f32 %v5574_v47, %v386_v52  ;;  %v3696_v10 = vadd.f32 %v3695_v13, %v2668_v9  ;;  %v269_v19 = vld [vmem:[%s5496_s28 + $0x1a8] sm:$0xff]  ;;  %v347_v52 = vld [vmem:[%s5496_s28 + $0x418] sm:$0xff]  ;;  %v340_v31 = vld [vmem:[%s5496_s28 + $0x3e0] sm:$0xff] }
  0xb4   : > { %v2551_v59 = vmul.f32 %v8338_v25, %v267_v11  ;;  %v3573_v61 = vadd.f32 %v3572_v63, %v2549_v55  ;;  %v2628_v12 = vmul.f32 %v5509_v7, %v344_v1  ;;  %v2629_v3 = vmul.f32 %v5512_v8, %v345_v5  ;;  %v389_v13 = vld [vmem:[%s5496_s28 + $0x568] sm:$0xff]  ;;  %v270_v5 = vld [vmem:[%s5496_s28 + $0x1b0] sm:$0xff]  ;;  %v464_v30 = vld [vmem:[%s5496_s28 + $0x7c0] sm:$0xff] }
  0xb5   : > { %v3553_v36 = vadd.f32 %v3552_v4, %v5871_v45  ;;  %v3646_v35 = vadd.f32 %v3645_v38, %v2620_v27  ;;  %v2671_v34 = vmul.f32 %v5579_v50, %v387_v42  ;;  %v3697_v9 = vadd.f32 %v3696_v10, %v2669_v41  ;;  %v348_v42 = vld [vmem:[%s5496_s28 + $0x420] sm:$0xff]  ;;  %v341_v4 = vld [vmem:[%s5496_s28 + $0x3e8] sm:$0xff] }
  0xb6   : > { %v2623_v55 = vmul.f32 %v5644_v2, %v339_v15  ;;  %v2552_v0 = vmul.f32 %v5614_v18, %v268_v17  ;;  %v3574_v11 = vadd.f32 %v3573_v61, %v2550_v23  ;;  %v2630_v1 = vmul.f32 %v8335_v22, %v346_v24  ;;  %v390_v23 = vld [vmem:[%s5496_s28 + $0x570] sm:$0xff]  ;;  %v271_v61 = vld [vmem:[%s5496_s28 + $0x1b8] sm:$0xff] }
  0xb7   : > { %v3554_v45 = vadd.f32 %v3553_v36, %v5889_v20  ;;  %v3647_v27 = vadd.f32 %v3646_v35, %v2621_v53  ;;  %v2672_v63 = vmul.f32 %v5582_v51, %v388_v43  ;;  %v3698_v41 = vadd.f32 %v3697_v9, %v2670_v62  ;;  %v8347_v20 = vld [vmem:[#allocation32_spill] sm:$0xff]  ;;  %v349_v36 = vld [vmem:[%s5496_s28 + $0x428] sm:$0xff]  ;;  %v342_v35 = vld [vmem:[%s5496_s28 + $0x3f0] sm:$0xff] }
  0xb8   : > { %v2553_v15 = vmul.f32 %v8341_v48, %v269_v19  ;;  %v3575_v38 = vadd.f32 %v3574_v11, %v2551_v59  ;;  %v2631_v17 = vmul.f32 %v5527_v16, %v347_v52  ;;  %v3656_v10 = vadd.f32 %v2629_v3, %v2628_v12  ;;  %v391_v9 = vld [vmem:[%s5496_s28 + $0x578] sm:$0xff]  ;;  %v8348_v52 = vld [vmem:[#allocation33_spill] sm:$0xff] }
  0xb9   : > { %3555 = vadd.xlane.f32.xlu0 %v3554_v45  ;;  %v2624_v53 = vmul.f32 %v8347_v20, %v340_v31  ;;  %v3648_v24 = vadd.f32 %v3647_v27, %v2622_v29  ;;  %v2673_v43 = vmul.f32 %v5588_v56, %v389_v13  ;;  %v3699_v62 = vadd.f32 %v3698_v41, %v2671_v34  ;;  %v272_v31 = vld [vmem:[%s5496_s28 + $0x1c0] sm:$0xff]  ;;  %v350_v45 = vld [vmem:[%s5496_s28 + $0x430] sm:$0xff] }
  0xba   : > { %v2554_v19 = vmul.f32 %v5623_v28, %v270_v5  ;;  %v3576_v59 = vadd.f32 %v3575_v38, %v2552_v0  ;;  %v2632_v12 = vmul.f32 %v5535_v21, %v348_v42  ;;  %v3657_v3 = vadd.f32 %v3656_v10, %v2630_v1  ;;  %v392_v0 = vld [vmem:[%s5496_s28 + $0x580] sm:$0xff]  ;;  %v8349_v1 = vld [vmem:[#allocation34_spill] sm:$0xff] }
  0xbb   : > { %v2625_v11 = vmul.f32 %v8348_v52, %v341_v4  ;;  %v3649_v29 = vadd.f32 %v3648_v24, %v2623_v55  ;;  %v2674_v13 = vmul.f32 %v5591_v57, %v390_v23  ;;  %v3700_v34 = vadd.f32 %v3699_v62, %v2672_v63  ;;  %v273_v55 = vld [vmem:[%s5496_s28 + $0x1c8] sm:$0xff]  ;;  %v351_v63 = vld [vmem:[%s5496_s28 + $0x438] sm:$0xff]  ;;  %v274_v23 = vld [vmem:[%s5496_s28 + $0x1d0] sm:$0xff] }
  0xbc   : > { %v2555_v27 = vmul.f32 %v8344_v49, %v271_v61  ;;  %v3577_v5 = vadd.f32 %v3576_v59, %v2553_v15  ;;  %v2633_v41 = vmul.f32 %v5544_v26, %v349_v36  ;;  %v3658_v42 = vadd.f32 %v3657_v3, %v2631_v17  ;;  %v393_v62 = vld [vmem:[%s5496_s28 + $0x588] sm:$0xff]  ;;  %v8350_v17 = vld [vmem:[#allocation35_spill] sm:$0xff]  ;;  %v275_v3 = vld [vmem:[%s5496_s28 + $0x1d8] sm:$0xff] }
  0xbd   : > { %v2626_v38 = vmul.f32 %v8349_v1, %v342_v35  ;;  %v3650_v4 = vadd.f32 %v3649_v29, %v2624_v53  ;;  %v2675_v10 = vmul.f32 %v5594_v58, %v391_v9  ;;  %v3701_v24 = vadd.f32 %v3700_v34, %v2673_v43  ;;  %v352_v29 = vld [vmem:[%s5496_s28 + $0x440] sm:$0xff]  ;;  %v394_v34 = vld [vmem:[%s5496_s28 + $0x590] sm:$0xff] }
  0xbe   : > { %v2556_v61 = vmul.f32 %v5630_v33, %v272_v31  ;;  %v3578_v15 = vadd.f32 %v3577_v5, %v2554_v19  ;;  %v2634_v36 = vmul.f32 %v5551_v32, %v350_v45  ;;  %v3659_v59 = vadd.f32 %v3658_v42, %v2632_v12  ;;  %v353_v45 = vld [vmem:[%s5496_s28 + $0x448] sm:$0xff] }
  0xbf   : > { %v2627_v35 = vmul.f32 %v8350_v17, %v5950_v54  ;;  %v3651_v53 = vadd.f32 %v3650_v4, %v2625_v11  ;;  %v2676_v43 = vmul.f32 %v8325_v14, %v392_v0  ;;  %v3702_v9 = vadd.f32 %v3701_v24, %v2674_v13  ;;  %v440_v13 = vld [vmem:[%s5496_s28 + $0x700] sm:$0xff]  ;;  %v441_v4 = vld [vmem:[%s5496_s28 + $0x708] sm:$0xff] }
  0xc0   : > { %v2557_v31 = vmul.f32 %v8346_v37, %v273_v55  ;;  %v3579_v19 = vadd.f32 %v3578_v15, %v2555_v27  ;;  %v2635_v12 = vmul.f32 %v5562_v39, %v351_v63  ;;  %v3660_v5 = vadd.f32 %v3659_v59, %v2633_v41  ;;  %v276_v55 = vld [vmem:[%s5496_s28 + $0x1e0] sm:$0xff]  ;;  %v279_v27 = vld [vmem:[%s5496_s28 + $0x1f8] sm:$0xff] }
  0xc1   : > { %v3652_v54 = vadd.f32 %v3651_v53, %v2626_v38  ;;  %v2558_v11 = vmul.f32 %v5641_v44, %v274_v23  ;;  %v2677_v42 = vmul.f32 %v8326_v60, %v393_v62  ;;  %v3703_v0 = vadd.f32 %v3702_v9, %v2675_v10  ;;  %v395_v63 = vld [vmem:[%s5496_s28 + $0x598] sm:$0xff]  ;;  %v354_v10 = vld [vmem:[%s5496_s28 + $0x450] sm:$0xff]  ;;  %v277_v60 = vld [vmem:[%s5496_s28 + $0x1e8] sm:$0xff] }
  0xc2   : > { %v2559_v24 = vmul.f32 %v5644_v2, %v275_v3  ;;  %v3580_v15 = vadd.f32 %v3579_v19, %v2556_v61  ;;  %v2636_v41 = vmul.f32 %v5565_v40, %v352_v29  ;;  %v3661_v38 = vadd.f32 %v3660_v5, %v2634_v36  ;;  %v442_v9 = vld [vmem:[%s5496_s28 + $0x710] sm:$0xff]  ;;  %v396_v3 = vld [vmem:[%s5496_s28 + $0x5a0] sm:$0xff]  ;;  %v355_v61 = vld [vmem:[%s5496_s28 + $0x458] sm:$0xff] }
  0xc3   : > { %v3653_v59 = vadd.f32 %v3652_v54, %v2627_v35  ;;  %v2678_v23 = vmul.f32 %v5607_v6, %v394_v34  ;;  %v3704_v62 = vadd.f32 %v3703_v0, %v2676_v43  ;;  %v2637_v53 = vmul.f32 %v5571_v46, %v353_v45  ;;  %v278_v5 = vld [vmem:[%s5496_s28 + $0x1f0] sm:$0xff]  ;;  %v356_v0 = vld [vmem:[%s5496_s28 + $0x460] sm:$0xff] }
  0xc4   : > { %v3581_v14 = vadd.f32 %v3580_v15, %v2557_v31  ;;  %v3662_v19 = vadd.f32 %v3661_v38, %v2635_v12  ;;  %v2724_v29 = vmul.f32 %v5509_v7, %v440_v13  ;;  %v2725_v36 = vmul.f32 %v5512_v8, %v441_v4  ;;  %v443_v31 = vld [vmem:[%s5496_s28 + $0x718] sm:$0xff]  ;;  %v397_v12 = vld [vmem:[%s5496_s28 + $0x5a8] sm:$0xff]  ;;  %v444_v38 = vld [vmem:[%s5496_s28 + $0x720] sm:$0xff] }
  0xc5   : > { %3654 = vadd.xlane.f32.xlu1 %v3653_v59  ;;  %v1371_v35 = vsel %vm1307_vm0, %v279_v27, 0.0  ;;  %v2560_v43 = vmul.f32 %v8347_v20, %v276_v55  ;;  %v2679_v34 = vmul.f32 %v8338_v25, %v395_v63  ;;  %v3705_v45 = vadd.f32 %v3704_v62, %v2677_v42 }
  0xc6   : > { %v3582_v54 = vadd.f32 %v3581_v14, %v2558_v11  ;;  %v2638_v13 = vmul.f32 %v5574_v47, %v354_v10  ;;  %v3663_v4 = vadd.f32 %v3662_v19, %v2636_v41  ;;  %v2726_v15 = vmul.f32 %v8335_v22, %v442_v9  ;;  %v398_v14 = vld [vmem:[%s5496_s28 + $0x5b0] sm:$0xff]  ;;  %v357_v11 = vld [vmem:[%s5496_s28 + $0x468] sm:$0xff] }
  0xc7   : > { %v2561_v27 = vmul.f32 %v8348_v52, %v277_v60  ;;  %v2680_v55 = vmul.f32 %v5614_v18, %v396_v3  ;;  %v3706_v63 = vadd.f32 %v3705_v45, %v2678_v23  ;;  %v2639_v42 = vmul.f32 %v5579_v50, %v355_v61  ;;  %v445_v61 = vld [vmem:[%s5496_s28 + $0x728] sm:$0xff]  ;;  %v358_v45 = vld [vmem:[%s5496_s28 + $0x470] sm:$0xff] }
  0xc8   : > { %v3583_v59 = vadd.f32 %v3582_v54, %v2559_v24  ;;  %v3664_v62 = vadd.f32 %v3663_v4, %v2637_v53  ;;  %v2727_v10 = vmul.f32 %v5527_v16, %v443_v31  ;;  %v3755_v41 = vadd.f32 %v2725_v36, %v2724_v29  ;;  %v399_v24 = vld [vmem:[%s5496_s28 + $0x5b8] sm:$0xff] }
  0xc9   : > { %v2562_v9 = vmul.f32 %v8349_v1, %v278_v5  ;;  %v2681_v60 = vmul.f32 %v8341_v48, %v397_v12  ;;  %v3707_v3 = vadd.f32 %v3706_v63, %v2679_v34  ;;  %v2640_v23 = vmul.f32 %v5582_v51, %v356_v0  ;;  %v446_v12 = vld [vmem:[%s5496_s28 + $0x730] sm:$0xff]  ;;  %v407_v4 = vld [vmem:[%s5496_s28 + $0x5f8] sm:$0xff] }
  0xca   : > { %v3584_v19 = vadd.f32 %v3583_v59, %v2560_v43  ;;  %v3665_v54 = vadd.f32 %v3664_v62, %v2638_v13  ;;  %v2728_v53 = vmul.f32 %v5535_v21, %v444_v38  ;;  %v3756_v31 = vadd.f32 %v3755_v41, %v2726_v15  ;;  %v400_v43 = vld [vmem:[%s5496_s28 + $0x5c0] sm:$0xff]  ;;  %v359_v63 = vld [vmem:[%s5496_s28 + $0x478] sm:$0xff]  ;;  %v401_v62 = vld [vmem:[%s5496_s28 + $0x5c8] sm:$0xff] }
  0xcb   : > { %v2563_v29 = vmul.f32 %v8350_v17, %v1371_v35  ;;  %v2682_v36 = vmul.f32 %v5623_v28, %v398_v14  ;;  %v3708_v5 = vadd.f32 %v3707_v3, %v2680_v55  ;;  %v2641_v34 = vmul.f32 %v5588_v56, %v357_v11  ;;  %v447_v14 = vld [vmem:[%s5496_s28 + $0x738] sm:$0xff]  ;;  %v402_v41 = vld [vmem:[%s5496_s28 + $0x5d0] sm:$0xff] }
  0xcc   : > { %v3585_v0 = vadd.f32 %v3584_v19, %v2561_v27  ;;  %v3666_v13 = vadd.f32 %v3665_v54, %v2639_v42  ;;  %v2729_v38 = vmul.f32 %v5544_v26, %v445_v61  ;;  %v3757_v15 = vadd.f32 %v3756_v31, %v2727_v10  ;;  %v403_v27 = vld [vmem:[%s5496_s28 + $0x5d8] sm:$0xff]  ;;  %v404_v31 = vld [vmem:[%s5496_s28 + $0x5e0] sm:$0xff] }
  0xcd   : > { %v2683_v35 = vmul.f32 %v8344_v49, %v399_v24  ;;  %v3709_v59 = vadd.f32 %v3708_v5, %v2681_v60  ;;  %v2642_v55 = vmul.f32 %v5591_v57, %v358_v45  ;;  %v2730_v42 = vmul.f32 %v5551_v32, %v446_v12  ;;  %v360_v24 = vld [vmem:[%s5496_s28 + $0x480] sm:$0xff] }
  0xce   : > { %v3586_v11 = vadd.f32 %v3585_v0, %v2562_v9  ;;  %v3667_v3 = vadd.f32 %v3666_v13, %v2640_v23  ;;  %v3758_v61 = vadd.f32 %v3757_v15, %v2728_v53  ;;  %v1499_v10 = vsel %vm1307_vm0, %v407_v4, 0.0  ;;  %v448_v45 = vld [vmem:[%s5496_s28 + $0x740] sm:$0xff]  ;;  %v409_v0 = vld [vmem:[%s5496_s28 + $0x608] sm:$0xff] }
  0xcf   : > { %v2684_v19 = vmul.f32 %v5630_v33, %v400_v43  ;;  %v3710_v60 = vadd.f32 %v3709_v59, %v2682_v36  ;;  %v2643_v9 = vmul.f32 %v5594_v58, %v359_v63  ;;  %v2731_v5 = vmul.f32 %v5562_v39, %v447_v14  ;;  %v408_v12 = vld [vmem:[%s5496_s28 + $0x600] sm:$0xff]  ;;  %v361_v13 = vld [vmem:[%s5496_s28 + $0x488] sm:$0xff] }
  0xd0   : > { %v3587_v54 = vadd.f32 %v3586_v11, %v2563_v29  ;;  %v3668_v23 = vadd.f32 %v3667_v3, %v2641_v34  ;;  %v3759_v53 = vadd.f32 %v3758_v61, %v2729_v38  ;;  %v2685_v43 = vmul.f32 %v8346_v37, %v401_v62  ;;  %v449_v15 = vld [vmem:[%s5496_s28 + $0x748] sm:$0xff]  ;;  %v406_v34 = vld [vmem:[%s5496_s28 + $0x5f0] sm:$0xff]  ;;  %v8351_v59 = vld [vmem:[#allocation21_spill] sm:$0xff] }
  0xd1   : > { %v2686_v36 = vmul.f32 %v5641_v44, %v402_v41  ;;  %v2687_v4 = vmul.f32 %v5644_v2, %v403_v27  ;;  %v3711_v63 = vadd.f32 %v3710_v60, %v2683_v35  ;;  %v405_v29 = vld [vmem:[%s5496_s28 + $0x5e8] sm:$0xff]  ;;  %v2644_v38 = vmul.f32 %v8351_v59, %v360_v24  ;;  %v410_v62 = vld [vmem:[%s5496_s28 + $0x610] sm:$0xff] }
  0xd2   : > { %3588 = vadd.xlane.f32.xlu0 %v3587_v54  ;;  %v3669_v14 = vadd.f32 %v3668_v23, %v2642_v55  ;;  %v2732_v11 = vmul.f32 %v5565_v40, %v448_v45  ;;  %v3760_v3 = vadd.f32 %v3759_v53, %v2730_v42  ;;  %v2688_v41 = vmul.f32 %v8347_v20, %v404_v31  ;;  %v362_v35 = vld [vmem:[%s5496_s28 + $0x490] sm:$0xff]  ;;  %v8352_v2 = vld [vmem:[#allocation22_spill] sm:$0xff]  ;;  %v411_v45 = vld [vmem:[%s5496_s28 + $0x618] sm:$0xff] }
  0xd3   : > { %v3712_v61 = vadd.f32 %v3711_v63, %v2684_v19  ;;  %v450_v27 = vld [vmem:[%s5496_s28 + $0x750] sm:$0xff]  ;;  %v2692_v60 = vmul.f32 %v5509_v7, %v408_v12  ;;  %v2693_v54 = vmul.f32 %v5512_v8, %v409_v0  ;;  %v2645_v58 = vmul.f32 %v8352_v2, %v361_v13  ;;  %v363_v53 = vld [vmem:[%s5496_s28 + $0x498] sm:$0xff] }
  0xd4   : > { %v3670_v55 = vadd.f32 %v3669_v14, %v2643_v9  ;;  %v2733_v24 = vmul.f32 %v5571_v46, %v449_v15  ;;  %v3761_v42 = vadd.f32 %v3760_v3, %v2731_v5  ;;  %v2689_v31 = vmul.f32 %v8348_v52, %v405_v29  ;;  %v451_v12 = vld [vmem:[%s5496_s28 + $0x758] sm:$0xff]  ;;  %v412_v14 = vld [vmem:[%s5496_s28 + $0x620] sm:$0xff] }
  0xd5   : > { %v2690_v19 = vmul.f32 %v8349_v1, %v406_v34  ;;  %v3713_v23 = vadd.f32 %v3712_v61, %v2685_v43  ;;  %v2694_v0 = vmul.f32 %v8335_v22, %v410_v62  ;;  %v375_v63 = vld [vmem:[%s5496_s28 + $0x4f8] sm:$0xff]  ;;  %v2646_v13 = vmul.f32 %v5607_v6, %v362_v35  ;;  %v364_v43 = vld [vmem:[%s5496_s28 + $0x4a0] sm:$0xff]  ;;  %v365_v22 = vld [vmem:[%s5496_s28 + $0x4a8] sm:$0xff] }
  0xd6   : > { %v3671_v9 = vadd.f32 %v3670_v55, %v2644_v38  ;;  %v2734_v5 = vmul.f32 %v5574_v47, %v450_v27  ;;  %v3762_v15 = vadd.f32 %v3761_v42, %v2732_v11  ;;  %v2691_v29 = vmul.f32 %v8350_v17, %v1499_v10  ;;  %v452_v3 = vld [vmem:[%s5496_s28 + $0x760] sm:$0xff]  ;;  %v413_v55 = vld [vmem:[%s5496_s28 + $0x628] sm:$0xff]  ;;  %v366_v10 = vld [vmem:[%s5496_s28 + $0x4b0] sm:$0xff] }
  0xd7   : > { %v3714_v34 = vadd.f32 %v3713_v23, %v2686_v36  ;;  %v2695_v61 = vmul.f32 %v5527_v16, %v411_v45  ;;  %v3722_v62 = vadd.f32 %v2693_v54, %v2692_v60  ;;  %v2647_v35 = vmul.f32 %v8338_v25, %v363_v53  ;;  %v453_v45 = vld [vmem:[%s5496_s28 + $0x768] sm:$0xff]  ;;  %v367_v23 = vld [vmem:[%s5496_s28 + $0x4b8] sm:$0xff] }
  0xd8   : > { %v3672_v38 = vadd.f32 %v3671_v9, %v2645_v58  ;;  %v2735_v27 = vmul.f32 %v5579_v50, %v451_v12  ;;  %v3763_v11 = vadd.f32 %v3762_v15, %v2733_v24  ;;  %v6127_v36 = vsel %vm1307_vm0, %v375_v63, 0.0  ;;  %v368_v15 = vld [vmem:[%s5496_s28 + $0x4c0] sm:$0xff] }
  0xd9   : > { %v3715_v42 = vadd.f32 %v3714_v34, %v2687_v4  ;;  %v2696_v60 = vmul.f32 %v5535_v21, %v412_v14  ;;  %v3723_v54 = vadd.f32 %v3722_v62, %v2694_v0  ;;  %v2648_v58 = vmul.f32 %v5614_v18, %v364_v43  ;;  %v414_v4 = vld [vmem:[%s5496_s28 + $0x630] sm:$0xff]  ;;  %v369_v62 = vld [vmem:[%s5496_s28 + $0x4c8] sm:$0xff] }
  0xda   : > { %v3673_v53 = vadd.f32 %v3672_v38, %v2646_v13  ;;  %v2736_v24 = vmul.f32 %v5582_v51, %v452_v3  ;;  %v3764_v12 = vadd.f32 %v3763_v11, %v2734_v5  ;;  %v2649_v63 = vmul.f32 %v8341_v48, %v365_v22  ;;  %v454_v34 = vld [vmem:[%s5496_s28 + $0x770] sm:$0xff]  ;;  %v415_v38 = vld [vmem:[%s5496_s28 + $0x638] sm:$0xff] }
  0xdb   : > { %v3716_v9 = vadd.f32 %v3715_v42, %v2688_v41  ;;  %v2697_v14 = vmul.f32 %v5544_v26, %v413_v55  ;;  %v3724_v0 = vadd.f32 %v3723_v54, %v2695_v61  ;;  %v2650_v43 = vmul.f32 %v5623_v28, %v366_v10  ;;  %v370_v11 = vld [vmem:[%s5496_s28 + $0x4d0] sm:$0xff]  ;;  %v455_v42 = vld [vmem:[%s5496_s28 + $0x778] sm:$0xff]  ;;  %v416_v54 = vld [vmem:[%s5496_s28 + $0x640] sm:$0xff] }
  0xdc   : > { %v3674_v13 = vadd.f32 %v3673_v53, %v2647_v35  ;;  %v2737_v3 = vmul.f32 %v5588_v56, %v453_v45  ;;  %v3765_v5 = vadd.f32 %v3764_v12, %v2735_v27  ;;  %v2651_v22 = vmul.f32 %v8344_v49, %v367_v23  ;;  %v371_v61 = vld [vmem:[%s5496_s28 + $0x4d8] sm:$0xff]  ;;  %v372_v53 = vld [vmem:[%s5496_s28 + $0x4e0] sm:$0xff] }
  0xdd   : > { %v3717_v41 = vadd.f32 %v3716_v9, %v2689_v31  ;;  %v2698_v48 = vmul.f32 %v5551_v32, %v414_v4  ;;  %v3725_v55 = vadd.f32 %v3724_v0, %v2696_v60  ;;  %v2652_v10 = vmul.f32 %v5630_v33, %v368_v15  ;;  %v456_v12 = vld [vmem:[%s5496_s28 + $0x780] sm:$0xff]  ;;  %v457_v33 = vld [vmem:[%s5496_s28 + $0x788] sm:$0xff] }
  0xde   : > { %v3675_v35 = vadd.f32 %v3674_v13, %v2648_v58  ;;  %v2738_v45 = vmul.f32 %v5591_v57, %v454_v34  ;;  %v3766_v27 = vadd.f32 %v3765_v5, %v2736_v24  ;;  %v2653_v23 = vmul.f32 %v8346_v37, %v369_v62  ;;  %v8353_v58 = vld [vmem:[#allocation20_spill] sm:$0xff]  ;;  %v417_v24 = vld [vmem:[%s5496_s28 + $0x648] sm:$0xff]  ;;  %v504_v13 = vld [vmem:[%s5496_s28 + $0x900] sm:$0xff] }
  0xdf   : > { %v3718_v31 = vadd.f32 %v3717_v41, %v2690_v19  ;;  %v2699_v60 = vmul.f32 %v5562_v39, %v415_v38  ;;  %v3726_v4 = vadd.f32 %v3725_v55, %v2697_v14  ;;  %v2654_v9 = vmul.f32 %v5641_v44, %v370_v11  ;;  %v505_v19 = vld [vmem:[%s5496_s28 + $0x908] sm:$0xff]  ;;  %v8354_v62 = vld [vmem:[#allocation31_spill] sm:$0xff] }
  0xe0   : > { %v3676_v15 = vadd.f32 %v3675_v35, %v2649_v63  ;;  %v2739_v0 = vmul.f32 %v8353_v58, %v455_v42  ;;  %v3767_v34 = vadd.f32 %v3766_v27, %v2737_v3  ;;  %v373_v41 = vld [vmem:[%s5496_s28 + $0x4e8] sm:$0xff]  ;;  %v6162_v37 = vmul.f32 %v8354_v62, %v371_v61  ;;  %v374_v11 = vld [vmem:[%s5496_s28 + $0x4f0] sm:$0xff] }
  0xe1   : > { %v3719_v5 = vadd.f32 %v3718_v31, %v2691_v29  ;;  %v2700_v14 = vmul.f32 %v5565_v40, %v416_v54  ;;  %v3727_v38 = vadd.f32 %v3726_v4, %v2698_v48  ;;  %v6168_v63 = vmul.f32 %v8347_v20, %v372_v53  ;;  %v418_v29 = vld [vmem:[%s5496_s28 + $0x650] sm:$0xff]  ;;  %v419_v4 = vld [vmem:[%s5496_s28 + $0x658] sm:$0xff] }
  0xe2   : > { %v3677_v3 = vadd.f32 %v3676_v15, %v2650_v43  ;;  %v2740_v42 = vmul.f32 %v8351_v59, %v456_v12  ;;  %v3768_v55 = vadd.f32 %v3767_v34, %v2738_v45  ;;  %v506_v35 = vld [vmem:[%s5496_s28 + $0x910] sm:$0xff]  ;;  %v2701_v27 = vmul.f32 %v5571_v46, %v417_v24  ;;  %v507_v15 = vld [vmem:[%s5496_s28 + $0x918] sm:$0xff] }
  0xe3   : > { %3720 = vadd.xlane.f32.xlu1 %v3719_v5  ;;  %v458_v61 = vld [vmem:[%s5496_s28 + $0x790] sm:$0xff]  ;;  %v3728_v54 = vadd.f32 %v3727_v38, %v2699_v60  ;;  %v2788_v48 = vmul.f32 %v5509_v7, %v504_v13  ;;  %v2789_v31 = vmul.f32 %v5512_v8, %v505_v19  ;;  %v6178_v53 = vmul.f32 %v8348_v52, %v373_v41  ;;  %v459_v60 = vld [vmem:[%s5496_s28 + $0x798] sm:$0xff]  ;;  %v8355_v5 = vld [vmem:[#allocation10_spill] sm:$0xff] }
  0xe4   : > { %v3678_v43 = vadd.f32 %v3677_v3, %v2651_v22  ;;  %v2741_v45 = vmul.f32 %v8352_v2, %v457_v33  ;;  %v3769_v12 = vadd.f32 %v3768_v55, %v2739_v0  ;;  %v6184_v34 = vmul.f32 %v8349_v1, %v374_v11  ;;  %v471_v24 = vld [vmem:[%s5496_s28 + $0x7f8] sm:$0xff]  ;;  %v420_v11 = vld [vmem:[%s5496_s28 + $0x660] sm:$0xff]  ;;  %v461_v1 = vld [vmem:[%s5496_s28 + $0x7a8] sm:$0xff] }
  0xe5   : > { %v2702_v13 = vmul.f32 %v5574_v47, %v418_v29  ;;  %v3729_v19 = vadd.f32 %v3728_v54, %v2700_v14  ;;  %v2790_v41 = vmul.f32 %v8355_v5, %v506_v35  ;;  %v6192_v22 = vmul.f32 %v8350_v17, %v6127_v36  ;;  %v508_v3 = vld [vmem:[%s5496_s28 + $0x920] sm:$0xff]  ;;  %v462_v17 = vld [vmem:[%s5496_s28 + $0x7b0] sm:$0xff] }
  0xe6   : > { %v3679_v33 = vadd.f32 %v3678_v43, %v2652_v10  ;;  %v2742_v0 = vmul.f32 %v5607_v6, %v458_v61  ;;  %v3770_v38 = vadd.f32 %v3769_v12, %v2740_v42  ;;  %v460_v55 = vld [vmem:[%s5496_s28 + $0x7a0] sm:$0xff]  ;;  %v2703_v14 = vmul.f32 %v5579_v50, %v419_v4  ;;  %v421_v43 = vld [vmem:[%s5496_s28 + $0x668] sm:$0xff]  ;;  %v463_v4 = vld [vmem:[%s5496_s28 + $0x7b8] sm:$0xff] }
  0xe7   : > { %v3730_v29 = vadd.f32 %v3729_v19, %v2701_v27  ;;  %v2791_v35 = vmul.f32 %v5527_v16, %v507_v15  ;;  %v3821_v54 = vadd.f32 %v2789_v31, %v2788_v48  ;;  %v6203_v10 = vsel %vm1307_vm0, %v471_v24, 0.0  ;;  %v509_v12 = vld [vmem:[%s5496_s28 + $0x928] sm:$0xff]  ;;  %v8357_v19 = vld [vmem:[#allocation25_spill] sm:$0xff] }
  0xe8   : > { %v3680_v36 = vadd.f32 %v3679_v33, %v2653_v23  ;;  %8356 = vst [vmem:[#allocation36_spill] sm:$0xff] %v6203_v10  ;;  %v2743_v42 = vmul.f32 %v8338_v25, %v459_v60  ;;  %v3771_v61 = vadd.f32 %v3770_v38, %v2741_v45  ;;  %v2704_v27 = vmul.f32 %v5582_v51, %v420_v11  ;;  %v422_v33 = vld [vmem:[%s5496_s28 + $0x670] sm:$0xff]  ;;  %v465_v10 = vld [vmem:[%s5496_s28 + $0x7c8] sm:$0xff] }
  0xe9   : > { %v3731_v15 = vadd.f32 %v3730_v29, %v2702_v13  ;;  %v2792_v23 = vmul.f32 %v5535_v21, %v508_v3  ;;  %v3822_v48 = vadd.f32 %v3821_v54, %v2790_v41  ;;  %v2744_v24 = vmul.f32 %v5614_v18, %v460_v55  ;;  %v510_v38 = vld [vmem:[%s5496_s28 + $0x930] sm:$0xff]  ;;  %v423_v29 = vld [vmem:[%s5496_s28 + $0x678] sm:$0xff] }
  0xea   : > { %v3681_v31 = vadd.f32 %v3680_v36, %v2654_v9  ;;  %v2745_v60 = vmul.f32 %v8357_v19, %v461_v1  ;;  %v3772_v45 = vadd.f32 %v3771_v61, %v2742_v0  ;;  %v2705_v11 = vmul.f32 %v5588_v56, %v421_v43  ;;  %v511_v54 = vld [vmem:[%s5496_s28 + $0x938] sm:$0xff]  ;;  %v466_v36 = vld [vmem:[%s5496_s28 + $0x7d0] sm:$0xff] }
  0xeb   : > { %v3732_v13 = vadd.f32 %v3731_v15, %v2703_v14  ;;  %v2793_v3 = vmul.f32 %v5544_v26, %v509_v12  ;;  %v3823_v41 = vadd.f32 %v3822_v48, %v2791_v35  ;;  %v2746_v55 = vmul.f32 %v5623_v28, %v462_v17  ;;  %v467_v61 = vld [vmem:[%s5496_s28 + $0x7d8] sm:$0xff]  ;;  %v8359_v48 = vld [vmem:[#allocation29_spill] sm:$0xff] }
  0xec   : > { %v3682_v9 = vadd.f32 %v3681_v31, %v6162_v37  ;;  %v2747_v1 = vmul.f32 %v8344_v49, %v463_v4  ;;  %v3773_v0 = vadd.f32 %v3772_v45, %v2743_v42  ;;  %v2706_v14 = vmul.f32 %v5591_v57, %v422_v33  ;;  %v8358_v15 = vld [vmem:[#allocation28_spill] sm:$0xff]  ;;  %v424_v31 = vld [vmem:[%s5496_s28 + $0x680] sm:$0xff]  ;;  %v425_v49 = vld [vmem:[%s5496_s28 + $0x688] sm:$0xff] }
  0xed   : > { %v3733_v43 = vadd.f32 %v3732_v13, %v2704_v27  ;;  %v2794_v35 = vmul.f32 %v5551_v32, %v510_v38  ;;  %v3824_v12 = vadd.f32 %v3823_v41, %v2792_v23  ;;  %v2748_v17 = vmul.f32 %v8358_v15, %v464_v30  ;;  %v512_v45 = vld [vmem:[%s5496_s28 + $0x940] sm:$0xff]  ;;  %v513_v13 = vld [vmem:[%s5496_s28 + $0x948] sm:$0xff] }
  0xee   : > { %v3683_v37 = vadd.f32 %v3682_v9, %v6168_v63  ;;  %v2749_v4 = vmul.f32 %v8359_v48, %v465_v10  ;;  %v3774_v42 = vadd.f32 %v3773_v0, %v2744_v24  ;;  %v2707_v33 = vmul.f32 %v8353_v58, %v423_v29  ;;  %v472_v41 = vld [vmem:[%s5496_s28 + $0x800] sm:$0xff]  ;;  %v473_v9 = vld [vmem:[%s5496_s28 + $0x808] sm:$0xff]  ;;  %v426_v0 = vld [vmem:[%s5496_s28 + $0x690] sm:$0xff] }
  0xef   : > { %v3734_v27 = vadd.f32 %v3733_v43, %v2705_v11  ;;  %v2795_v23 = vmul.f32 %v5562_v39, %v511_v54  ;;  %v3825_v38 = vadd.f32 %v3824_v12, %v2793_v3  ;;  %v2750_v30 = vmul.f32 %v5641_v44, %v466_v36  ;;  %v468_v11 = vld [vmem:[%s5496_s28 + $0x7e0] sm:$0xff] }
  0xf0   : > { %v3684_v63 = vadd.f32 %v3683_v37, %v6178_v53  ;;  %v6241_v10 = vmul.f32 %v8354_v62, %v467_v61  ;;  %v3775_v24 = vadd.f32 %v3774_v42, %v2745_v60  ;;  %v2708_v29 = vmul.f32 %v8351_v59, %v424_v31  ;;  %v514_v60 = vld [vmem:[%s5496_s28 + $0x950] sm:$0xff]  ;;  %v469_v42 = vld [vmem:[%s5496_s28 + $0x7e8] sm:$0xff]  ;;  %v427_v62 = vld [vmem:[%s5496_s28 + $0x698] sm:$0xff] }
  0xf1   : > { %v3735_v3 = vadd.f32 %v3734_v27, %v2706_v14  ;;  %v2796_v54 = vmul.f32 %v5565_v40, %v512_v45  ;;  %v3826_v53 = vadd.f32 %v3825_v38, %v2794_v35  ;;  %v2709_v61 = vmul.f32 %v8352_v2, %v425_v49  ;;  %v474_v37 = vld [vmem:[%s5496_s28 + $0x810] sm:$0xff]  ;;  %v515_v14 = vld [vmem:[%s5496_s28 + $0x958] sm:$0xff] }
  0xf2   : > { %v3685_v36 = vadd.f32 %v3684_v63, %v6184_v34  ;;  %v3776_v43 = vadd.f32 %v3775_v24, %v2746_v55  ;;  %v2797_v12 = vmul.f32 %v5571_v46, %v513_v13  ;;  %v2756_v35 = vmul.f32 %v5509_v7, %v472_v41  ;;  %v475_v38 = vld [vmem:[%s5496_s28 + $0x818] sm:$0xff]  ;;  %v470_v63 = vld [vmem:[%s5496_s28 + $0x7f0] sm:$0xff]  ;;  %v428_v24 = vld [vmem:[%s5496_s28 + $0x6a0] sm:$0xff] }
  0xf3   : > { %v3736_v31 = vadd.f32 %v3735_v3, %v2707_v33  ;;  %v3827_v27 = vadd.f32 %v3826_v53, %v2795_v23  ;;  %v2757_v34 = vmul.f32 %v5512_v8, %v473_v9  ;;  %v2752_v49 = vmul.f32 %v8347_v20, %v468_v11  ;;  %v516_v3 = vld [vmem:[%s5496_s28 + $0x960] sm:$0xff] }
  0xf4   : > { %v3686_v55 = vadd.f32 %v3685_v36, %v6192_v22  ;;  %v3777_v45 = vadd.f32 %v3776_v43, %v2747_v1  ;;  %v2710_v13 = vmul.f32 %v5607_v6, %v426_v0  ;;  %v2798_v23 = vmul.f32 %v5574_v47, %v514_v60  ;;  %v476_v53 = vld [vmem:[%s5496_s28 + $0x820] sm:$0xff]  ;;  %v517_v43 = vld [vmem:[%s5496_s28 + $0x968] sm:$0xff] }
  0xf5   : > { %v3737_v33 = vadd.f32 %v3736_v31, %v2708_v29  ;;  %v3828_v41 = vadd.f32 %v3827_v27, %v2796_v54  ;;  %v2758_v9 = vmul.f32 %v8355_v5, %v474_v37  ;;  %v2753_v22 = vmul.f32 %v8348_v52, %v469_v42  ;;  %v429_v29 = vld [vmem:[%s5496_s28 + $0x6a8] sm:$0xff] }
  0xf6   : > { %3687 = vadd.xlane.f32.xlu0 %v3686_v55  ;;  %v3778_v1 = vadd.f32 %v3777_v45, %v2748_v17  ;;  %v2711_v11 = vmul.f32 %v8338_v25, %v427_v62  ;;  %v2799_v0 = vmul.f32 %v5579_v50, %v515_v14  ;;  %v2759_v54 = vmul.f32 %v5527_v16, %v475_v38  ;;  %v8360_v31 = vld [vmem:[#allocation34_spill] sm:$0xff]  ;;  %v430_v55 = vld [vmem:[%s5496_s28 + $0x6b0] sm:$0xff]  ;;  %v439_v45 = vld [vmem:[%s5496_s28 + $0x6f8] sm:$0xff] }
  0xf7   : > { %v3738_v36 = vadd.f32 %v3737_v33, %v2709_v61  ;;  %v3829_v60 = vadd.f32 %v3828_v41, %v2797_v12  ;;  %v3788_v37 = vadd.f32 %v2757_v34, %v2756_v35  ;;  %v2754_v27 = vmul.f32 %v8360_v31, %v470_v63  ;;  %v477_v14 = vld [vmem:[%s5496_s28 + $0x828] sm:$0xff]  ;;  %v518_v33 = vld [vmem:[%s5496_s28 + $0x970] sm:$0xff]  ;;  %v8361_v34 = vld [vmem:[#allocation36_spill] sm:$0xff] }
  0xf8   : > { %v3779_v42 = vadd.f32 %v3778_v1, %v2749_v4  ;;  %v2712_v17 = vmul.f32 %v5614_v18, %v428_v24  ;;  %v2800_v62 = vmul.f32 %v5582_v51, %v516_v3  ;;  %v2760_v38 = vmul.f32 %v5535_v21, %v476_v53  ;;  %v8362_v63 = vld [vmem:[#allocation35_spill] sm:$0xff]  ;;  %v431_v31 = vld [vmem:[%s5496_s28 + $0x6b8] sm:$0xff] }
  0xf9   : > { %v3739_v61 = vadd.f32 %v3738_v36, %v2710_v13  ;;  %v3830_v12 = vadd.f32 %v3829_v60, %v2798_v23  ;;  %v3789_v35 = vadd.f32 %v3788_v37, %v2758_v9  ;;  %v2755_v41 = vmul.f32 %v8362_v63, %v8361_v34  ;;  %v478_v1 = vld [vmem:[%s5496_s28 + $0x830] sm:$0xff]  ;;  %v432_v13 = vld [vmem:[%s5496_s28 + $0x6c0] sm:$0xff]  ;;  %v519_v23 = vld [vmem:[%s5496_s28 + $0x978] sm:$0xff] }
  0xfa   : > { %v3780_v4 = vadd.f32 %v3779_v42, %v2750_v30  ;;  %v2713_v24 = vmul.f32 %v8357_v19, %v429_v29  ;;  %v2801_v3 = vmul.f32 %v5588_v56, %v517_v43  ;;  %v2761_v9 = vmul.f32 %v5544_v26, %v477_v14  ;;  %v479_v42 = vld [vmem:[%s5496_s28 + $0x838] sm:$0xff]  ;;  %v520_v14 = vld [vmem:[%s5496_s28 + $0x980] sm:$0xff] }
  0xfb   : > { %v3740_v36 = vadd.f32 %v3739_v61, %v2711_v11  ;;  %v3831_v60 = vadd.f32 %v3830_v12, %v2799_v0  ;;  %v3790_v53 = vadd.f32 %v3789_v35, %v2759_v54  ;;  %v6295_v30 = vsel %vm1307_vm0, %v439_v45, 0.0  ;;  %v433_v11 = vld [vmem:[%s5496_s28 + $0x6c8] sm:$0xff]  ;;  %v434_v61 = vld [vmem:[%s5496_s28 + $0x6d0] sm:$0xff]  ;;  %v480_v34 = vld [vmem:[%s5496_s28 + $0x840] sm:$0xff] }
  0xfc   : > { %v3781_v37 = vadd.f32 %v3780_v4, %v6241_v10  ;;  %v2714_v29 = vmul.f32 %v5623_v28, %v430_v55  ;;  %v2802_v43 = vmul.f32 %v5591_v57, %v518_v33  ;;  %v2762_v10 = vmul.f32 %v5551_v32, %v478_v1  ;;  %v8364_v4 = vld [vmem:[#allocation27_spill] sm:$0xff]  ;;  %v481_v28 = vld [vmem:[%s5496_s28 + $0x848] sm:$0xff] }
  0xfd   : > { %v3741_v0 = vadd.f32 %v3740_v36, %v2712_v17  ;;  %v3832_v54 = vadd.f32 %v3831_v60, %v2800_v62  ;;  %v3791_v12 = vadd.f32 %v3790_v53, %v2760_v38  ;;  %v2715_v45 = vmul.f32 %v8364_v4, %v431_v31  ;;  %v521_v17 = vld [vmem:[%s5496_s28 + $0x988] sm:$0xff] }
  0xfe   : > { %v3782_v35 = vadd.f32 %v3781_v37, %v2752_v49  ;;  %v2716_v55 = vmul.f32 %v8358_v15, %v432_v13  ;;  %v2803_v33 = vmul.f32 %v8353_v58, %v519_v23  ;;  %v2763_v62 = vmul.f32 %v5562_v39, %v479_v42  ;;  %v568_v49 = vld [vmem:[%s5496_s28 + $0xb00] sm:$0xff]  ;;  %v569_v60 = vld [vmem:[%s5496_s28 + $0xb08] sm:$0xff]  ;;  %v482_v42 = vld [vmem:[%s5496_s28 + $0x850] sm:$0xff] }
  0xff   : > { %v3742_v57 = vadd.f32 %v3741_v0, %v2713_v24  ;;  %v3833_v36 = vadd.f32 %v3832_v54, %v2801_v3  ;;  %v3792_v38 = vadd.f32 %v3791_v12, %v2761_v9  ;;  %v2717_v31 = vmul.f32 %v8359_v48, %v433_v11  ;;  %v435_v24 = vld [vmem:[%s5496_s28 + $0x6d8] sm:$0xff]  ;;  %v522_v3 = vld [vmem:[%s5496_s28 + $0x990] sm:$0xff]  ;;  %v436_v54 = vld [vmem:[%s5496_s28 + $0x6e0] sm:$0xff] }
 0x100   : > { %v3783_v1 = vadd.f32 %v3782_v35, %v2753_v22  ;;  %v2718_v13 = vmul.f32 %v5641_v44, %v434_v61  ;;  %v2804_v23 = vmul.f32 %v8351_v59, %v520_v14  ;;  %v2764_v9 = vmul.f32 %v5565_v40, %v480_v34  ;;  %v570_v14 = vld [vmem:[%s5496_s28 + $0xb10] sm:$0xff]  ;;  %v483_v35 = vld [vmem:[%s5496_s28 + $0x858] sm:$0xff] }
 0x101   : > { %v3743_v53 = vadd.f32 %v3742_v57, %v2714_v29  ;;  %v3834_v37 = vadd.f32 %v3833_v36, %v2802_v43  ;;  %v3793_v22 = vadd.f32 %v3792_v38, %v2762_v10  ;;  %v2805_v11 = vmul.f32 %v8352_v2, %v521_v17  ;;  %v523_v29 = vld [vmem:[%s5496_s28 + $0x998] sm:$0xff]  ;;  %v437_v38 = vld [vmem:[%s5496_s28 + $0x6e8] sm:$0xff]  ;;  %v8365_v17 = vld [vmem:[#allocation31_spill] sm:$0xff] }
 0x102   : > { %v3784_v0 = vadd.f32 %v3783_v1, %v2754_v27  ;;  %v2765_v61 = vmul.f32 %v5571_v46, %v481_v28  ;;  %v2852_v12 = vmul.f32 %v5509_v7, %v568_v49  ;;  %v571_v34 = vld [vmem:[%s5496_s28 + $0xb18] sm:$0xff]  ;;  %v2853_v27 = vmul.f32 %v5512_v8, %v569_v60 }
 0x103   : > { %v3744_v57 = vadd.f32 %v3743_v53, %v2715_v45  ;;  %v3835_v43 = vadd.f32 %v3834_v37, %v2803_v33  ;;  %v3794_v36 = vadd.f32 %v3793_v22, %v2763_v62  ;;  %v2719_v1 = vmul.f32 %v8365_v17, %v435_v24  ;;  %v524_v45 = vld [vmem:[%s5496_s28 + $0x9a0] sm:$0xff] }
 0x104   : > { %v3785_v10 = vadd.f32 %v3784_v0, %v2755_v41  ;;  %v2806_v28 = vmul.f32 %v5607_v6, %v522_v3  ;;  %v2766_v49 = vmul.f32 %v5574_v47, %v482_v42  ;;  %v484_v33 = vld [vmem:[%s5496_s28 + $0x860] sm:$0xff]  ;;  %v2854_v22 = vmul.f32 %v8355_v5, %v570_v14  ;;  %v438_v41 = vld [vmem:[%s5496_s28 + $0x6f0] sm:$0xff]  ;;  %v573_v14 = vld [vmem:[%s5496_s28 + $0xb28] sm:$0xff] }
 0x105   : > { %v3745_v44 = vadd.f32 %v3744_v57, %v2716_v55  ;;  %v3836_v53 = vadd.f32 %v3835_v43, %v2804_v23  ;;  %v3795_v62 = vadd.f32 %v3794_v36, %v2764_v9  ;;  %v572_v37 = vld [vmem:[%s5496_s28 + $0xb20] sm:$0xff]  ;;  %v2720_v60 = vmul.f32 %v8347_v20, %v436_v54  ;;  %v525_v23 = vld [vmem:[%s5496_s28 + $0x9a8] sm:$0xff] }
 0x106   : > { %3786 = vadd.xlane.f32.xlu1 %v3785_v10  ;;  %v2807_v24 = vmul.f32 %v8338_v25, %v523_v29  ;;  %v2767_v3 = vmul.f32 %v5579_v50, %v483_v35  ;;  %v2855_v55 = vmul.f32 %v5527_v16, %v571_v34  ;;  %v485_v9 = vld [vmem:[%s5496_s28 + $0x868] sm:$0xff]  ;;  %v3887_v43 = vadd.f32 %v2853_v27, %v2852_v12 }
 0x107   : > { %v3746_v42 = vadd.f32 %v3745_v44, %v2717_v31  ;;  %v3837_v0 = vadd.f32 %v3836_v53, %v2805_v11  ;;  %v3796_v57 = vadd.f32 %v3795_v62, %v2765_v61  ;;  %v2721_v36 = vmul.f32 %v8348_v52, %v437_v38  ;;  %v526_v44 = vld [vmem:[%s5496_s28 + $0x9b0] sm:$0xff]  ;;  %v8366_v12 = vld [vmem:[#allocation34_spill] sm:$0xff]  ;;  %v527_v38 = vld [vmem:[%s5496_s28 + $0x9b8] sm:$0xff] }
 0x108   : > { %v2808_v54 = vmul.f32 %v5614_v18, %v524_v45  ;;  %v2768_v29 = vmul.f32 %v5582_v51, %v484_v33  ;;  %v2856_v35 = vmul.f32 %v5535_v21, %v572_v37  ;;  %v486_v11 = vld [vmem:[%s5496_s28 + $0x870] sm:$0xff]  ;;  %v3888_v53 = vadd.f32 %v3887_v43, %v2854_v22  ;;  %v535_v37 = vld [vmem:[%s5496_s28 + $0x9f8] sm:$0xff] }
 0x109   : > { %v3747_v34 = vadd.f32 %v3746_v42, %v2718_v13  ;;  %v3838_v31 = vadd.f32 %v3837_v0, %v2806_v28  ;;  %v3797_v10 = vadd.f32 %v3796_v57, %v2766_v49  ;;  %v574_v61 = vld [vmem:[%s5496_s28 + $0xb30] sm:$0xff]  ;;  %v2722_v27 = vmul.f32 %v8366_v12, %v438_v41  ;;  %v487_v42 = vld [vmem:[%s5496_s28 + $0x878] sm:$0xff]  ;;  %v528_v57 = vld [vmem:[%s5496_s28 + $0x9c0] sm:$0xff] }
 0x10a   : > { %v2809_v45 = vmul.f32 %v8357_v19, %v525_v23  ;;  %v2769_v33 = vmul.f32 %v5588_v56, %v485_v9  ;;  %v2857_v62 = vmul.f32 %v5544_v26, %v573_v14  ;;  %v575_v0 = vld [vmem:[%s5496_s28 + $0xb38] sm:$0xff]  ;;  %v3889_v22 = vadd.f32 %v3888_v53, %v2855_v55  ;;  %v8367_v23 = vld [vmem:[#allocation26_spill] sm:$0xff]  ;;  %v8368_v19 = vld [vmem:[#allocation19_spill] sm:$0xff] }
 0x10b   : > { %v3748_v13 = vadd.f32 %v3747_v34, %v2719_v1  ;;  %v3839_v28 = vadd.f32 %v3838_v31, %v2807_v24  ;;  %v3798_v49 = vadd.f32 %v3797_v10, %v2767_v3  ;;  %v2723_v41 = vmul.f32 %v8362_v63, %v6295_v30  ;;  %v529_v34 = vld [vmem:[%s5496_s28 + $0x9c8] sm:$0xff]  ;;  %v488_v3 = vld [vmem:[%s5496_s28 + $0x880] sm:$0xff] }
 0x10c   : > { %v2810_v43 = vmul.f32 %v8367_v23, %v526_v44  ;;  %v2770_v9 = vmul.f32 %v8368_v19, %v486_v11  ;;  %v2858_v14 = vmul.f32 %v5551_v32, %v574_v61  ;;  %v576_v55 = vld [vmem:[%s5496_s28 + $0xb40] sm:$0xff]  ;;  %v3890_v10 = vadd.f32 %v3889_v22, %v2856_v35  ;;  %v489_v11 = vld [vmem:[%s5496_s28 + $0x888] sm:$0xff] }
 0x10d   : > { %v3749_v1 = vadd.f32 %v3748_v13, %v2720_v60  ;;  %v3840_v24 = vadd.f32 %v3839_v28, %v2808_v54  ;;  %v3799_v31 = vadd.f32 %v3798_v49, %v2768_v29  ;;  %v6371_v30 = vsel %vm1307_vm0, %v535_v37, 0.0  ;;  %v577_v29 = vld [vmem:[%s5496_s28 + $0xb48] sm:$0xff]  ;;  %v536_v49 = vld [vmem:[%s5496_s28 + $0xa00] sm:$0xff]  ;;  %v530_v37 = vld [vmem:[%s5496_s28 + $0x9d0] sm:$0xff] }
 0x10e   : > { %v2811_v44 = vmul.f32 %v8364_v4, %v527_v38  ;;  %v2771_v61 = vmul.f32 %v8353_v58, %v487_v42  ;;  %v2859_v60 = vmul.f32 %v5562_v39, %v575_v0  ;;  %v3891_v35 = vadd.f32 %v3890_v10, %v2857_v62  ;;  %v537_v22 = vld [vmem:[%s5496_s28 + $0xa08] sm:$0xff]  ;;  %v532_v10 = vld [vmem:[%s5496_s28 + $0x9e0] sm:$0xff] }
 0x10f   : > { %v3750_v54 = vadd.f32 %v3749_v1, %v2721_v36  ;;  %v3841_v13 = vadd.f32 %v3840_v24, %v2809_v45  ;;  %v3800_v28 = vadd.f32 %v3799_v31, %v2769_v33  ;;  %v2812_v38 = vmul.f32 %v8358_v15, %v528_v57  ;;  %v531_v45 = vld [vmem:[%s5496_s28 + $0x9d8] sm:$0xff]  ;;  %v490_v1 = vld [vmem:[%s5496_s28 + $0x890] sm:$0xff] }
 0x110   : > { %v2813_v4 = vmul.f32 %v8359_v48, %v529_v34  ;;  %v2772_v42 = vmul.f32 %v8351_v59, %v488_v3  ;;  %v2860_v0 = vmul.f32 %v5565_v40, %v576_v55  ;;  %v578_v24 = vld [vmem:[%s5496_s28 + $0xb50] sm:$0xff]  ;;  %v3892_v31 = vadd.f32 %v3891_v35, %v2858_v14  ;;  %v533_v35 = vld [vmem:[%s5496_s28 + $0x9e8] sm:$0xff] }
 0x111   : > { %v3751_v36 = vadd.f32 %v3750_v54, %v2722_v27  ;;  %v3842_v33 = vadd.f32 %v3841_v13, %v2810_v43  ;;  %v3801_v62 = vadd.f32 %v3800_v28, %v2770_v9  ;;  %v2773_v57 = vmul.f32 %v8352_v2, %v489_v11  ;;  %v538_v48 = vld [vmem:[%s5496_s28 + $0xa10] sm:$0xff]  ;;  %v491_v54 = vld [vmem:[%s5496_s28 + $0x898] sm:$0xff]  ;;  %v8370_v11 = vld [vmem:[#allocation30_spill] sm:$0xff] }
 0x112   : > { %v2861_v34 = vmul.f32 %v5571_v46, %v577_v29  ;;  %v2820_v3 = vmul.f32 %v5509_v7, %v536_v49  ;;  %v2821_v27 = vmul.f32 %v5512_v8, %v537_v22  ;;  %v579_v13 = vld [vmem:[%s5496_s28 + $0xb58] sm:$0xff]  ;;  %v3893_v14 = vadd.f32 %v3892_v31, %v2859_v60  ;;  %v540_v60 = vld [vmem:[%s5496_s28 + $0xa20] sm:$0xff]  ;;  %v534_v31 = vld [vmem:[%s5496_s28 + $0x9f0] sm:$0xff] }
 0x113   : > { %v3752_v55 = vadd.f32 %v3751_v36, %v2723_v41  ;;  %v3843_v43 = vadd.f32 %v3842_v33, %v2811_v44  ;;  %v3802_v9 = vadd.f32 %v3801_v62, %v2771_v61  ;;  %v539_v28 = vld [vmem:[%s5496_s28 + $0xa18] sm:$0xff]  ;;  %v2814_v2 = vmul.f32 %v8370_v11, %v530_v37  ;;  %v492_v44 = vld [vmem:[%s5496_s28 + $0x8a0] sm:$0xff] }
 0x114   : > { %v2815_v29 = vmul.f32 %v8365_v17, %v531_v45  ;;  %v2774_v49 = vmul.f32 %v5607_v6, %v490_v1  ;;  %v2862_v22 = vmul.f32 %v5574_v47, %v578_v24  ;;  %v580_v36 = vld [vmem:[%s5496_s28 + $0xb60] sm:$0xff]  ;;  %v3894_v33 = vadd.f32 %v3893_v14, %v2860_v0 }
 0x115   : > { %3753 = vadd.xlane.f32.xlu0 %v3752_v55  ;;  %v3844_v41 = vadd.f32 %v3843_v43, %v2812_v38  ;;  %v3803_v61 = vadd.f32 %v3802_v9, %v2772_v42  ;;  %v2822_v62 = vmul.f32 %v8355_v5, %v538_v48  ;;  %v2816_v37 = vmul.f32 %v8347_v20, %v532_v10  ;;  %v493_v55 = vld [vmem:[%s5496_s28 + $0x8a8] sm:$0xff] }
 0x116   : > { %v2775_v45 = vmul.f32 %v8338_v25, %v491_v54  ;;  %v2863_v1 = vmul.f32 %v5579_v50, %v579_v13  ;;  %v2823_v24 = vmul.f32 %v5527_v16, %v539_v28  ;;  %v581_v43 = vld [vmem:[%s5496_s28 + $0xb68] sm:$0xff]  ;;  %v3895_v0 = vadd.f32 %v3894_v33, %v2861_v34  ;;  %v542_v34 = vld [vmem:[%s5496_s28 + $0xa30] sm:$0xff] }
 0x117   : > { %v3845_v38 = vadd.f32 %v3844_v41, %v2813_v4  ;;  %v3804_v42 = vadd.f32 %v3803_v61, %v2773_v57  ;;  %v541_v9 = vld [vmem:[%s5496_s28 + $0xa28] sm:$0xff]  ;;  %v3854_v48 = vadd.f32 %v2821_v27, %v2820_v3  ;;  %v2817_v14 = vmul.f32 %v8348_v52, %v533_v35  ;;  %v494_v4 = vld [vmem:[%s5496_s28 + $0x8b0] sm:$0xff]  ;;  %v495_v27 = vld [vmem:[%s5496_s28 + $0x8b8] sm:$0xff] }
 0x118   : > { %v2776_v10 = vmul.f32 %v5614_v18, %v492_v44  ;;  %v2864_v54 = vmul.f32 %v5582_v51, %v580_v36  ;;  %v2824_v13 = vmul.f32 %v5535_v21, %v540_v60  ;;  %v582_v57 = vld [vmem:[%s5496_s28 + $0xb70] sm:$0xff]  ;;  %v3896_v61 = vadd.f32 %v3895_v0, %v2862_v22  ;;  %v8371_v35 = vld [vmem:[#allocation25_spill] sm:$0xff]  ;;  %v543_v0 = vld [vmem:[%s5496_s28 + $0xa38] sm:$0xff] }
 0x119   : > { %v3846_v28 = vadd.f32 %v3845_v38, %v2814_v2  ;;  %v3805_v41 = vadd.f32 %v3804_v42, %v2774_v49  ;;  %v3855_v33 = vadd.f32 %v3854_v48, %v2822_v62  ;;  %v2818_v3 = vmul.f32 %v8366_v12, %v534_v31  ;;  %v503_v38 = vld [vmem:[%s5496_s28 + $0x8f8] sm:$0xff]  ;;  %v496_v48 = vld [vmem:[%s5496_s28 + $0x8c0] sm:$0xff] }
 0x11a   : > { %v2777_v44 = vmul.f32 %v8371_v35, %v493_v55  ;;  %v2865_v36 = vmul.f32 %v5588_v56, %v581_v43  ;;  %v2825_v60 = vmul.f32 %v5544_v26, %v541_v9  ;;  %v583_v42 = vld [vmem:[%s5496_s28 + $0xb78] sm:$0xff]  ;;  %v3897_v22 = vadd.f32 %v3896_v61, %v2863_v1  ;;  %v584_v1 = vld [vmem:[%s5496_s28 + $0xb80] sm:$0xff] }
 0x11b   : > { %v3847_v2 = vadd.f32 %v3846_v28, %v2815_v29  ;;  %v3806_v49 = vadd.f32 %v3805_v41, %v2775_v45  ;;  %v3856_v62 = vadd.f32 %v3855_v33, %v2823_v24  ;;  %v2819_v31 = vmul.f32 %v8362_v63, %v6371_v30  ;;  %v497_v28 = vld [vmem:[%s5496_s28 + $0x8c8] sm:$0xff]  ;;  %v544_v24 = vld [vmem:[%s5496_s28 + $0xa40] sm:$0xff] }
 0x11c   : > { %v2778_v55 = vmul.f32 %v8367_v23, %v494_v4  ;;  %v2866_v43 = vmul.f32 %v8368_v19, %v582_v57  ;;  %v2826_v9 = vmul.f32 %v5551_v32, %v542_v34  ;;  %v3898_v41 = vadd.f32 %v3897_v22, %v2864_v54  ;;  %v8372_v4 = vld [vmem:[#allocation27_spill] sm:$0xff]  ;;  %v585_v57 = vld [vmem:[%s5496_s28 + $0xb88] sm:$0xff]  ;;  %v632_v22 = vld [vmem:[%s5496_s28 + $0xd00] sm:$0xff] }
 0x11d   : > { %v3848_v29 = vadd.f32 %v3847_v2, %v2816_v37  ;;  %v3807_v45 = vadd.f32 %v3806_v49, %v2776_v10  ;;  %v3857_v61 = vadd.f32 %v3856_v62, %v2824_v13  ;;  %v6440_v30 = vsel %vm1307_vm0, %v503_v38, 0.0  ;;  %v545_v54 = vld [vmem:[%s5496_s28 + $0xa48] sm:$0xff]  ;;  %v498_v38 = vld [vmem:[%s5496_s28 + $0x8d0] sm:$0xff] }
 0x11e   : > { %v2779_v33 = vmul.f32 %v8372_v4, %v495_v27  ;;  %v2867_v34 = vmul.f32 %v8353_v58, %v583_v42  ;;  %v2827_v37 = vmul.f32 %v5562_v39, %v543_v0  ;;  %v3899_v49 = vadd.f32 %v3898_v41, %v2865_v36  ;;  %v633_v62 = vld [vmem:[%s5496_s28 + $0xd08] sm:$0xff]  ;;  %v8373_v4 = vld [vmem:[#allocation29_spill] sm:$0xff] }
 0x11f   : > { %v3849_v10 = vadd.f32 %v3848_v29, %v2817_v14  ;;  %v3808_v2 = vadd.f32 %v3807_v45, %v2777_v44  ;;  %v3858_v13 = vadd.f32 %v3857_v61, %v2825_v60  ;;  %v2780_v27 = vmul.f32 %v8358_v15, %v496_v48  ;;  %v499_v44 = vld [vmem:[%s5496_s28 + $0x8d8] sm:$0xff]  ;;  %v586_v29 = vld [vmem:[%s5496_s28 + $0xb90] sm:$0xff]  ;;  %v500_v61 = vld [vmem:[%s5496_s28 + $0x8e0] sm:$0xff] }
 0x120   : > { %v2781_v53 = vmul.f32 %v8373_v4, %v497_v28  ;;  %v2868_v42 = vmul.f32 %v8351_v59, %v584_v1  ;;  %v2828_v0 = vmul.f32 %v5565_v40, %v544_v24  ;;  %v3900_v60 = vadd.f32 %v3899_v49, %v2866_v43  ;;  %v546_v45 = vld [vmem:[%s5496_s28 + $0xa50] sm:$0xff]  ;;  %v8374_v39 = vld [vmem:[#allocation22_spill] sm:$0xff]  ;;  %v635_v49 = vld [vmem:[%s5496_s28 + $0xd18] sm:$0xff] }
 0x121   : > { %v3850_v14 = vadd.f32 %v3849_v10, %v2818_v3  ;;  %v3809_v36 = vadd.f32 %v3808_v2, %v2778_v55  ;;  %v3859_v41 = vadd.f32 %v3858_v13, %v2826_v9  ;;  %v2869_v48 = vmul.f32 %v8374_v39, %v585_v57  ;;  %v634_v4 = vld [vmem:[%s5496_s28 + $0xd10] sm:$0xff]  ;;  %v587_v10 = vld [vmem:[%s5496_s28 + $0xb98] sm:$0xff]  ;;  %v501_v13 = vld [vmem:[%s5496_s28 + $0x8e8] sm:$0xff] }
 0x122   : > { %v2829_v28 = vmul.f32 %v5571_v46, %v545_v54  ;;  %v2916_v1 = vmul.f32 %v5509_v7, %v632_v22  ;;  %v2917_v3 = vmul.f32 %v5512_v8, %v633_v62  ;;  %v3901_v43 = vadd.f32 %v3900_v60, %v2867_v34  ;;  %v547_v2 = vld [vmem:[%s5496_s28 + $0xa58] sm:$0xff] }
 0x123   : > { %v3851_v24 = vadd.f32 %v3850_v14, %v2819_v31  ;;  %v3810_v55 = vadd.f32 %v3809_v36, %v2779_v33  ;;  %v3860_v9 = vadd.f32 %v3859_v41, %v2827_v37  ;;  %v2782_v57 = vmul.f32 %v8370_v11, %v498_v38  ;;  %v588_v33 = vld [vmem:[%s5496_s28 + $0xba0] sm:$0xff]  ;;  %v502_v41 = vld [vmem:[%s5496_s28 + $0x8f0] sm:$0xff] }
 0x124   : > { %v2783_v54 = vmul.f32 %v8365_v17, %v499_v44  ;;  %v2870_v22 = vmul.f32 %v5607_v6, %v586_v29  ;;  %v2830_v62 = vmul.f32 %v5574_v47, %v546_v45  ;;  %v3902_v34 = vadd.f32 %v3901_v43, %v2868_v42  ;;  %v548_v14 = vld [vmem:[%s5496_s28 + $0xa60] sm:$0xff]  ;;  %v637_v43 = vld [vmem:[%s5496_s28 + $0xd28] sm:$0xff] }
 0x125   : > { %3852 = vadd.xlane.f32.xlu1 %v3851_v24  ;;  %v3811_v31 = vadd.f32 %v3810_v55, %v2780_v27  ;;  %v3861_v36 = vadd.f32 %v3860_v9, %v2828_v0  ;;  %v636_v37 = vld [vmem:[%s5496_s28 + $0xd20] sm:$0xff]  ;;  %v2918_v60 = vmul.f32 %v8355_v5, %v634_v4  ;;  %v2784_v38 = vmul.f32 %v8347_v20, %v500_v61  ;;  %v589_v24 = vld [vmem:[%s5496_s28 + $0xba8] sm:$0xff] }
 0x126   : > { %v2871_v44 = vmul.f32 %v8338_v25, %v587_v10  ;;  %v2831_v29 = vmul.f32 %v5579_v50, %v547_v2  ;;  %v2919_v45 = vmul.f32 %v5527_v16, %v635_v49  ;;  %v3903_v42 = vadd.f32 %v3902_v34, %v2869_v48  ;;  %v549_v55 = vld [vmem:[%s5496_s28 + $0xa68] sm:$0xff]  ;;  %v550_v48 = vld [vmem:[%s5496_s28 + $0xa70] sm:$0xff] }
 0x127   : > { %v3812_v27 = vadd.f32 %v3811_v31, %v2781_v53  ;;  %v3862_v0 = vadd.f32 %v3861_v36, %v2829_v28  ;;  %v3953_v4 = vadd.f32 %v2917_v3, %v2916_v1  ;;  %v2785_v9 = vmul.f32 %v8348_v52, %v501_v13  ;;  %v590_v53 = vld [vmem:[%s5496_s28 + $0xbb0] sm:$0xff]  ;;  %v591_v3 = vld [vmem:[%s5496_s28 + $0xbb8] sm:$0xff] }
 0x128   : > { %v2872_v61 = vmul.f32 %v5614_v18, %v588_v33  ;;  %v2832_v10 = vmul.f32 %v5582_v51, %v548_v14  ;;  %v2920_v2 = vmul.f32 %v5535_v21, %v636_v37  ;;  %v3904_v31 = vadd.f32 %v3903_v42, %v2870_v22  ;;  %v638_v28 = vld [vmem:[%s5496_s28 + $0xd30] sm:$0xff]  ;;  %v599_v37 = vld [vmem:[%s5496_s28 + $0xbf8] sm:$0xff] }
 0x129   : > { %v3813_v49 = vadd.f32 %v3812_v27, %v2782_v57  ;;  %v3863_v34 = vadd.f32 %v3862_v0, %v2830_v62  ;;  %v3954_v36 = vadd.f32 %v3953_v4, %v2918_v60  ;;  %v2786_v1 = vmul.f32 %v8366_v12, %v502_v41  ;;  %v551_v27 = vld [vmem:[%s5496_s28 + $0xa78] sm:$0xff]  ;;  %v592_v0 = vld [vmem:[%s5496_s28 + $0xbc0] sm:$0xff]  ;;  %v593_v4 = vld [vmem:[%s5496_s28 + $0xbc8] sm:$0xff] }
 0x12a   : > { %v2873_v13 = vmul.f32 %v8371_v35, %v589_v24  ;;  %v2833_v33 = vmul.f32 %v5588_v56, %v549_v55  ;;  %v2921_v14 = vmul.f32 %v5544_v26, %v637_v43  ;;  %v3905_v22 = vadd.f32 %v3904_v31, %v2871_v44  ;;  %v639_v42 = vld [vmem:[%s5496_s28 + $0xd38] sm:$0xff] }
 0x12b   : > { %v3814_v57 = vadd.f32 %v3813_v49, %v2783_v54  ;;  %v3864_v62 = vadd.f32 %v3863_v34, %v2831_v29  ;;  %v3955_v60 = vadd.f32 %v3954_v36, %v2919_v45  ;;  %v2787_v41 = vmul.f32 %v8362_v63, %v6440_v30  ;;  %v552_v29 = vld [vmem:[%s5496_s28 + $0xa80] sm:$0xff] }
 0x12c   : > { %v2874_v24 = vmul.f32 %v8367_v23, %v590_v53  ;;  %v2834_v55 = vmul.f32 %v8368_v19, %v550_v48  ;;  %v2922_v43 = vmul.f32 %v5551_v32, %v638_v28  ;;  %v3906_v44 = vadd.f32 %v3905_v22, %v2872_v61  ;;  %v640_v45 = vld [vmem:[%s5496_s28 + $0xd40] sm:$0xff]  ;;  %v8376_v53 = vld [vmem:[#allocation27_spill] sm:$0xff]  ;;  %v553_v48 = vld [vmem:[%s5496_s28 + $0xa88] sm:$0xff] }
 0x12d   : > { %v3815_v54 = vadd.f32 %v3814_v57, %v2784_v38  ;;  %v3865_v49 = vadd.f32 %v3864_v62, %v2832_v10  ;;  %v3956_v31 = vadd.f32 %v3955_v60, %v2920_v2  ;;  %v6509_v30 = vsel %vm1307_vm0, %v599_v37, 0.0  ;;  %v8377_v38 = vld [vmem:[#allocation14_spill] sm:$0xff]  ;;  %v600_v62 = vld [vmem:[%s5496_s28 + $0xc00] sm:$0xff]  ;;  %v594_v37 = vld [vmem:[%s5496_s28 + $0xbd0] sm:$0xff] }
 0x12e   : > { %v2875_v36 = vmul.f32 %v8376_v53, %v591_v3  ;;  %v2835_v28 = vmul.f32 %v8353_v58, %v551_v27  ;;  %v2923_v57 = vmul.f32 %v8377_v38, %v639_v42  ;;  %v3907_v22 = vadd.f32 %v3906_v44, %v2873_v13  ;;  %v641_v10 = vld [vmem:[%s5496_s28 + $0xd48] sm:$0xff]  ;;  %v8378_v53 = vld [vmem:[#allocation29_spill] sm:$0xff]  ;;  %v595_v13 = vld [vmem:[%s5496_s28 + $0xbd8] sm:$0xff] }
 0x12f   : > { %v3816_v61 = vadd.f32 %v3815_v54, %v2785_v9  ;;  %v3866_v32 = vadd.f32 %v3865_v49, %v2833_v33  ;;  %v3957_v2 = vadd.f32 %v3956_v31, %v2921_v14  ;;  %v601_v60 = vld [vmem:[%s5496_s28 + $0xc08] sm:$0xff]  ;;  %v2876_v3 = vmul.f32 %v8358_v15, %v592_v0  ;;  %v554_v54 = vld [vmem:[%s5496_s28 + $0xa90] sm:$0xff]  ;;  %v596_v31 = vld [vmem:[%s5496_s28 + $0xbe0] sm:$0xff] }
 0x130   : > { %v2877_v34 = vmul.f32 %v8378_v53, %v593_v4  ;;  %v2836_v27 = vmul.f32 %v8351_v59, %v552_v29  ;;  %v2924_v42 = vmul.f32 %v5565_v40, %v640_v45  ;;  %v3908_v33 = vadd.f32 %v3907_v22, %v2874_v24  ;;  %v642_v44 = vld [vmem:[%s5496_s28 + $0xd50] sm:$0xff]  ;;  %v603_v22 = vld [vmem:[%s5496_s28 + $0xc18] sm:$0xff] }
 0x131   : > { %v3817_v9 = vadd.f32 %v3816_v61, %v2786_v1  ;;  %v3867_v14 = vadd.f32 %v3866_v32, %v2834_v55  ;;  %v3958_v49 = vadd.f32 %v3957_v2, %v2922_v43  ;;  %v2837_v0 = vmul.f32 %v8374_v39, %v553_v48  ;;  %v602_v53 = vld [vmem:[%s5496_s28 + $0xc10] sm:$0xff]  ;;  %v555_v61 = vld [vmem:[%s5496_s28 + $0xa98] sm:$0xff]  ;;  %v597_v2 = vld [vmem:[%s5496_s28 + $0xbe8] sm:$0xff] }
 0x132   : > { %v2925_v4 = vmul.f32 %v5571_v46, %v641_v10  ;;  %v2884_v29 = vmul.f32 %v5509_v7, %v600_v62  ;;  %v2885_v1 = vmul.f32 %v5512_v8, %v601_v60  ;;  %v3909_v24 = vadd.f32 %v3908_v33, %v2875_v36  ;;  %v643_v55 = vld [vmem:[%s5496_s28 + $0xd58] sm:$0xff]  ;;  %v556_v36 = vld [vmem:[%s5496_s28 + $0xaa0] sm:$0xff] }
 0x133   : > { %v3818_v45 = vadd.f32 %v3817_v9, %v2787_v41  ;;  %v3868_v32 = vadd.f32 %v3867_v14, %v2835_v28  ;;  %v3959_v43 = vadd.f32 %v3958_v49, %v2923_v57  ;;  %v2878_v48 = vmul.f32 %v8370_v11, %v594_v37  ;;  %v644_v9 = vld [vmem:[%s5496_s28 + $0xd60] sm:$0xff]  ;;  %v598_v49 = vld [vmem:[%s5496_s28 + $0xbf0] sm:$0xff] }
 0x134   : > { %v2879_v10 = vmul.f32 %v8365_v17, %v595_v13  ;;  %v2838_v62 = vmul.f32 %v5607_v6, %v554_v54  ;;  %v2926_v60 = vmul.f32 %v5574_v47, %v642_v44  ;;  %v3910_v41 = vadd.f32 %v3909_v24, %v2876_v3  ;;  %v604_v57 = vld [vmem:[%s5496_s28 + $0xc20] sm:$0xff]  ;;  %v645_v24 = vld [vmem:[%s5496_s28 + $0xd68] sm:$0xff] }
 0x135   : > { %3819 = vadd.xlane.f32.xlu0 %v3818_v45  ;;  %v3869_v28 = vadd.f32 %v3868_v32, %v2836_v27  ;;  %v3960_v33 = vadd.f32 %v3959_v43, %v2924_v42  ;;  %v2886_v14 = vmul.f32 %v8355_v5, %v602_v53  ;;  %v2880_v37 = vmul.f32 %v8347_v20, %v596_v31  ;;  %v557_v45 = vld [vmem:[%s5496_s28 + $0xaa8] sm:$0xff] }
 0x136   : > { %v2839_v13 = vmul.f32 %v8338_v25, %v555_v61  ;;  %v2927_v54 = vmul.f32 %v5579_v50, %v643_v55  ;;  %v2887_v44 = vmul.f32 %v5527_v16, %v603_v22  ;;  %v3911_v3 = vadd.f32 %v3910_v41, %v2877_v34  ;;  %v605_v32 = vld [vmem:[%s5496_s28 + $0xc28] sm:$0xff]  ;;  %v558_v34 = vld [vmem:[%s5496_s28 + $0xab0] sm:$0xff] }
 0x137   : > { %v3870_v27 = vadd.f32 %v3869_v28, %v2837_v0  ;;  %v3961_v42 = vadd.f32 %v3960_v33, %v2925_v4  ;;  %v3920_v53 = vadd.f32 %v2885_v1, %v2884_v29  ;;  %v2881_v43 = vmul.f32 %v8348_v52, %v597_v2  ;;  %v646_v0 = vld [vmem:[%s5496_s28 + $0xd70] sm:$0xff]  ;;  %v559_v1 = vld [vmem:[%s5496_s28 + $0xab8] sm:$0xff] }
 0x138   : > { %v2840_v31 = vmul.f32 %v5614_v18, %v556_v36  ;;  %v2928_v61 = vmul.f32 %v5582_v51, %v644_v9  ;;  %v2888_v55 = vmul.f32 %v5535_v21, %v604_v57  ;;  %v3912_v22 = vadd.f32 %v3911_v3, %v2878_v48  ;;  %v606_v4 = vld [vmem:[%s5496_s28 + $0xc30] sm:$0xff]  ;;  %v567_v57 = vld [vmem:[%s5496_s28 + $0xaf8] sm:$0xff] }
 0x139   : > { %v3871_v41 = vadd.f32 %v3870_v27, %v2838_v62  ;;  %v3962_v28 = vadd.f32 %v3961_v42, %v2926_v60  ;;  %v3921_v33 = vadd.f32 %v3920_v53, %v2886_v14  ;;  %v2882_v29 = vmul.f32 %v8366_v12, %v598_v49  ;;  %v647_v3 = vld [vmem:[%s5496_s28 + $0xd78] sm:$0xff]  ;;  %v560_v42 = vld [vmem:[%s5496_s28 + $0xac0] sm:$0xff] }
 0x13a   : > { %v2841_v2 = vmul.f32 %v8371_v35, %v557_v45  ;;  %v2929_v36 = vmul.f32 %v5588_v56, %v645_v24  ;;  %v2889_v9 = vmul.f32 %v5544_v26, %v605_v32  ;;  %v3913_v48 = vadd.f32 %v3912_v22, %v2879_v10  ;;  %v607_v27 = vld [vmem:[%s5496_s28 + $0xc38] sm:$0xff]  ;;  %v8379_v53 = vld [vmem:[#allocation13_spill] sm:$0xff]  ;;  %v561_v22 = vld [vmem:[%s5496_s28 + $0xac8] sm:$0xff] }
 0x13b   : > { %v3872_v62 = vadd.f32 %v3871_v41, %v2839_v13  ;;  %v3963_v60 = vadd.f32 %v3962_v28, %v2927_v54  ;;  %v3922_v14 = vadd.f32 %v3921_v33, %v2887_v44  ;;  %v2883_v49 = vmul.f32 %v8362_v63, %v6509_v30  ;;  %v648_v54 = vld [vmem:[%s5496_s28 + $0xd80] sm:$0xff] }
 0x13c   : > { %v2842_v45 = vmul.f32 %v8367_v23, %v558_v34  ;;  %v2930_v24 = vmul.f32 %v8368_v19, %v646_v0  ;;  %v2890_v32 = vmul.f32 %v8379_v53, %v606_v4  ;;  %v3914_v10 = vadd.f32 %v3913_v48, %v2880_v37  ;;  %v608_v44 = vld [vmem:[%s5496_s28 + $0xc40] sm:$0xff]  ;;  %v8381_v34 = vld [vmem:[#allocation27_spill] sm:$0xff]  ;;  %v649_v0 = vld [vmem:[%s5496_s28 + $0xd88] sm:$0xff] }
 0x13d   : > { %v3873_v13 = vadd.f32 %v3872_v62, %v2840_v31  ;;  %v3964_v41 = vadd.f32 %v3963_v60, %v2928_v61  ;;  %v3923_v28 = vadd.f32 %v3922_v14, %v2888_v55  ;;  %v6578_v30 = vsel %vm1307_vm0, %v567_v57, 0.0  ;;  %v609_v61 = vld [vmem:[%s5496_s28 + $0xc48] sm:$0xff]  ;;  %v696_v60 = vld [vmem:[%s5496_s28 + $0xf00] sm:$0xff]  ;;  %v562_v57 = vld [vmem:[%s5496_s28 + $0xad0] sm:$0xff] }
 0x13e   : > { %v2843_v23 = vmul.f32 %v8381_v34, %v559_v1  ;;  %v2931_v4 = vmul.f32 %v8353_v58, %v647_v3  ;;  %v2891_v37 = vmul.f32 %v8377_v38, %v607_v27  ;;  %v3915_v31 = vadd.f32 %v3914_v10, %v2881_v43  ;;  %v697_v14 = vld [vmem:[%s5496_s28 + $0xf08] sm:$0xff]  ;;  %v8382_v34 = vld [vmem:[#allocation29_spill] sm:$0xff]  ;;  %v650_v10 = vld [vmem:[%s5496_s28 + $0xd90] sm:$0xff] }
 0x13f   : > { %v3874_v48 = vadd.f32 %v3873_v13, %v2841_v2  ;;  %v3965_v62 = vadd.f32 %v3964_v41, %v2929_v36  ;;  %v3924_v55 = vadd.f32 %v3923_v28, %v2889_v9  ;;  %v2844_v1 = vmul.f32 %v8358_v15, %v560_v42  ;;  %v563_v2 = vld [vmem:[%s5496_s28 + $0xad8] sm:$0xff]  ;;  %v610_v13 = vld [vmem:[%s5496_s28 + $0xc50] sm:$0xff]  ;;  %v564_v28 = vld [vmem:[%s5496_s28 + $0xae0] sm:$0xff] }
 0x140   : > { %v2845_v33 = vmul.f32 %v8382_v34, %v561_v22  ;;  %v2932_v3 = vmul.f32 %v8351_v59, %v648_v54  ;;  %v2892_v27 = vmul.f32 %v5565_v40, %v608_v44  ;;  %v3916_v43 = vadd.f32 %v3915_v31, %v2882_v29  ;;  %v698_v34 = vld [vmem:[%s5496_s28 + $0xf10] sm:$0xff]  ;;  %v651_v31 = vld [vmem:[%s5496_s28 + $0xd98] sm:$0xff] }
 0x141   : > { %v3875_v36 = vadd.f32 %v3874_v48, %v2842_v45  ;;  %v3966_v9 = vadd.f32 %v3965_v62, %v2930_v24  ;;  %v3925_v41 = vadd.f32 %v3924_v55, %v2890_v32  ;;  %v2933_v42 = vmul.f32 %v8374_v39, %v649_v0  ;;  %v611_v48 = vld [vmem:[%s5496_s28 + $0xc58] sm:$0xff]  ;;  %v565_v55 = vld [vmem:[%s5496_s28 + $0xae8] sm:$0xff] }
 0x142   : > { %v2893_v22 = vmul.f32 %v5571_v46, %v609_v61  ;;  %v2980_v54 = vmul.f32 %v5509_v7, %v696_v60  ;;  %v2981_v29 = vmul.f32 %v5512_v8, %v697_v14  ;;  %v3917_v44 = vadd.f32 %v3916_v43, %v2883_v49  ;;  %v699_v62 = vld [vmem:[%s5496_s28 + $0xf18] sm:$0xff]  ;;  %v652_v49 = vld [vmem:[%s5496_s28 + $0xda0] sm:$0xff] }
 0x143   : > { %v3876_v45 = vadd.f32 %v3875_v36, %v2843_v23  ;;  %v3967_v24 = vadd.f32 %v3966_v9, %v2931_v4  ;;  %v3926_v32 = vadd.f32 %v3925_v41, %v2891_v37  ;;  %v2846_v0 = vmul.f32 %v8370_v11, %v562_v57  ;;  %v612_v43 = vld [vmem:[%s5496_s28 + $0xc60] sm:$0xff]  ;;  %v566_v41 = vld [vmem:[%s5496_s28 + $0xaf0] sm:$0xff] }
 0x144   : > { %v2847_v61 = vmul.f32 %v8365_v17, %v563_v2  ;;  %v2934_v60 = vmul.f32 %v5607_v6, %v650_v10  ;;  %v2894_v14 = vmul.f32 %v5574_v47, %v610_v13  ;;  %3918 = vadd.xlane.f32.xlu1 %v3917_v44  ;;  %v700_v37 = vld [vmem:[%s5496_s28 + $0xf20] sm:$0xff]  ;;  %v2982_v9 = vmul.f32 %v8355_v5, %v698_v34  ;;  %v653_v44 = vld [vmem:[%s5496_s28 + $0xda8] sm:$0xff] }
 0x145   : > { %v3877_v23 = vadd.f32 %v3876_v45, %v2844_v1  ;;  %v3968_v4 = vadd.f32 %v3967_v24, %v2932_v3  ;;  %v3927_v36 = vadd.f32 %v3926_v32, %v2892_v27  ;;  %v2848_v57 = vmul.f32 %v8347_v20, %v564_v28  ;;  %v613_v45 = vld [vmem:[%s5496_s28 + $0xc68] sm:$0xff] }
 0x146   : > { %v2935_v2 = vmul.f32 %v8338_v25, %v651_v31  ;;  %v2895_v10 = vmul.f32 %v5579_v50, %v611_v48  ;;  %v2983_v13 = vmul.f32 %v5527_v16, %v699_v62  ;;  %v701_v24 = vld [vmem:[%s5496_s28 + $0xf28] sm:$0xff]  ;;  %v4019_v34 = vadd.f32 %v2981_v29, %v2980_v54  ;;  %v655_v29 = vld [vmem:[%s5496_s28 + $0xdb8] sm:$0xff] }
 0x147   : > { %v3878_v1 = vadd.f32 %v3877_v23, %v2845_v33  ;;  %v3969_v3 = vadd.f32 %v3968_v4, %v2933_v42  ;;  %v3928_v27 = vadd.f32 %v3927_v36, %v2893_v22  ;;  %v2849_v32 = vmul.f32 %v8348_v52, %v565_v55  ;;  %v654_v33 = vld [vmem:[%s5496_s28 + $0xdb0] sm:$0xff] }
 0x148   : > { %v2936_v28 = vmul.f32 %v5614_v18, %v652_v49  ;;  %v2896_v31 = vmul.f32 %v5582_v51, %v612_v43  ;;  %v2984_v48 = vmul.f32 %v5535_v21, %v700_v37  ;;  %v614_v42 = vld [vmem:[%s5496_s28 + $0xc70] sm:$0xff]  ;;  %v4020_v36 = vadd.f32 %v4019_v34, %v2982_v9  ;;  %v663_v37 = vld [vmem:[%s5496_s28 + $0xdf8] sm:$0xff] }
 0x149   : > { %v3879_v62 = vadd.f32 %v3878_v1, %v2846_v0  ;;  %v3970_v23 = vadd.f32 %v3969_v3, %v2934_v60  ;;  %v3929_v4 = vadd.f32 %v3928_v27, %v2894_v14  ;;  %v702_v22 = vld [vmem:[%s5496_s28 + $0xf30] sm:$0xff]  ;;  %v2850_v54 = vmul.f32 %v8366_v12, %v566_v41  ;;  %v615_v1 = vld [vmem:[%s5496_s28 + $0xc78] sm:$0xff]  ;;  %v656_v27 = vld [vmem:[%s5496_s28 + $0xdc0] sm:$0xff] }
 0x14a   : > { %v2937_v55 = vmul.f32 %v8371_v35, %v653_v44  ;;  %v2897_v49 = vmul.f32 %v5588_v56, %v613_v45  ;;  %v2985_v43 = vmul.f32 %v5544_v26, %v701_v24  ;;  %v703_v3 = vld [vmem:[%s5496_s28 + $0xf38] sm:$0xff]  ;;  %v4021_v9 = vadd.f32 %v4020_v36, %v2983_v13  ;;  %v8383_v44 = vld [vmem:[#allocation26_spill] sm:$0xff]  ;;  %v704_v13 = vld [vmem:[%s5496_s28 + $0xf40] sm:$0xff] }
 0x14b   : > { %v3880_v0 = vadd.f32 %v3879_v62, %v2847_v61  ;;  %v3971_v60 = vadd.f32 %v3970_v23, %v2935_v2  ;;  %v3930_v14 = vadd.f32 %v3929_v4, %v2895_v10  ;;  %v2851_v41 = vmul.f32 %v8362_v63, %v6578_v30  ;;  %v657_v62 = vld [vmem:[%s5496_s28 + $0xdc8] sm:$0xff]  ;;  %v616_v10 = vld [vmem:[%s5496_s28 + $0xc80] sm:$0xff] }
 0x14c   : > { %v2938_v34 = vmul.f32 %v8383_v44, %v654_v33  ;;  %v2898_v45 = vmul.f32 %v8368_v19, %v614_v42  ;;  %v2986_v24 = vmul.f32 %v8379_v53, %v702_v22  ;;  %v4022_v4 = vadd.f32 %v4021_v9, %v2984_v48  ;;  %v8385_v33 = vld [vmem:[#allocation27_spill] sm:$0xff]  ;;  %v617_v42 = vld [vmem:[%s5496_s28 + $0xc88] sm:$0xff] }
 0x14d   : > { %v3881_v61 = vadd.f32 %v3880_v0, %v2848_v57  ;;  %v3972_v2 = vadd.f32 %v3971_v60, %v2936_v28  ;;  %v3931_v23 = vadd.f32 %v3930_v14, %v2896_v31  ;;  %v6647_v30 = vsel %vm1307_vm0, %v663_v37, 0.0  ;;  %v705_v31 = vld [vmem:[%s5496_s28 + $0xf48] sm:$0xff]  ;;  %v664_v14 = vld [vmem:[%s5496_s28 + $0xe00] sm:$0xff]  ;;  %v658_v37 = vld [vmem:[%s5496_s28 + $0xdd0] sm:$0xff] }
 0x14e   : > { %v2939_v44 = vmul.f32 %v8385_v33, %v655_v29  ;;  %v2899_v22 = vmul.f32 %v8353_v58, %v615_v1  ;;  %v2987_v57 = vmul.f32 %v8377_v38, %v703_v3  ;;  %v4023_v48 = vadd.f32 %v4022_v4, %v2985_v43  ;;  %v665_v9 = vld [vmem:[%s5496_s28 + $0xe08] sm:$0xff]  ;;  %v8386_v33 = vld [vmem:[#allocation29_spill] sm:$0xff] }
 0x14f   : > { %v3882_v28 = vadd.f32 %v3881_v61, %v2849_v32  ;;  %v3973_v0 = vadd.f32 %v3972_v2, %v2937_v55  ;;  %v3932_v60 = vadd.f32 %v3931_v23, %v2897_v49  ;;  %v2940_v29 = vmul.f32 %v8358_v15, %v656_v27  ;;  %v659_v55 = vld [vmem:[%s5496_s28 + $0xdd8] sm:$0xff]  ;;  %v618_v61 = vld [vmem:[%s5496_s28 + $0xc90] sm:$0xff]  ;;  %v660_v4 = vld [vmem:[%s5496_s28 + $0xde0] sm:$0xff] }
 0x150   : > { %v2941_v36 = vmul.f32 %v8386_v33, %v657_v62  ;;  %v2900_v1 = vmul.f32 %v8351_v59, %v616_v10  ;;  %v2988_v3 = vmul.f32 %v5565_v40, %v704_v13  ;;  %v706_v2 = vld [vmem:[%s5496_s28 + $0xf50] sm:$0xff]  ;;  %v4024_v23 = vadd.f32 %v4023_v48, %v2986_v24  ;;  %v661_v48 = vld [vmem:[%s5496_s28 + $0xde8] sm:$0xff] }
 0x151   : > { %v3883_v32 = vadd.f32 %v3882_v28, %v2850_v54  ;;  %v3974_v49 = vadd.f32 %v3973_v0, %v2938_v34  ;;  %v3933_v43 = vadd.f32 %v3932_v60, %v2898_v45  ;;  %v2901_v27 = vmul.f32 %v8374_v39, %v617_v42  ;;  %v666_v33 = vld [vmem:[%s5496_s28 + $0xe10] sm:$0xff]  ;;  %v619_v28 = vld [vmem:[%s5496_s28 + $0xc98] sm:$0xff] }
 0x152   : > { %v2989_v62 = vmul.f32 %v5571_v46, %v705_v31  ;;  %v2948_v10 = vmul.f32 %v5509_v7, %v664_v14  ;;  %v2949_v54 = vmul.f32 %v5512_v8, %v665_v9  ;;  %v707_v0 = vld [vmem:[%s5496_s28 + $0xf58] sm:$0xff]  ;;  %v4025_v24 = vadd.f32 %v4024_v23, %v2987_v57  ;;  %v668_v57 = vld [vmem:[%s5496_s28 + $0xe20] sm:$0xff]  ;;  %v662_v23 = vld [vmem:[%s5496_s28 + $0xdf0] sm:$0xff] }
 0x153   : > { %v3884_v13 = vadd.f32 %v3883_v32, %v2851_v41  ;;  %v3975_v34 = vadd.f32 %v3974_v49, %v2939_v44  ;;  %v3934_v45 = vadd.f32 %v3933_v43, %v2899_v22  ;;  %v667_v60 = vld [vmem:[%s5496_s28 + $0xe18] sm:$0xff]  ;;  %v2942_v42 = vmul.f32 %v8370_v11, %v658_v37  ;;  %v620_v44 = vld [vmem:[%s5496_s28 + $0xca0] sm:$0xff] }
 0x154   : > { %v2943_v31 = vmul.f32 %v8365_v17, %v659_v55  ;;  %v2902_v14 = vmul.f32 %v5607_v6, %v618_v61  ;;  %v2990_v9 = vmul.f32 %v5574_v47, %v706_v2  ;;  %v708_v32 = vld [vmem:[%s5496_s28 + $0xf60] sm:$0xff]  ;;  %v4026_v49 = vadd.f32 %v4025_v24, %v2988_v3 }
 0x155   : > { %3885 = vadd.xlane.f32.xlu0 %v3884_v13  ;;  %v3976_v41 = vadd.f32 %v3975_v34, %v2940_v29  ;;  %v3935_v22 = vadd.f32 %v3934_v45, %v2900_v1  ;;  %v2950_v43 = vmul.f32 %v8355_v5, %v666_v33  ;;  %v2944_v37 = vmul.f32 %v8347_v20, %v660_v4  ;;  %v621_v13 = vld [vmem:[%s5496_s28 + $0xca8] sm:$0xff] }
 0x156   : > { %v2903_v55 = vmul.f32 %v8338_v25, %v619_v28  ;;  %v2991_v61 = vmul.f32 %v5579_v50, %v707_v0  ;;  %v2951_v2 = vmul.f32 %v5527_v16, %v667_v60  ;;  %v709_v34 = vld [vmem:[%s5496_s28 + $0xf68] sm:$0xff]  ;;  %v4027_v3 = vadd.f32 %v4026_v49, %v2989_v62  ;;  %v670_v62 = vld [vmem:[%s5496_s28 + $0xe30] sm:$0xff] }
 0x157   : > { %v3977_v29 = vadd.f32 %v3976_v41, %v2941_v36  ;;  %v3936_v1 = vadd.f32 %v3935_v22, %v2901_v27  ;;  %v669_v45 = vld [vmem:[%s5496_s28 + $0xe28] sm:$0xff]  ;;  %v3986_v33 = vadd.f32 %v2949_v54, %v2948_v10  ;;  %v2945_v24 = vmul.f32 %v8348_v52, %v661_v48  ;;  %v622_v36 = vld [vmem:[%s5496_s28 + $0xcb0] sm:$0xff]  ;;  %v623_v54 = vld [vmem:[%s5496_s28 + $0xcb8] sm:$0xff] }
 0x158   : > { %v2904_v4 = vmul.f32 %v5614_v18, %v620_v44  ;;  %v2992_v28 = vmul.f32 %v5582_v51, %v708_v32  ;;  %v2952_v0 = vmul.f32 %v5535_v21, %v668_v57  ;;  %v710_v27 = vld [vmem:[%s5496_s28 + $0xf70] sm:$0xff]  ;;  %v4028_v22 = vadd.f32 %v4027_v3, %v2990_v9  ;;  %v631_v57 = vld [vmem:[%s5496_s28 + $0xcf8] sm:$0xff]  ;;  %v624_v3 = vld [vmem:[%s5496_s28 + $0xcc0] sm:$0xff] }
 0x159   : > { %v3978_v60 = vadd.f32 %v3977_v29, %v2942_v42  ;;  %v3937_v41 = vadd.f32 %v3936_v1, %v2902_v14  ;;  %v3987_v49 = vadd.f32 %v3986_v33, %v2950_v43  ;;  %v2946_v10 = vmul.f32 %v8366_v12, %v662_v23  ;;  %v711_v29 = vld [vmem:[%s5496_s28 + $0xf78] sm:$0xff] }
 0x15a   : > { %v2905_v48 = vmul.f32 %v8371_v35, %v621_v13  ;;  %v2993_v44 = vmul.f32 %v5588_v56, %v709_v34  ;;  %v2953_v32 = vmul.f32 %v5544_v26, %v669_v45  ;;  %v4029_v9 = vadd.f32 %v4028_v22, %v2991_v61  ;;  %v671_v1 = vld [vmem:[%s5496_s28 + $0xe38] sm:$0xff]  ;;  %v8387_v13 = vld [vmem:[#allocation26_spill] sm:$0xff]  ;;  %v712_v61 = vld [vmem:[%s5496_s28 + $0xf80] sm:$0xff] }
 0x15b   : > { %v3979_v42 = vadd.f32 %v3978_v60, %v2943_v31  ;;  %v3938_v14 = vadd.f32 %v3937_v41, %v2903_v55  ;;  %v3988_v43 = vadd.f32 %v3987_v49, %v2951_v2  ;;  %v2947_v23 = vmul.f32 %v8362_v63, %v6647_v30  ;;  %v625_v60 = vld [vmem:[%s5496_s28 + $0xcc8] sm:$0xff]  ;;  %v672_v2 = vld [vmem:[%s5496_s28 + $0xe40] sm:$0xff] }
 0x15c   : > { %v2906_v33 = vmul.f32 %v8387_v13, %v622_v36  ;;  %v2994_v34 = vmul.f32 %v8368_v19, %v710_v27  ;;  %v2954_v45 = vmul.f32 %v8379_v53, %v670_v62  ;;  %v4030_v41 = vadd.f32 %v4029_v9, %v2992_v28  ;;  %v8389_v36 = vld [vmem:[#allocation27_spill] sm:$0xff]  ;;  %v713_v27 = vld [vmem:[%s5496_s28 + $0xf88] sm:$0xff]  ;;  %v760_v9 = vld [vmem:[%s5496_s28 + $0x1100] sm:$0xff] }
 0x15d   : > { %v3980_v31 = vadd.f32 %v3979_v42, %v2944_v37  ;;  %v3939_v55 = vadd.f32 %v3938_v14, %v2904_v4  ;;  %v3989_v22 = vadd.f32 %v3988_v43, %v2952_v0  ;;  %v6716_v30 = vsel %vm1307_vm0, %v631_v57, 0.0  ;;  %v673_v28 = vld [vmem:[%s5496_s28 + $0xe48] sm:$0xff]  ;;  %v626_v57 = vld [vmem:[%s5496_s28 + $0xcd0] sm:$0xff] }
 0x15e   : > { %v2907_v13 = vmul.f32 %v8389_v36, %v623_v54  ;;  %v2995_v62 = vmul.f32 %v8353_v58, %v711_v29  ;;  %v2955_v37 = vmul.f32 %v8377_v38, %v671_v1  ;;  %v4031_v14 = vadd.f32 %v4030_v41, %v2993_v44  ;;  %v761_v43 = vld [vmem:[%s5496_s28 + $0x1108] sm:$0xff]  ;;  %v8390_v36 = vld [vmem:[#allocation29_spill] sm:$0xff] }
 0x15f   : > { %v3981_v4 = vadd.f32 %v3980_v31, %v2945_v24  ;;  %v3940_v42 = vadd.f32 %v3939_v55, %v2905_v48  ;;  %v3990_v0 = vadd.f32 %v3989_v22, %v2953_v32  ;;  %v2908_v54 = vmul.f32 %v8358_v15, %v624_v3  ;;  %v627_v48 = vld [vmem:[%s5496_s28 + $0xcd8] sm:$0xff]  ;;  %v714_v31 = vld [vmem:[%s5496_s28 + $0xf90] sm:$0xff]  ;;  %v628_v22 = vld [vmem:[%s5496_s28 + $0xce0] sm:$0xff] }
 0x160   : > { %v2909_v49 = vmul.f32 %v8390_v36, %v625_v60  ;;  %v2996_v29 = vmul.f32 %v8351_v59, %v712_v61  ;;  %v2956_v1 = vmul.f32 %v5565_v40, %v672_v2  ;;  %v4032_v32 = vadd.f32 %v4031_v14, %v2994_v34  ;;  %v674_v55 = vld [vmem:[%s5496_s28 + $0xe50] sm:$0xff]  ;;  %v763_v14 = vld [vmem:[%s5496_s28 + $0x1118] sm:$0xff] }
 0x161   : > { %v3982_v24 = vadd.f32 %v3981_v4, %v2946_v10  ;;  %v3941_v44 = vadd.f32 %v3940_v42, %v2906_v33  ;;  %v3991_v41 = vadd.f32 %v3990_v0, %v2954_v45  ;;  %v2997_v3 = vmul.f32 %v8374_v39, %v713_v27  ;;  %v762_v36 = vld [vmem:[%s5496_s28 + $0x1110] sm:$0xff]  ;;  %v715_v4 = vld [vmem:[%s5496_s28 + $0xf98] sm:$0xff]  ;;  %v629_v0 = vld [vmem:[%s5496_s28 + $0xce8] sm:$0xff] }
 0x162   : > { %v2957_v60 = vmul.f32 %v5571_v46, %v673_v28  ;;  %v3044_v61 = vmul.f32 %v5509_v7, %v760_v9  ;;  %v3045_v10 = vmul.f32 %v5512_v8, %v761_v43  ;;  %v4033_v34 = vadd.f32 %v4032_v32, %v2995_v62  ;;  %v675_v42 = vld [vmem:[%s5496_s28 + $0xe58] sm:$0xff] }
 0x163   : > { %v3983_v2 = vadd.f32 %v3982_v24, %v2947_v23  ;;  %v3942_v33 = vadd.f32 %v3941_v44, %v2907_v13  ;;  %v3992_v45 = vadd.f32 %v3991_v41, %v2955_v37  ;;  %v2910_v27 = vmul.f32 %v8370_v11, %v626_v57  ;;  %v716_v13 = vld [vmem:[%s5496_s28 + $0xfa0] sm:$0xff]  ;;  %v630_v41 = vld [vmem:[%s5496_s28 + $0xcf0] sm:$0xff] }
 0x164   : > { %v2911_v28 = vmul.f32 %v8365_v17, %v627_v48  ;;  %v2998_v9 = vmul.f32 %v5607_v6, %v714_v31  ;;  %v2958_v43 = vmul.f32 %v5574_v47, %v674_v55  ;;  %v4034_v62 = vadd.f32 %v4033_v34, %v2996_v29  ;;  %v676_v24 = vld [vmem:[%s5496_s28 + $0xe60] sm:$0xff]  ;;  %v765_v34 = vld [vmem:[%s5496_s28 + $0x1128] sm:$0xff] }
 0x165   : > { %3984 = vadd.xlane.f32.xlu1 %v3983_v2  ;;  %v3943_v23 = vadd.f32 %v3942_v33, %v2908_v54  ;;  %v3993_v44 = vadd.f32 %v3992_v45, %v2956_v1  ;;  %v764_v37 = vld [vmem:[%s5496_s28 + $0x1120] sm:$0xff]  ;;  %v3046_v32 = vmul.f32 %v8355_v5, %v762_v36  ;;  %v2912_v57 = vmul.f32 %v8347_v20, %v628_v22  ;;  %v717_v2 = vld [vmem:[%s5496_s28 + $0xfa8] sm:$0xff] }
 0x166   : > { %v2999_v48 = vmul.f32 %v8338_v25, %v715_v4  ;;  %v2959_v31 = vmul.f32 %v5579_v50, %v675_v42  ;;  %v3047_v55 = vmul.f32 %v5527_v16, %v763_v14  ;;  %v4035_v29 = vadd.f32 %v4034_v62, %v2997_v3  ;;  %v677_v33 = vld [vmem:[%s5496_s28 + $0xe68] sm:$0xff]  ;;  %v678_v3 = vld [vmem:[%s5496_s28 + $0xe70] sm:$0xff] }
 0x167   : > { %v3944_v54 = vadd.f32 %v3943_v23, %v2909_v49  ;;  %v3994_v1 = vadd.f32 %v3993_v44, %v2957_v60  ;;  %v4085_v36 = vadd.f32 %v3045_v10, %v3044_v61  ;;  %v2913_v45 = vmul.f32 %v8348_v52, %v629_v0  ;;  %v718_v49 = vld [vmem:[%s5496_s28 + $0xfb0] sm:$0xff]  ;;  %v719_v10 = vld [vmem:[%s5496_s28 + $0xfb8] sm:$0xff] }
 0x168   : > { %v3000_v22 = vmul.f32 %v5614_v18, %v716_v13  ;;  %v2960_v4 = vmul.f32 %v5582_v51, %v676_v24  ;;  %v3048_v42 = vmul.f32 %v5535_v21, %v764_v37  ;;  %v4036_v23 = vadd.f32 %v4035_v29, %v2998_v9  ;;  %v766_v60 = vld [vmem:[%s5496_s28 + $0x1130] sm:$0xff]  ;;  %v727_v37 = vld [vmem:[%s5496_s28 + $0xff8] sm:$0xff] }
 0x169   : > { %v3945_v14 = vadd.f32 %v3944_v54, %v2910_v27  ;;  %v3995_v62 = vadd.f32 %v3994_v1, %v2958_v43  ;;  %v4086_v44 = vadd.f32 %v4085_v36, %v3046_v32  ;;  %v2914_v61 = vmul.f32 %v8366_v12, %v630_v41  ;;  %v679_v54 = vld [vmem:[%s5496_s28 + $0xe78] sm:$0xff]  ;;  %v720_v1 = vld [vmem:[%s5496_s28 + $0xfc0] sm:$0xff] }
 0x16a   : > { %v3001_v0 = vmul.f32 %v8371_v35, %v717_v2  ;;  %v2961_v13 = vmul.f32 %v5588_v56, %v677_v33  ;;  %v3049_v24 = vmul.f32 %v5544_v26, %v765_v34  ;;  %v4037_v9 = vadd.f32 %v4036_v23, %v2999_v48  ;;  %v767_v29 = vld [vmem:[%s5496_s28 + $0x1138] sm:$0xff]  ;;  %v8391_v2 = vld [vmem:[#allocation26_spill] sm:$0xff] }
 0x16b   : > { %v3946_v27 = vadd.f32 %v3945_v14, %v2911_v28  ;;  %v3996_v43 = vadd.f32 %v3995_v62, %v2959_v31  ;;  %v4087_v32 = vadd.f32 %v4086_v44, %v3047_v55  ;;  %v2915_v41 = vmul.f32 %v8362_v63, %v6716_v30  ;;  %v721_v14 = vld [vmem:[%s5496_s28 + $0xfc8] sm:$0xff]  ;;  %v680_v31 = vld [vmem:[%s5496_s28 + $0xe80] sm:$0xff] }
 0x16c   : > { %v3002_v36 = vmul.f32 %v8391_v2, %v718_v49  ;;  %v2962_v33 = vmul.f32 %v8368_v19, %v678_v3  ;;  %v3050_v34 = vmul.f32 %v8379_v53, %v766_v60  ;;  %v4038_v48 = vadd.f32 %v4037_v9, %v3000_v22  ;;  %v768_v55 = vld [vmem:[%s5496_s28 + $0x1140] sm:$0xff]  ;;  %v8393_v49 = vld [vmem:[#allocation27_spill] sm:$0xff]  ;;  %v681_v3 = vld [vmem:[%s5496_s28 + $0xe88] sm:$0xff] }
 0x16d   : > { %v3947_v28 = vadd.f32 %v3946_v27, %v2912_v57  ;;  %v3997_v23 = vadd.f32 %v3996_v43, %v2960_v4  ;;  %v4088_v62 = vadd.f32 %v4087_v32, %v3048_v42  ;;  %v6785_v30 = vsel %vm1307_vm0, %v727_v37, 0.0  ;;  %v769_v4 = vld [vmem:[%s5496_s28 + $0x1148] sm:$0xff]  ;;  %v728_v43 = vld [vmem:[%s5496_s28 + $0x1000] sm:$0xff]  ;;  %v722_v37 = vld [vmem:[%s5496_s28 + $0xfd0] sm:$0xff] }
 0x16e   : > { %v3003_v2 = vmul.f32 %v8393_v49, %v719_v10  ;;  %v2963_v60 = vmul.f32 %v8353_v58, %v679_v54  ;;  %v3051_v57 = vmul.f32 %v8377_v38, %v767_v29  ;;  %v4039_v27 = vadd.f32 %v4038_v48, %v3001_v0  ;;  %v729_v32 = vld [vmem:[%s5496_s28 + $0x1008] sm:$0xff]  ;;  %v8394_v49 = vld [vmem:[#allocation29_spill] sm:$0xff]  ;;  %v723_v0 = vld [vmem:[%s5496_s28 + $0xfd8] sm:$0xff] }
 0x16f   : > { %v3948_v22 = vadd.f32 %v3947_v28, %v2913_v45  ;;  %v3998_v9 = vadd.f32 %v3997_v23, %v2961_v13  ;;  %v4089_v42 = vadd.f32 %v4088_v62, %v3049_v24  ;;  %v3004_v10 = vmul.f32 %v8358_v15, %v720_v1  ;;  %v682_v28 = vld [vmem:[%s5496_s28 + $0xe90] sm:$0xff]  ;;  %v724_v62 = vld [vmem:[%s5496_s28 + $0xfe0] sm:$0xff] }
 0x170   : > { %v3005_v44 = vmul.f32 %v8394_v49, %v721_v14  ;;  %v2964_v54 = vmul.f32 %v8351_v59, %v680_v31  ;;  %v3052_v29 = vmul.f32 %v5565_v40, %v768_v55  ;;  %v4040_v13 = vadd.f32 %v4039_v27, %v3002_v36  ;;  %v770_v48 = vld [vmem:[%s5496_s28 + $0x1150] sm:$0xff]  ;;  %v771_v27 = vld [vmem:[%s5496_s28 + $0x1158] sm:$0xff] }
 0x171   : > { %v3949_v45 = vadd.f32 %v3948_v22, %v2914_v61  ;;  %v3999_v24 = vadd.f32 %v3998_v9, %v2962_v33  ;;  %v4090_v23 = vadd.f32 %v4089_v42, %v3050_v34  ;;  %v2965_v1 = vmul.f32 %v8374_v39, %v681_v3  ;;  %v730_v49 = vld [vmem:[%s5496_s28 + $0x1010] sm:$0xff]  ;;  %v683_v22 = vld [vmem:[%s5496_s28 + $0xe98] sm:$0xff]  ;;  %v725_v42 = vld [vmem:[%s5496_s28 + $0xfe8] sm:$0xff] }
 0x172   : > { %v3053_v14 = vmul.f32 %v5571_v46, %v769_v4  ;;  %v3012_v31 = vmul.f32 %v5509_v7, %v728_v43  ;;  %v3013_v61 = vmul.f32 %v5512_v8, %v729_v32  ;;  %v4041_v36 = vadd.f32 %v4040_v13, %v3003_v2  ;;  %v731_v9 = vld [vmem:[%s5496_s28 + $0x1018] sm:$0xff]  ;;  %v684_v2 = vld [vmem:[%s5496_s28 + $0xea0] sm:$0xff] }
 0x173   : > { %v3950_v55 = vadd.f32 %v3949_v45, %v2915_v41  ;;  %v4000_v33 = vadd.f32 %v3999_v24, %v2963_v60  ;;  %v4091_v34 = vadd.f32 %v4090_v23, %v3051_v57  ;;  %v3006_v3 = vmul.f32 %v8370_v11, %v722_v37  ;;  %v772_v45 = vld [vmem:[%s5496_s28 + $0x1160] sm:$0xff]  ;;  %v726_v23 = vld [vmem:[%s5496_s28 + $0xff0] sm:$0xff] }
 0x174   : > { %v3007_v4 = vmul.f32 %v8365_v17, %v723_v0  ;;  %v2966_v43 = vmul.f32 %v5607_v6, %v682_v28  ;;  %v3054_v32 = vmul.f32 %v5574_v47, %v770_v48  ;;  %v4042_v41 = vadd.f32 %v4041_v36, %v3004_v10  ;;  %v732_v57 = vld [vmem:[%s5496_s28 + $0x1020] sm:$0xff]  ;;  %v773_v36 = vld [vmem:[%s5496_s28 + $0x1168] sm:$0xff] }
 0x175   : > { %3951 = vadd.xlane.f32.xlu0 %v3950_v55  ;;  %v4001_v60 = vadd.f32 %v4000_v33, %v2964_v54  ;;  %v4092_v13 = vadd.f32 %v4091_v34, %v3052_v29  ;;  %v3014_v24 = vmul.f32 %v8355_v5, %v730_v49  ;;  %v3008_v37 = vmul.f32 %v8347_v20, %v724_v62  ;;  %v685_v55 = vld [vmem:[%s5496_s28 + $0xea8] sm:$0xff] }
 0x176   : > { %v2967_v0 = vmul.f32 %v8338_v25, %v683_v22  ;;  %v3055_v28 = vmul.f32 %v5579_v50, %v771_v27  ;;  %v3015_v48 = vmul.f32 %v5527_v16, %v731_v9  ;;  %v4043_v10 = vadd.f32 %v4042_v41, %v3005_v44  ;;  %v733_v33 = vld [vmem:[%s5496_s28 + $0x1028] sm:$0xff]  ;;  %v686_v44 = vld [vmem:[%s5496_s28 + $0xeb0] sm:$0xff] }
 0x177   : > { %v4002_v54 = vadd.f32 %v4001_v60, %v2965_v1  ;;  %v4093_v29 = vadd.f32 %v4092_v13, %v3053_v14  ;;  %v4052_v49 = vadd.f32 %v3013_v61, %v3012_v31  ;;  %v3009_v34 = vmul.f32 %v8348_v52, %v725_v42  ;;  %v774_v1 = vld [vmem:[%s5496_s28 + $0x1170] sm:$0xff]  ;;  %v687_v61 = vld [vmem:[%s5496_s28 + $0xeb8] sm:$0xff] }
 0x178   : > { %v2968_v62 = vmul.f32 %v5614_v18, %v684_v2  ;;  %v3056_v22 = vmul.f32 %v5582_v51, %v772_v45  ;;  %v3016_v27 = vmul.f32 %v5535_v21, %v732_v57  ;;  %v4044_v9 = vadd.f32 %v4043_v10, %v3006_v3  ;;  %v734_v14 = vld [vmem:[%s5496_s28 + $0x1030] sm:$0xff]  ;;  %v695_v57 = vld [vmem:[%s5496_s28 + $0xef8] sm:$0xff] }
 0x179   : > { %v4003_v41 = vadd.f32 %v4002_v54, %v2966_v43  ;;  %v4094_v60 = vadd.f32 %v4093_v29, %v3054_v32  ;;  %v4053_v13 = vadd.f32 %v4052_v49, %v3014_v24  ;;  %v3010_v31 = vmul.f32 %v8366_v12, %v726_v23  ;;  %v775_v10 = vld [vmem:[%s5496_s28 + $0x1178] sm:$0xff]  ;;  %v688_v29 = vld [vmem:[%s5496_s28 + $0xec0] sm:$0xff] }
 0x17a   : > { %v2969_v42 = vmul.f32 %v8371_v35, %v685_v55  ;;  %v3057_v2 = vmul.f32 %v5588_v56, %v773_v36  ;;  %v3017_v45 = vmul.f32 %v5544_v26, %v733_v33  ;;  %v4045_v3 = vadd.f32 %v4044_v9, %v3007_v4  ;;  %v735_v54 = vld [vmem:[%s5496_s28 + $0x1038] sm:$0xff]  ;;  %v8395_v55 = vld [vmem:[#allocation26_spill] sm:$0xff] }
 0x17b   : > { %v4004_v43 = vadd.f32 %v4003_v41, %v2967_v0  ;;  %v4095_v32 = vadd.f32 %v4094_v60, %v3055_v28  ;;  %v4054_v24 = vadd.f32 %v4053_v13, %v3015_v48  ;;  %v3011_v23 = vmul.f32 %v8362_v63, %v6785_v30  ;;  %v689_v9 = vld [vmem:[%s5496_s28 + $0xec8] sm:$0xff]  ;;  %v776_v28 = vld [vmem:[%s5496_s28 + $0x1180] sm:$0xff] }
 0x17c   : > { %v2970_v49 = vmul.f32 %v8395_v55, %v686_v44  ;;  %v3058_v36 = vmul.f32 %v8368_v19, %v774_v1  ;;  %v3018_v33 = vmul.f32 %v8379_v53, %v734_v14  ;;  %v4046_v4 = vadd.f32 %v4045_v3, %v3008_v37  ;;  %v736_v48 = vld [vmem:[%s5496_s28 + $0x1040] sm:$0xff]  ;;  %v8397_v44 = vld [vmem:[#allocation27_spill] sm:$0xff]  ;;  %v777_v1 = vld [vmem:[%s5496_s28 + $0x1188] sm:$0xff] }
 0x17d   : > { %v4005_v0 = vadd.f32 %v4004_v43, %v2968_v62  ;;  %v4096_v41 = vadd.f32 %v4095_v32, %v3056_v22  ;;  %v4055_v60 = vadd.f32 %v4054_v24, %v3016_v27  ;;  %v6854_v30 = vsel %vm1307_vm0, %v695_v57, 0.0  ;;  %v737_v22 = vld [vmem:[%s5496_s28 + $0x1048] sm:$0xff]  ;;  %v824_v32 = vld [vmem:[%s5496_s28 + $0x1300] sm:$0xff]  ;;  %v690_v57 = vld [vmem:[%s5496_s28 + $0xed0] sm:$0xff] }
 0x17e   : > { %v2971_v55 = vmul.f32 %v8397_v44, %v687_v61  ;;  %v3059_v14 = vmul.f32 %v8353_v58, %v775_v10  ;;  %v3019_v37 = vmul.f32 %v8377_v38, %v735_v54  ;;  %v4047_v62 = vadd.f32 %v4046_v4, %v3009_v34  ;;  %v825_v24 = vld [vmem:[%s5496_s28 + $0x1308] sm:$0xff]  ;;  %v8398_v44 = vld [vmem:[#allocation29_spill] sm:$0xff]  ;;  %v778_v4 = vld [vmem:[%s5496_s28 + $0x1190] sm:$0xff] }
 0x17f   : > { %v4006_v3 = vadd.f32 %v4005_v0, %v2969_v42  ;;  %v4097_v43 = vadd.f32 %v4096_v41, %v3057_v2  ;;  %v4056_v27 = vadd.f32 %v4055_v60, %v3017_v45  ;;  %v2972_v61 = vmul.f32 %v8358_v15, %v688_v29  ;;  %v691_v42 = vld [vmem:[%s5496_s28 + $0xed8] sm:$0xff]  ;;  %v738_v0 = vld [vmem:[%s5496_s28 + $0x1050] sm:$0xff]  ;;  %v692_v60 = vld [vmem:[%s5496_s28 + $0xee0] sm:$0xff] }
 0x180   : > { %v2973_v13 = vmul.f32 %v8398_v44, %v689_v9  ;;  %v3060_v10 = vmul.f32 %v8351_v59, %v776_v28  ;;  %v3020_v54 = vmul.f32 %v5565_v40, %v736_v48  ;;  %v4048_v34 = vadd.f32 %v4047_v62, %v3010_v31  ;;  %v826_v44 = vld [vmem:[%s5496_s28 + $0x1310] sm:$0xff]  ;;  %v779_v62 = vld [vmem:[%s5496_s28 + $0x1198] sm:$0xff] }
 0x181   : > { %v4007_v2 = vadd.f32 %v4006_v3, %v2970_v49  ;;  %v4098_v45 = vadd.f32 %v4097_v43, %v3058_v36  ;;  %v4057_v41 = vadd.f32 %v4056_v27, %v3018_v33  ;;  %v3061_v29 = vmul.f32 %v8374_v39, %v777_v1  ;;  %v739_v3 = vld [vmem:[%s5496_s28 + $0x1058] sm:$0xff]  ;;  %v693_v27 = vld [vmem:[%s5496_s28 + $0xee8] sm:$0xff] }
 0x182   : > { %v3021_v9 = vmul.f32 %v5571_v46, %v737_v22  ;;  %v3108_v28 = vmul.f32 %v5509_v7, %v824_v32  ;;  %v3109_v31 = vmul.f32 %v5512_v8, %v825_v24  ;;  %v4049_v48 = vadd.f32 %v4048_v34, %v3011_v23  ;;  %v827_v43 = vld [vmem:[%s5496_s28 + $0x1318] sm:$0xff]  ;;  %v740_v34 = vld [vmem:[%s5496_s28 + $0x1060] sm:$0xff] }
 0x183   : > { %v4008_v49 = vadd.f32 %v4007_v2, %v2971_v55  ;;  %v4099_v36 = vadd.f32 %v4098_v45, %v3059_v14  ;;  %v4058_v33 = vadd.f32 %v4057_v41, %v3019_v37  ;;  %v2974_v1 = vmul.f32 %v8370_v11, %v690_v57  ;;  %v780_v55 = vld [vmem:[%s5496_s28 + $0x11a0] sm:$0xff]  ;;  %v694_v41 = vld [vmem:[%s5496_s28 + $0xef0] sm:$0xff] }
 0x184   : > { %v2975_v22 = vmul.f32 %v8365_v17, %v691_v42  ;;  %v3062_v32 = vmul.f32 %v5607_v6, %v778_v4  ;;  %v3022_v24 = vmul.f32 %v5574_v47, %v738_v0  ;;  %4050 = vadd.xlane.f32.xlu1 %v4049_v48  ;;  %v828_v37 = vld [vmem:[%s5496_s28 + $0x1320] sm:$0xff]  ;;  %v3110_v45 = vmul.f32 %v8355_v5, %v826_v44  ;;  %v781_v48 = vld [vmem:[%s5496_s28 + $0x11a8] sm:$0xff] }
 0x185   : > { %v4009_v23 = vadd.f32 %v4008_v49, %v2972_v61  ;;  %v4100_v14 = vadd.f32 %v4099_v36, %v3060_v10  ;;  %v4059_v2 = vadd.f32 %v4058_v33, %v3020_v54  ;;  %v2976_v57 = vmul.f32 %v8347_v20, %v692_v60  ;;  %v741_v49 = vld [vmem:[%s5496_s28 + $0x1068] sm:$0xff] }
 0x186   : > { %v3063_v42 = vmul.f32 %v8338_v25, %v779_v62  ;;  %v3023_v4 = vmul.f32 %v5579_v50, %v739_v3  ;;  %v3111_v0 = vmul.f32 %v5527_v16, %v827_v43  ;;  %v829_v36 = vld [vmem:[%s5496_s28 + $0x1328] sm:$0xff]  ;;  %v4151_v44 = vadd.f32 %v3109_v31, %v3108_v28  ;;  %v783_v31 = vld [vmem:[%s5496_s28 + $0x11b8] sm:$0xff] }
 0x187   : > { %v4010_v61 = vadd.f32 %v4009_v23, %v2973_v13  ;;  %v4101_v10 = vadd.f32 %v4100_v14, %v3061_v29  ;;  %v4060_v54 = vadd.f32 %v4059_v2, %v3021_v9  ;;  %v2977_v33 = vmul.f32 %v8348_v52, %v693_v27  ;;  %v782_v13 = vld [vmem:[%s5496_s28 + $0x11b0] sm:$0xff] }
 0x188   : > { %v3064_v60 = vmul.f32 %v5614_v18, %v780_v55  ;;  %v3024_v62 = vmul.f32 %v5582_v51, %v740_v34  ;;  %v3112_v3 = vmul.f32 %v5535_v21, %v828_v37  ;;  %v742_v29 = vld [vmem:[%s5496_s28 + $0x1070] sm:$0xff]  ;;  %v4152_v2 = vadd.f32 %v4151_v44, %v3110_v45  ;;  %v791_v37 = vld [vmem:[%s5496_s28 + $0x11f8] sm:$0xff] }
 0x189   : > { %v4011_v43 = vadd.f32 %v4010_v61, %v2974_v1  ;;  %v4102_v23 = vadd.f32 %v4101_v10, %v3062_v32  ;;  %v4061_v14 = vadd.f32 %v4060_v54, %v3022_v24  ;;  %v830_v9 = vld [vmem:[%s5496_s28 + $0x1330] sm:$0xff]  ;;  %v2978_v28 = vmul.f32 %v8366_v12, %v694_v41  ;;  %v743_v61 = vld [vmem:[%s5496_s28 + $0x1078] sm:$0xff]  ;;  %v784_v54 = vld [vmem:[%s5496_s28 + $0x11c0] sm:$0xff] }
 0x18a   : > { %v3065_v27 = vmul.f32 %v8371_v35, %v781_v48  ;;  %v3025_v55 = vmul.f32 %v5588_v56, %v741_v49  ;;  %v3113_v34 = vmul.f32 %v5544_v26, %v829_v36  ;;  %v831_v10 = vld [vmem:[%s5496_s28 + $0x1338] sm:$0xff]  ;;  %v4153_v45 = vadd.f32 %v4152_v2, %v3111_v0  ;;  %v8399_v48 = vld [vmem:[#allocation26_spill] sm:$0xff]  ;;  %v832_v0 = vld [vmem:[%s5496_s28 + $0x1340] sm:$0xff] }
 0x18b   : > { %v4012_v1 = vadd.f32 %v4011_v43, %v2975_v22  ;;  %v4103_v32 = vadd.f32 %v4102_v23, %v3063_v42  ;;  %v4062_v24 = vadd.f32 %v4061_v14, %v3023_v4  ;;  %v2979_v41 = vmul.f32 %v8362_v63, %v6854_v30  ;;  %v785_v43 = vld [vmem:[%s5496_s28 + $0x11c8] sm:$0xff]  ;;  %v744_v4 = vld [vmem:[%s5496_s28 + $0x1080] sm:$0xff] }
 0x18c   : > { %v3066_v44 = vmul.f32 %v8399_v48, %v782_v13  ;;  %v3026_v49 = vmul.f32 %v8368_v19, %v742_v29  ;;  %v3114_v36 = vmul.f32 %v8379_v53, %v830_v9  ;;  %v4154_v14 = vadd.f32 %v4153_v45, %v3112_v3  ;;  %v8401_v13 = vld [vmem:[#allocation27_spill] sm:$0xff]  ;;  %v745_v29 = vld [vmem:[%s5496_s28 + $0x1088] sm:$0xff] }
 0x18d   : > { %v4013_v22 = vadd.f32 %v4012_v1, %v2976_v57  ;;  %v4104_v42 = vadd.f32 %v4103_v32, %v3064_v60  ;;  %v4063_v23 = vadd.f32 %v4062_v24, %v3024_v62  ;;  %v6923_v30 = vsel %vm1307_vm0, %v791_v37, 0.0  ;;  %v833_v62 = vld [vmem:[%s5496_s28 + $0x1348] sm:$0xff]  ;;  %v792_v24 = vld [vmem:[%s5496_s28 + $0x1200] sm:$0xff]  ;;  %v786_v37 = vld [vmem:[%s5496_s28 + $0x11d0] sm:$0xff] }
 0x18e   : > { %v3067_v48 = vmul.f32 %v8401_v13, %v783_v31  ;;  %v3027_v9 = vmul.f32 %v8353_v58, %v743_v61  ;;  %v3115_v57 = vmul.f32 %v8377_v38, %v831_v10  ;;  %v4155_v3 = vadd.f32 %v4154_v14, %v3113_v34  ;;  %v793_v45 = vld [vmem:[%s5496_s28 + $0x1208] sm:$0xff]  ;;  %v8402_v13 = vld [vmem:[#allocation29_spill] sm:$0xff] }
 0x18f   : > { %v4014_v60 = vadd.f32 %v4013_v22, %v2977_v33  ;;  %v4105_v1 = vadd.f32 %v4104_v42, %v3065_v27  ;;  %v4064_v32 = vadd.f32 %v4063_v23, %v3025_v55  ;;  %v3068_v31 = vmul.f32 %v8358_v15, %v784_v54  ;;  %v787_v27 = vld [vmem:[%s5496_s28 + $0x11d8] sm:$0xff]  ;;  %v746_v22 = vld [vmem:[%s5496_s28 + $0x1090] sm:$0xff]  ;;  %v788_v14 = vld [vmem:[%s5496_s28 + $0x11e0] sm:$0xff] }
 0x190   : > { %v3069_v2 = vmul.f32 %v8402_v13, %v785_v43  ;;  %v3028_v61 = vmul.f32 %v8351_v59, %v744_v4  ;;  %v3116_v10 = vmul.f32 %v5565_v40, %v832_v0  ;;  %v834_v42 = vld [vmem:[%s5496_s28 + $0x1350] sm:$0xff]  ;;  %v4156_v23 = vadd.f32 %v4155_v3, %v3114_v36  ;;  %v789_v3 = vld [vmem:[%s5496_s28 + $0x11e8] sm:$0xff] }
 0x191   : > { %v4015_v33 = vadd.f32 %v4014_v60, %v2978_v28  ;;  %v4106_v55 = vadd.f32 %v4105_v1, %v3066_v44  ;;  %v4065_v34 = vadd.f32 %v4064_v32, %v3026_v49  ;;  %v3029_v54 = vmul.f32 %v8374_v39, %v745_v29  ;;  %v794_v13 = vld [vmem:[%s5496_s28 + $0x1210] sm:$0xff]  ;;  %v747_v60 = vld [vmem:[%s5496_s28 + $0x1098] sm:$0xff] }
 0x192   : > { %v3117_v43 = vmul.f32 %v5571_v46, %v833_v62  ;;  %v3076_v4 = vmul.f32 %v5509_v7, %v792_v24  ;;  %v3077_v28 = vmul.f32 %v5512_v8, %v793_v45  ;;  %v835_v1 = vld [vmem:[%s5496_s28 + $0x1358] sm:$0xff]  ;;  %v4157_v36 = vadd.f32 %v4156_v23, %v3115_v57  ;;  %v796_v57 = vld [vmem:[%s5496_s28 + $0x1220] sm:$0xff]  ;;  %v790_v23 = vld [vmem:[%s5496_s28 + $0x11f0] sm:$0xff] }
 0x193   : > { %v4016_v0 = vadd.f32 %v4015_v33, %v2979_v41  ;;  %v4107_v44 = vadd.f32 %v4106_v55, %v3067_v48  ;;  %v4066_v49 = vadd.f32 %v4065_v34, %v3027_v9  ;;  %v795_v32 = vld [vmem:[%s5496_s28 + $0x1218] sm:$0xff]  ;;  %v3070_v29 = vmul.f32 %v8370_v11, %v786_v37  ;;  %v748_v48 = vld [vmem:[%s5496_s28 + $0x10a0] sm:$0xff] }
 0x194   : > { %v3071_v62 = vmul.f32 %v8365_v17, %v787_v27  ;;  %v3030_v24 = vmul.f32 %v5607_v6, %v746_v22  ;;  %v3118_v45 = vmul.f32 %v5574_v47, %v834_v42  ;;  %v836_v33 = vld [vmem:[%s5496_s28 + $0x1360] sm:$0xff]  ;;  %v4158_v55 = vadd.f32 %v4157_v36, %v3116_v10 }
 0x195   : > { %4017 = vadd.xlane.f32.xlu0 %v4016_v0  ;;  %v4108_v41 = vadd.f32 %v4107_v44, %v3068_v31  ;;  %v4067_v9 = vadd.f32 %v4066_v49, %v3028_v61  ;;  %v3078_v34 = vmul.f32 %v8355_v5, %v794_v13  ;;  %v3072_v37 = vmul.f32 %v8347_v20, %v788_v14  ;;  %v749_v0 = vld [vmem:[%s5496_s28 + $0x10a8] sm:$0xff] }
 0x196   : > { %v3031_v27 = vmul.f32 %v8338_v25, %v747_v60  ;;  %v3119_v22 = vmul.f32 %v5579_v50, %v835_v1  ;;  %v3079_v42 = vmul.f32 %v5527_v16, %v795_v32  ;;  %v837_v44 = vld [vmem:[%s5496_s28 + $0x1368] sm:$0xff]  ;;  %v4159_v10 = vadd.f32 %v4158_v55, %v3117_v43  ;;  %v798_v43 = vld [vmem:[%s5496_s28 + $0x1230] sm:$0xff] }
 0x197   : > { %v4109_v31 = vadd.f32 %v4108_v41, %v3069_v2  ;;  %v4068_v61 = vadd.f32 %v4067_v9, %v3029_v54  ;;  %v797_v49 = vld [vmem:[%s5496_s28 + $0x1228] sm:$0xff]  ;;  %v4118_v13 = vadd.f32 %v3077_v28, %v3076_v4  ;;  %v3073_v36 = vmul.f32 %v8348_v52, %v789_v3  ;;  %v750_v2 = vld [vmem:[%s5496_s28 + $0x10b0] sm:$0xff]  ;;  %v751_v28 = vld [vmem:[%s5496_s28 + $0x10b8] sm:$0xff] }
 0x198   : > { %v3032_v14 = vmul.f32 %v5614_v18, %v748_v48  ;;  %v3120_v60 = vmul.f32 %v5582_v51, %v836_v33  ;;  %v3080_v1 = vmul.f32 %v5535_v21, %v796_v57  ;;  %v838_v54 = vld [vmem:[%s5496_s28 + $0x1370] sm:$0xff]  ;;  %v4160_v9 = vadd.f32 %v4159_v10, %v3118_v45  ;;  %v759_v57 = vld [vmem:[%s5496_s28 + $0x10f8] sm:$0xff]  ;;  %v752_v10 = vld [vmem:[%s5496_s28 + $0x10c0] sm:$0xff] }
 0x199   : > { %v4110_v32 = vadd.f32 %v4109_v31, %v3070_v29  ;;  %v4069_v41 = vadd.f32 %v4068_v61, %v3030_v24  ;;  %v4119_v55 = vadd.f32 %v4118_v13, %v3078_v34  ;;  %v3074_v4 = vmul.f32 %v8366_v12, %v790_v23  ;;  %v839_v31 = vld [vmem:[%s5496_s28 + $0x1378] sm:$0xff] }
 0x19a   : > { %v3033_v3 = vmul.f32 %v8371_v35, %v749_v0  ;;  %v3121_v48 = vmul.f32 %v5588_v56, %v837_v44  ;;  %v3081_v33 = vmul.f32 %v5544_v26, %v797_v49  ;;  %v4161_v45 = vadd.f32 %v4160_v9, %v3119_v22  ;;  %v799_v61 = vld [vmem:[%s5496_s28 + $0x1238] sm:$0xff]  ;;  %v8403_v0 = vld [vmem:[#allocation26_spill] sm:$0xff]  ;;  %v840_v22 = vld [vmem:[%s5496_s28 + $0x1380] sm:$0xff] }
 0x19b   : > { %v4111_v29 = vadd.f32 %v4110_v32, %v3071_v62  ;;  %v4070_v24 = vadd.f32 %v4069_v41, %v3031_v27  ;;  %v4120_v34 = vadd.f32 %v4119_v55, %v3079_v42  ;;  %v3075_v23 = vmul.f32 %v8362_v63, %v6923_v30  ;;  %v753_v32 = vld [vmem:[%s5496_s28 + $0x10c8] sm:$0xff]  ;;  %v800_v42 = vld [vmem:[%s5496_s28 + $0x1240] sm:$0xff] }
 0x19c   : > { %v3034_v13 = vmul.f32 %v8403_v0, %v750_v2  ;;  %v3122_v44 = vmul.f32 %v8368_v19, %v838_v54  ;;  %v3082_v49 = vmul.f32 %v8379_v53, %v798_v43  ;;  %v4162_v41 = vadd.f32 %v4161_v45, %v3120_v60  ;;  %v8405_v2 = vld [vmem:[#allocation27_spill] sm:$0xff]  ;;  %v841_v54 = vld [vmem:[%s5496_s28 + $0x1388] sm:$0xff]  ;;  %v888_v45 = vld [vmem:[%s5496_s28 + $0x1500] sm:$0xff] }
 0x19d   : > { %v4112_v62 = vadd.f32 %v4111_v29, %v3072_v37  ;;  %v4071_v27 = vadd.f32 %v4070_v24, %v3032_v14  ;;  %v4121_v9 = vadd.f32 %v4120_v34, %v3080_v1  ;;  %v6992_v30 = vsel %vm1307_vm0, %v759_v57, 0.0  ;;  %v801_v60 = vld [vmem:[%s5496_s28 + $0x1248] sm:$0xff]  ;;  %v754_v57 = vld [vmem:[%s5496_s28 + $0x10d0] sm:$0xff] }
 0x19e   : > { %v3035_v0 = vmul.f32 %v8405_v2, %v751_v28  ;;  %v3123_v43 = vmul.f32 %v8353_v58, %v839_v31  ;;  %v3083_v37 = vmul.f32 %v8377_v38, %v799_v61  ;;  %v4163_v24 = vadd.f32 %v4162_v41, %v3121_v48  ;;  %v889_v34 = vld [vmem:[%s5496_s28 + $0x1508] sm:$0xff]  ;;  %v8406_v2 = vld [vmem:[#allocation29_spill] sm:$0xff] }
 0x19f   : > { %v4113_v14 = vadd.f32 %v4112_v62, %v3073_v36  ;;  %v4072_v29 = vadd.f32 %v4071_v27, %v3033_v3  ;;  %v4122_v1 = vadd.f32 %v4121_v9, %v3081_v33  ;;  %v3036_v28 = vmul.f32 %v8358_v15, %v752_v10  ;;  %v755_v3 = vld [vmem:[%s5496_s28 + $0x10d8] sm:$0xff]  ;;  %v842_v62 = vld [vmem:[%s5496_s28 + $0x1390] sm:$0xff]  ;;  %v756_v9 = vld [vmem:[%s5496_s28 + $0x10e0] sm:$0xff] }
 0x1a0   : > { %v3037_v55 = vmul.f32 %v8406_v2, %v753_v32  ;;  %v3124_v31 = vmul.f32 %v8351_v59, %v840_v22  ;;  %v3084_v61 = vmul.f32 %v5565_v40, %v800_v42  ;;  %v4164_v33 = vadd.f32 %v4163_v24, %v3122_v44  ;;  %v802_v27 = vld [vmem:[%s5496_s28 + $0x1250] sm:$0xff]  ;;  %v891_v24 = vld [vmem:[%s5496_s28 + $0x1518] sm:$0xff] }
 0x1a1   : > { %v4114_v36 = vadd.f32 %v4113_v14, %v3074_v4  ;;  %v4073_v48 = vadd.f32 %v4072_v29, %v3034_v13  ;;  %v4123_v41 = vadd.f32 %v4122_v1, %v3082_v49  ;;  %v3125_v10 = vmul.f32 %v8374_v39, %v841_v54  ;;  %v890_v2 = vld [vmem:[%s5496_s28 + $0x1510] sm:$0xff]  ;;  %v843_v14 = vld [vmem:[%s5496_s28 + $0x1398] sm:$0xff]  ;;  %v757_v1 = vld [vmem:[%s5496_s28 + $0x10e8] sm:$0xff] }
 0x1a2   : > { %v3085_v32 = vmul.f32 %v5571_v46, %v801_v60  ;;  %v3172_v22 = vmul.f32 %v5509_v7, %v888_v45  ;;  %v3173_v4 = vmul.f32 %v5512_v8, %v889_v34  ;;  %v4165_v44 = vadd.f32 %v4164_v33, %v3123_v43  ;;  %v803_v29 = vld [vmem:[%s5496_s28 + $0x1258] sm:$0xff] }
 0x1a3   : > { %v4115_v42 = vadd.f32 %v4114_v36, %v3075_v23  ;;  %v4074_v13 = vadd.f32 %v4073_v48, %v3035_v0  ;;  %v4124_v49 = vadd.f32 %v4123_v41, %v3083_v37  ;;  %v3038_v54 = vmul.f32 %v8370_v11, %v754_v57  ;;  %v844_v0 = vld [vmem:[%s5496_s28 + $0x13a0] sm:$0xff]  ;;  %v758_v41 = vld [vmem:[%s5496_s28 + $0x10f0] sm:$0xff] }
 0x1a4   : > { %v3039_v60 = vmul.f32 %v8365_v17, %v755_v3  ;;  %v3126_v45 = vmul.f32 %v5607_v6, %v842_v62  ;;  %v3086_v34 = vmul.f32 %v5574_v47, %v802_v27  ;;  %v4166_v43 = vadd.f32 %v4165_v44, %v3124_v31  ;;  %v804_v36 = vld [vmem:[%s5496_s28 + $0x1260] sm:$0xff]  ;;  %v893_v44 = vld [vmem:[%s5496_s28 + $0x1528] sm:$0xff] }
 0x1a5   : > { %4116 = vadd.xlane.f32.xlu1 %v4115_v42  ;;  %v4075_v23 = vadd.f32 %v4074_v13, %v3036_v28  ;;  %v4125_v48 = vadd.f32 %v4124_v49, %v3084_v61  ;;  %v892_v37 = vld [vmem:[%s5496_s28 + $0x1520] sm:$0xff]  ;;  %v3174_v33 = vmul.f32 %v8355_v5, %v890_v2  ;;  %v3040_v57 = vmul.f32 %v8347_v20, %v756_v9  ;;  %v845_v42 = vld [vmem:[%s5496_s28 + $0x13a8] sm:$0xff] }
 0x1a6   : > { %v3127_v3 = vmul.f32 %v8338_v25, %v843_v14  ;;  %v3087_v62 = vmul.f32 %v5579_v50, %v803_v29  ;;  %v3175_v27 = vmul.f32 %v5527_v16, %v891_v24  ;;  %v4167_v31 = vadd.f32 %v4166_v43, %v3125_v10  ;;  %v805_v13 = vld [vmem:[%s5496_s28 + $0x1268] sm:$0xff]  ;;  %v806_v10 = vld [vmem:[%s5496_s28 + $0x1270] sm:$0xff] }
 0x1a7   : > { %v4076_v28 = vadd.f32 %v4075_v23, %v3037_v55  ;;  %v4126_v61 = vadd.f32 %v4125_v48, %v3085_v32  ;;  %v4217_v2 = vadd.f32 %v3173_v4, %v3172_v22  ;;  %v3041_v49 = vmul.f32 %v8348_v52, %v757_v1  ;;  %v846_v55 = vld [vmem:[%s5496_s28 + $0x13b0] sm:$0xff]  ;;  %v847_v4 = vld [vmem:[%s5496_s28 + $0x13b8] sm:$0xff] }
 0x1a8   : > { %v3128_v9 = vmul.f32 %v5614_v18, %v844_v0  ;;  %v3088_v14 = vmul.f32 %v5582_v51, %v804_v36  ;;  %v3176_v29 = vmul.f32 %v5535_v21, %v892_v37  ;;  %v4168_v23 = vadd.f32 %v4167_v31, %v3126_v45  ;;  %v894_v16 = vld [vmem:[%s5496_s28 + $0x1530] sm:$0xff]  ;;  %v855_v48 = vld [vmem:[%s5496_s28 + $0x13f8] sm:$0xff]  ;;  %v8407_v31 = vld [vmem:[#allocation26_spill] sm:$0xff] }
 0x1a9   : > { %v4077_v24 = vadd.f32 %v4076_v28, %v3038_v54  ;;  %v4127_v43 = vadd.f32 %v4126_v61, %v3086_v34  ;;  %v4218_v32 = vadd.f32 %v4217_v2, %v3174_v33  ;;  %v3042_v22 = vmul.f32 %v8366_v12, %v758_v41  ;;  %v807_v37 = vld [vmem:[%s5496_s28 + $0x1278] sm:$0xff]  ;;  %v808_v61 = vld [vmem:[%s5496_s28 + $0x1280] sm:$0xff] }
 0x1aa   : > { %v3129_v1 = vmul.f32 %v8371_v35, %v845_v42  ;;  %v3089_v0 = vmul.f32 %v5588_v56, %v805_v13  ;;  %v3177_v36 = vmul.f32 %v5544_v26, %v893_v44  ;;  %v4169_v45 = vadd.f32 %v4168_v23, %v3127_v3  ;;  %v895_v28 = vld [vmem:[%s5496_s28 + $0x1538] sm:$0xff]  ;;  %v848_v44 = vld [vmem:[%s5496_s28 + $0x13c0] sm:$0xff]  ;;  %v849_v3 = vld [vmem:[%s5496_s28 + $0x13c8] sm:$0xff] }
 0x1ab   : > { %v4078_v54 = vadd.f32 %v4077_v24, %v3039_v60  ;;  %v4128_v34 = vadd.f32 %v4127_v43, %v3087_v62  ;;  %v4219_v33 = vadd.f32 %v4218_v32, %v3175_v27  ;;  %v3043_v41 = vmul.f32 %v8362_v63, %v6992_v30  ;;  %v896_v23 = vld [vmem:[%s5496_s28 + $0x1540] sm:$0xff]  ;;  %v1130_v43 = vld [vmem:[%s5496_s28 + $0x1c90] sm:$0xff] }
 0x1ac   : > { %v3130_v42 = vmul.f32 %v8407_v31, %v846_v55  ;;  %v3090_v13 = vmul.f32 %v8368_v19, %v806_v10  ;;  %v3178_v2 = vmul.f32 %v8379_v53, %v894_v16  ;;  %v4170_v62 = vadd.f32 %v4169_v45, %v3128_v9  ;;  %v8409_v55 = vld [vmem:[#allocation27_spill] sm:$0xff]  ;;  %v809_v10 = vld [vmem:[%s5496_s28 + $0x1288] sm:$0xff]  ;;  %v856_v45 = vld [vmem:[%s5496_s28 + $0x1400] sm:$0xff] }
 0x1ad   : > { %v4079_v60 = vadd.f32 %v4078_v54, %v3040_v57  ;;  %v4129_v24 = vadd.f32 %v4128_v34, %v3088_v14  ;;  %v4220_v27 = vadd.f32 %v4219_v33, %v3176_v29  ;;  %v7061_v30 = vsel %vm1307_vm0, %v855_v48, 0.0  ;;  %v897_v14 = vld [vmem:[%s5496_s28 + $0x1548] sm:$0xff] }
 0x1ae   : > { %v3131_v32 = vmul.f32 %v8409_v55, %v847_v4  ;;  %v3091_v16 = vmul.f32 %v8353_v58, %v807_v37  ;;  %v3179_v57 = vmul.f32 %v8377_v38, %v895_v28  ;;  %v4171_v53 = vadd.f32 %v4170_v62, %v3129_v1  ;;  %v857_v34 = vld [vmem:[%s5496_s28 + $0x1408] sm:$0xff]  ;;  %v8410_v4 = vld [vmem:[#allocation29_spill] sm:$0xff]  ;;  %v810_v55 = vld [vmem:[%s5496_s28 + $0x1290] sm:$0xff] }
 0x1af   : > { %v4080_v54 = vadd.f32 %v4079_v60, %v3041_v49  ;;  %v4130_v9 = vadd.f32 %v4129_v24, %v3089_v0  ;;  %v4221_v29 = vadd.f32 %v4220_v27, %v3177_v36  ;;  %v3132_v48 = vmul.f32 %v8358_v15, %v848_v44  ;;  %v850_v1 = vld [vmem:[%s5496_s28 + $0x13d0] sm:$0xff]  ;;  %v851_v0 = vld [vmem:[%s5496_s28 + $0x13d8] sm:$0xff] }
 0x1b0   : > { %v3133_v33 = vmul.f32 %v8410_v4, %v849_v3  ;;  %v3092_v37 = vmul.f32 %v8351_v59, %v808_v61  ;;  %v3180_v28 = vmul.f32 %v5565_v40, %v896_v23  ;;  %v4172_v60 = vadd.f32 %v4171_v53, %v3130_v42  ;;  %v898_v62 = vld [vmem:[%s5496_s28 + $0x1550] sm:$0xff]  ;;  %v811_v27 = vld [vmem:[%s5496_s28 + $0x1298] sm:$0xff] }
 0x1b1   : > { %v4081_v49 = vadd.f32 %v4080_v54, %v3042_v22  ;;  %v4131_v36 = vadd.f32 %v4130_v9, %v3090_v13  ;;  %v4222_v24 = vadd.f32 %v4221_v29, %v3178_v2  ;;  %v3093_v44 = vmul.f32 %v8374_v39, %v809_v10  ;;  %v858_v4 = vld [vmem:[%s5496_s28 + $0x1410] sm:$0xff]  ;;  %v852_v54 = vld [vmem:[%s5496_s28 + $0x13e0] sm:$0xff]  ;;  %v899_v13 = vld [vmem:[%s5496_s28 + $0x1558] sm:$0xff] }
 0x1b2   : > { %v3181_v3 = vmul.f32 %v5571_v46, %v897_v14  ;;  %v3140_v61 = vmul.f32 %v5509_v7, %v856_v45  ;;  %v3141_v22 = vmul.f32 %v5512_v8, %v857_v34  ;;  %v4173_v53 = vadd.f32 %v4172_v60, %v3131_v32  ;;  %v859_v9 = vld [vmem:[%s5496_s28 + $0x1418] sm:$0xff]  ;;  %v812_v29 = vld [vmem:[%s5496_s28 + $0x12a0] sm:$0xff] }
 0x1b3   : > { %v4082_v23 = vadd.f32 %v4081_v49, %v3043_v41  ;;  %v4132_v42 = vadd.f32 %v4131_v36, %v3091_v16  ;;  %v4223_v2 = vadd.f32 %v4222_v24, %v3179_v57  ;;  %v3134_v10 = vmul.f32 %v8370_v11, %v850_v1  ;;  %v853_v41 = vld [vmem:[%s5496_s28 + $0x13e8] sm:$0xff]  ;;  %v900_v49 = vld [vmem:[%s5496_s28 + $0x1560] sm:$0xff] }
 0x1b4   : > { %v3135_v14 = vmul.f32 %v8365_v17, %v851_v0  ;;  %v3094_v45 = vmul.f32 %v5607_v6, %v810_v55  ;;  %v3182_v34 = vmul.f32 %v5574_v47, %v898_v62  ;;  %v4174_v32 = vadd.f32 %v4173_v53, %v3132_v48  ;;  %v860_v60 = vld [vmem:[%s5496_s28 + $0x1420] sm:$0xff]  ;;  %v813_v0 = vld [vmem:[%s5496_s28 + $0x12a8] sm:$0xff]  ;;  %v8411_v62 = vld [vmem:[#allocation12_spill] sm:$0xff] }
 0x1b5   : > { %4083 = vadd.xlane.f32.xlu0 %v4082_v23  ;;  %v4133_v16 = vadd.f32 %v4132_v42, %v3092_v37  ;;  %v4224_v57 = vadd.f32 %v4223_v2, %v3180_v28  ;;  %v3142_v36 = vmul.f32 %v8355_v5, %v858_v4  ;;  %v3136_v1 = vmul.f32 %v8347_v20, %v852_v54  ;;  %v854_v47 = vld [vmem:[%s5496_s28 + $0x13f0] sm:$0xff]  ;;  %v901_v53 = vld [vmem:[%s5496_s28 + $0x1568] sm:$0xff] }
 0x1b6   : > { %v3095_v24 = vmul.f32 %v8338_v25, %v811_v27  ;;  %v3183_v55 = vmul.f32 %v5579_v50, %v899_v13  ;;  %v3143_v23 = vmul.f32 %v8411_v62, %v859_v9  ;;  %v4175_v48 = vadd.f32 %v4174_v32, %v3133_v33  ;;  %v861_v42 = vld [vmem:[%s5496_s28 + $0x1428] sm:$0xff]  ;;  %v814_v62 = vld [vmem:[%s5496_s28 + $0x12b0] sm:$0xff] }
 0x1b7   : > { %v4134_v37 = vadd.f32 %v4133_v16, %v3093_v44  ;;  %v4225_v28 = vadd.f32 %v4224_v57, %v3181_v3  ;;  %v4184_v4 = vadd.f32 %v3141_v22, %v3140_v61  ;;  %v3137_v54 = vmul.f32 %v8348_v52, %v853_v41  ;;  %v902_v44 = vld [vmem:[%s5496_s28 + $0x1570] sm:$0xff]  ;;  %v815_v22 = vld [vmem:[%s5496_s28 + $0x12b8] sm:$0xff] }
 0x1b8   : > { %v3096_v2 = vmul.f32 %v5614_v18, %v812_v29  ;;  %v3184_v27 = vmul.f32 %v5582_v51, %v900_v49  ;;  %v3144_v13 = vmul.f32 %v5535_v21, %v860_v60  ;;  %v4176_v9 = vadd.f32 %v4175_v48, %v3134_v10  ;;  %v862_v3 = vld [vmem:[%s5496_s28 + $0x1430] sm:$0xff]  ;;  %v823_v57 = vld [vmem:[%s5496_s28 + $0x12f8] sm:$0xff] }
 0x1b9   : > { %v4135_v33 = vadd.f32 %v4134_v37, %v3094_v45  ;;  %v4226_v32 = vadd.f32 %v4225_v28, %v3182_v34  ;;  %v4185_v16 = vadd.f32 %v4184_v4, %v3142_v36  ;;  %v3138_v61 = vmul.f32 %v8366_v12, %v854_v47  ;;  %v903_v60 = vld [vmem:[%s5496_s28 + $0x1578] sm:$0xff]  ;;  %v816_v36 = vld [vmem:[%s5496_s28 + $0x12c0] sm:$0xff]  ;;  %v817_v4 = vld [vmem:[%s5496_s28 + $0x12c8] sm:$0xff] }
 0x1ba   : > { %v3097_v29 = vmul.f32 %v8371_v35, %v813_v0  ;;  %v3185_v41 = vmul.f32 %v5588_v56, %v901_v53  ;;  %v3145_v49 = vmul.f32 %v5544_v26, %v861_v42  ;;  %v4177_v10 = vadd.f32 %v4176_v9, %v3135_v14  ;;  %v863_v48 = vld [vmem:[%s5496_s28 + $0x1438] sm:$0xff]  ;;  %v8412_v28 = vld [vmem:[#allocation13_spill] sm:$0xff] }
 0x1bb   : > { %v4136_v45 = vadd.f32 %v4135_v33, %v3095_v24  ;;  %v4227_v34 = vadd.f32 %v4226_v32, %v3183_v55  ;;  %v4186_v37 = vadd.f32 %v4185_v16, %v3143_v23  ;;  %v3139_v47 = vmul.f32 %v8362_v63, %v7061_v30  ;;  %v904_v55 = vld [vmem:[%s5496_s28 + $0x1580] sm:$0xff] }
 0x1bc   : > { %v3098_v0 = vmul.f32 %v8407_v31, %v814_v62  ;;  %v3186_v53 = vmul.f32 %v8368_v19, %v902_v44  ;;  %v3146_v42 = vmul.f32 %v8412_v28, %v862_v3  ;;  %v4178_v14 = vadd.f32 %v4177_v10, %v3136_v1  ;;  %v864_v9 = vld [vmem:[%s5496_s28 + $0x1440] sm:$0xff]  ;;  %v8413_v62 = vld [vmem:[#allocation27_spill] sm:$0xff]  ;;  %v865_v3 = vld [vmem:[%s5496_s28 + $0x1448] sm:$0xff] }
 0x1bd   : > { %v4137_v24 = vadd.f32 %v4136_v45, %v3096_v2  ;;  %v4228_v23 = vadd.f32 %v4227_v34, %v3184_v27  ;;  %v4187_v33 = vadd.f32 %v4186_v37, %v3144_v13  ;;  %v7130_v30 = vsel %vm1307_vm0, %v823_v57, 0.0  ;;  %v905_v10 = vld [vmem:[%s5496_s28 + $0x1588] sm:$0xff]  ;;  %v952_v13 = vld [vmem:[%s5496_s28 + $0x1700] sm:$0xff]  ;;  %v818_v57 = vld [vmem:[%s5496_s28 + $0x12d0] sm:$0xff] }
 0x1be   : > { %v3099_v32 = vmul.f32 %v8413_v62, %v815_v22  ;;  %v3187_v44 = vmul.f32 %v8353_v58, %v903_v60  ;;  %v3147_v1 = vmul.f32 %v8377_v38, %v863_v48  ;;  %v4179_v2 = vadd.f32 %v4178_v14, %v3137_v54  ;;  %v953_v34 = vld [vmem:[%s5496_s28 + $0x1708] sm:$0xff]  ;;  %v8414_v37 = vld [vmem:[#allocation29_spill] sm:$0xff] }
 0x1bf   : > { %v4138_v16 = vadd.f32 %v4137_v24, %v3097_v29  ;;  %v4229_v27 = vadd.f32 %v4228_v23, %v3185_v41  ;;  %v4188_v45 = vadd.f32 %v4187_v33, %v3145_v49  ;;  %v3100_v22 = vmul.f32 %v8358_v15, %v816_v36  ;;  %v819_v29 = vld [vmem:[%s5496_s28 + $0x12d8] sm:$0xff]  ;;  %v906_v41 = vld [vmem:[%s5496_s28 + $0x1590] sm:$0xff] }
 0x1c0   : > { %v3101_v60 = vmul.f32 %v8414_v37, %v817_v4  ;;  %v3188_v58 = vmul.f32 %v8351_v59, %v904_v55  ;;  %v3148_v48 = vmul.f32 %v5565_v40, %v864_v9  ;;  %v4180_v54 = vadd.f32 %v4179_v2, %v3138_v61  ;;  %v866_v24 = vld [vmem:[%s5496_s28 + $0x1450] sm:$0xff]  ;;  %v867_v36 = vld [vmem:[%s5496_s28 + $0x1458] sm:$0xff] }
 0x1c1   : > { %v4139_v14 = vadd.f32 %v4138_v16, %v3098_v0  ;;  %v4230_v49 = vadd.f32 %v4229_v27, %v3186_v53  ;;  %v4189_v23 = vadd.f32 %v4188_v45, %v3146_v42  ;;  %v3189_v33 = vmul.f32 %v8374_v39, %v905_v10  ;;  %v954_v37 = vld [vmem:[%s5496_s28 + $0x1710] sm:$0xff]  ;;  %v820_v0 = vld [vmem:[%s5496_s28 + $0x12e0] sm:$0xff]  ;;  %v907_v53 = vld [vmem:[%s5496_s28 + $0x1598] sm:$0xff] }
 0x1c2   : > { %v3149_v4 = vmul.f32 %v5571_v46, %v865_v3  ;;  %v3236_v55 = vmul.f32 %v5509_v7, %v952_v13  ;;  %v3237_v61 = vmul.f32 %v5512_v8, %v953_v34  ;;  %v4181_v9 = vadd.f32 %v4180_v54, %v3139_v47  ;;  %v955_v27 = vld [vmem:[%s5496_s28 + $0x1718] sm:$0xff]  ;;  %v868_v13 = vld [vmem:[%s5496_s28 + $0x1460] sm:$0xff]  ;;  %v821_v47 = vld [vmem:[%s5496_s28 + $0x12e8] sm:$0xff] }
 0x1c3   : > { %v4140_v2 = vadd.f32 %v4139_v14, %v3099_v32  ;;  %v4231_v16 = vadd.f32 %v4230_v49, %v3187_v44  ;;  %v4190_v42 = vadd.f32 %v4189_v23, %v3147_v1  ;;  %v3102_v10 = vmul.f32 %v8370_v11, %v818_v57  ;;  %v8415_v7 = vld [vmem:[#allocation17_spill] sm:$0xff] }
 0x1c4   : > { %v3103_v3 = vmul.f32 %v8365_v17, %v819_v29  ;;  %v3190_v45 = vmul.f32 %v5607_v6, %v906_v41  ;;  %v3150_v34 = vmul.f32 %v8415_v7, %v866_v24  ;;  %4182 = vadd.xlane.f32.xlu1 %v4181_v9  ;;  %v908_v54 = vld [vmem:[%s5496_s28 + $0x15a0] sm:$0xff]  ;;  %v3238_v49 = vmul.f32 %v8355_v5, %v954_v37  ;;  %v869_v41 = vld [vmem:[%s5496_s28 + $0x1468] sm:$0xff]  ;;  %v8416_v24 = vld [vmem:[#allocation12_spill] sm:$0xff] }
 0x1c5   : > { %v4141_v32 = vadd.f32 %v4140_v2, %v3100_v22  ;;  %v4232_v44 = vadd.f32 %v4231_v16, %v3188_v58  ;;  %v4191_v1 = vadd.f32 %v4190_v42, %v3148_v48  ;;  %v956_v14 = vld [vmem:[%s5496_s28 + $0x1720] sm:$0xff]  ;;  %v3104_v57 = vmul.f32 %v8347_v20, %v820_v0  ;;  %v822_v7 = vld [vmem:[%s5496_s28 + $0x12f0] sm:$0xff]  ;;  %v909_v2 = vld [vmem:[%s5496_s28 + $0x15a8] sm:$0xff] }
 0x1c6   : > { %v3191_v29 = vmul.f32 %v8338_v25, %v907_v53  ;;  %v3151_v23 = vmul.f32 %v5579_v50, %v867_v36  ;;  %v3239_v9 = vmul.f32 %v8416_v24, %v955_v27  ;;  %v957_v16 = vld [vmem:[%s5496_s28 + $0x1728] sm:$0xff]  ;;  %v4283_v37 = vadd.f32 %v3237_v61, %v3236_v55  ;;  %v910_v24 = vld [vmem:[%s5496_s28 + $0x15b0] sm:$0xff] }
 0x1c7   : > { %v4142_v22 = vadd.f32 %v4141_v32, %v3101_v60  ;;  %v4233_v58 = vadd.f32 %v4232_v44, %v3189_v33  ;;  %v4192_v48 = vadd.f32 %v4191_v1, %v3149_v4  ;;  %v3105_v0 = vmul.f32 %v8348_v52, %v821_v47  ;;  %v870_v32 = vld [vmem:[%s5496_s28 + $0x1470] sm:$0xff]  ;;  %v871_v47 = vld [vmem:[%s5496_s28 + $0x1478] sm:$0xff] }
 0x1c8   : > { %v3192_v53 = vmul.f32 %v5614_v18, %v908_v54  ;;  %v3152_v42 = vmul.f32 %v5582_v51, %v868_v13  ;;  %v3240_v36 = vmul.f32 %v5535_v21, %v956_v14  ;;  %v958_v4 = vld [vmem:[%s5496_s28 + $0x1730] sm:$0xff]  ;;  %v4284_v44 = vadd.f32 %v4283_v37, %v3238_v49  ;;  %v911_v1 = vld [vmem:[%s5496_s28 + $0x15b8] sm:$0xff]  ;;  %v913_v37 = vld [vmem:[%s5496_s28 + $0x15c8] sm:$0xff] }
 0x1c9   : > { %v4143_v27 = vadd.f32 %v4142_v22, %v3102_v10  ;;  %v4234_v60 = vadd.f32 %v4233_v58, %v3190_v45  ;;  %v4193_v33 = vadd.f32 %v4192_v48, %v3150_v34  ;;  %v3106_v55 = vmul.f32 %v8366_v12, %v822_v7  ;;  %v919_v45 = vld [vmem:[%s5496_s28 + $0x15f8] sm:$0xff]  ;;  %v872_v58 = vld [vmem:[%s5496_s28 + $0x1480] sm:$0xff] }
 0x1ca   : > { %v3193_v61 = vmul.f32 %v8371_v35, %v909_v2  ;;  %v3153_v13 = vmul.f32 %v5588_v56, %v869_v41  ;;  %v3241_v54 = vmul.f32 %v5544_v26, %v957_v16  ;;  %v959_v22 = vld [vmem:[%s5496_s28 + $0x1738] sm:$0xff]  ;;  %v4285_v49 = vadd.f32 %v4284_v44, %v3239_v9  ;;  %v912_v16 = vld [vmem:[%s5496_s28 + $0x15c0] sm:$0xff] }
 0x1cb   : > { %v4144_v10 = vadd.f32 %v4143_v27, %v3103_v3  ;;  %v4235_v14 = vadd.f32 %v4234_v60, %v3191_v29  ;;  %v4194_v34 = vadd.f32 %v4193_v33, %v3151_v23  ;;  %v3107_v7 = vmul.f32 %v8362_v63, %v7130_v30  ;;  %v960_v27 = vld [vmem:[%s5496_s28 + $0x1740] sm:$0xff]  ;;  %v873_v60 = vld [vmem:[%s5496_s28 + $0x1488] sm:$0xff] }
 0x1cc   : > { %v3194_v2 = vmul.f32 %v8407_v31, %v910_v24  ;;  %v3154_v41 = vmul.f32 %v8368_v19, %v870_v32  ;;  %v3242_v48 = vmul.f32 %v8412_v28, %v958_v4  ;;  %v4286_v9 = vadd.f32 %v4285_v49, %v3240_v36  ;;  %v8417_v32 = vld [vmem:[#allocation20_spill] sm:$0xff]  ;;  %v874_v49 = vld [vmem:[%s5496_s28 + $0x1490] sm:$0xff] }
 0x1cd   : > { %v4145_v3 = vadd.f32 %v4144_v10, %v3104_v57  ;;  %v4236_v29 = vadd.f32 %v4235_v14, %v3192_v53  ;;  %v4195_v23 = vadd.f32 %v4194_v34, %v3152_v42  ;;  %v7199_v30 = vsel %vm1307_vm0, %v919_v45, 0.0  ;;  %v961_v42 = vld [vmem:[%s5496_s28 + $0x1748] sm:$0xff]  ;;  %v920_v10 = vld [vmem:[%s5496_s28 + $0x1600] sm:$0xff] }
 0x1ce   : > { %v3195_v24 = vmul.f32 %v8413_v62, %v911_v1  ;;  %v3155_v33 = vmul.f32 %v8417_v32, %v871_v47  ;;  %v3243_v57 = vmul.f32 %v8377_v38, %v959_v22  ;;  %v4287_v36 = vadd.f32 %v4286_v9, %v3241_v54  ;;  %v921_v14 = vld [vmem:[%s5496_s28 + $0x1608] sm:$0xff]  ;;  %v8418_v1 = vld [vmem:[#allocation29_spill] sm:$0xff]  ;;  %v875_v9 = vld [vmem:[%s5496_s28 + $0x1498] sm:$0xff] }
 0x1cf   : > { %v4146_v4 = vadd.f32 %v4145_v3, %v3105_v0  ;;  %v4237_v44 = vadd.f32 %v4236_v29, %v3193_v61  ;;  %v4196_v53 = vadd.f32 %v4195_v23, %v3153_v13  ;;  %v3196_v45 = vmul.f32 %v8358_v15, %v912_v16  ;;  %v914_v61 = vld [vmem:[%s5496_s28 + $0x15d0] sm:$0xff]  ;;  %v915_v13 = vld [vmem:[%s5496_s28 + $0x15d8] sm:$0xff] }
 0x1d0   : > { %v3197_v34 = vmul.f32 %v8418_v1, %v913_v37  ;;  %v3156_v47 = vmul.f32 %v8351_v59, %v872_v58  ;;  %v3244_v22 = vmul.f32 %v5565_v40, %v960_v27  ;;  %v962_v29 = vld [vmem:[%s5496_s28 + $0x1750] sm:$0xff]  ;;  %v4288_v23 = vadd.f32 %v4287_v36, %v3242_v48  ;;  %v8419_v58 = vld [vmem:[#allocation9_spill] sm:$0xff] }
 0x1d1   : > { %v4147_v0 = vadd.f32 %v4146_v4, %v3106_v55  ;;  %v4238_v3 = vadd.f32 %v4237_v44, %v3194_v2  ;;  %v4197_v54 = vadd.f32 %v4196_v53, %v3154_v41  ;;  %v3157_v16 = vmul.f32 %v8374_v39, %v873_v60  ;;  %v922_v1 = vld [vmem:[%s5496_s28 + $0x1610] sm:$0xff]  ;;  %v916_v4 = vld [vmem:[%s5496_s28 + $0x15e0] sm:$0xff]  ;;  %v963_v44 = vld [vmem:[%s5496_s28 + $0x1758] sm:$0xff] }
 0x1d2   : > { %v3245_v37 = vmul.f32 %v5571_v46, %v961_v42  ;;  %v3204_v59 = vmul.f32 %v8419_v58, %v920_v10  ;;  %v3205_v55 = vmul.f32 %v5512_v8, %v921_v14  ;;  %v4289_v48 = vadd.f32 %v4288_v23, %v3243_v57  ;;  %v923_v53 = vld [vmem:[%s5496_s28 + $0x1618] sm:$0xff]  ;;  %v876_v36 = vld [vmem:[%s5496_s28 + $0x14a0] sm:$0xff] }
 0x1d3   : > { %v4148_v27 = vadd.f32 %v4147_v0, %v3107_v7  ;;  %v4239_v2 = vadd.f32 %v4238_v3, %v3195_v24  ;;  %v4198_v41 = vadd.f32 %v4197_v54, %v3155_v33  ;;  %v3198_v60 = vmul.f32 %v8370_v11, %v914_v61  ;;  %v8420_v58 = vld [vmem:[#allocation17_spill] sm:$0xff]  ;;  %v917_v7 = vld [vmem:[%s5496_s28 + $0x15e8] sm:$0xff] }
 0x1d4   : > { %v3199_v42 = vmul.f32 %v8365_v17, %v915_v13  ;;  %v3158_v10 = vmul.f32 %v5607_v6, %v874_v49  ;;  %v3246_v14 = vmul.f32 %v8420_v58, %v962_v29  ;;  %v964_v0 = vld [vmem:[%s5496_s28 + $0x1760] sm:$0xff]  ;;  %v4290_v57 = vadd.f32 %v4289_v48, %v3244_v22  ;;  %v877_v13 = vld [vmem:[%s5496_s28 + $0x14a8] sm:$0xff]  ;;  %v8421_v29 = vld [vmem:[#allocation12_spill] sm:$0xff] }
 0x1d5   : > { %4149 = vadd.xlane.f32.xlu0 %v4148_v27  ;;  %v4240_v24 = vadd.f32 %v4239_v2, %v3196_v45  ;;  %v4199_v33 = vadd.f32 %v4198_v41, %v3156_v47  ;;  %v924_v3 = vld [vmem:[%s5496_s28 + $0x1620] sm:$0xff]  ;;  %v3206_v54 = vmul.f32 %v8355_v5, %v922_v1  ;;  %v3200_v61 = vmul.f32 %v8347_v20, %v916_v4  ;;  %v918_v58 = vld [vmem:[%s5496_s28 + $0x15f0] sm:$0xff]  ;;  %v965_v2 = vld [vmem:[%s5496_s28 + $0x1768] sm:$0xff] }
 0x1d6   : > { %v3159_v23 = vmul.f32 %v8338_v25, %v875_v9  ;;  %v3247_v49 = vmul.f32 %v5579_v50, %v963_v44  ;;  %v3207_v27 = vmul.f32 %v8421_v29, %v923_v53  ;;  %v4291_v22 = vadd.f32 %v4290_v57, %v3245_v37  ;;  %v925_v41 = vld [vmem:[%s5496_s28 + $0x1628] sm:$0xff]  ;;  %v878_v29 = vld [vmem:[%s5496_s28 + $0x14b0] sm:$0xff]  ;;  %v887_v57 = vld [vmem:[%s5496_s28 + $0x14f8] sm:$0xff] }
 0x1d7   : > { %v4241_v45 = vadd.f32 %v4240_v24, %v3197_v34  ;;  %v4200_v47 = vadd.f32 %v4199_v33, %v3157_v16  ;;  %v4250_v1 = vadd.f32 %v3205_v55, %v3204_v59  ;;  %v3201_v4 = vmul.f32 %v8348_v52, %v917_v7  ;;  %v966_v16 = vld [vmem:[%s5496_s28 + $0x1770] sm:$0xff]  ;;  %v879_v55 = vld [vmem:[%s5496_s28 + $0x14b8] sm:$0xff] }
 0x1d8   : > { %v3160_v48 = vmul.f32 %v5614_v18, %v876_v36  ;;  %v3248_v9 = vmul.f32 %v5582_v51, %v964_v0  ;;  %v3208_v44 = vmul.f32 %v5535_v21, %v924_v3  ;;  %v4292_v24 = vadd.f32 %v4291_v22, %v3246_v14  ;;  %v926_v37 = vld [vmem:[%s5496_s28 + $0x1630] sm:$0xff]  ;;  %v967_v3 = vld [vmem:[%s5496_s28 + $0x1778] sm:$0xff] }
 0x1d9   : > { %v4242_v53 = vadd.f32 %v4241_v45, %v3198_v60  ;;  %v4201_v34 = vadd.f32 %v4200_v47, %v3158_v10  ;;  %v4251_v33 = vadd.f32 %v4250_v1, %v3206_v54  ;;  %v3202_v59 = vmul.f32 %v8366_v12, %v918_v58  ;;  %v927_v45 = vld [vmem:[%s5496_s28 + $0x1638] sm:$0xff]  ;;  %v880_v54 = vld [vmem:[%s5496_s28 + $0x14c0] sm:$0xff] }
 0x1da   : > { %v3161_v36 = vmul.f32 %v8371_v35, %v877_v13  ;;  %v3249_v7 = vmul.f32 %v5588_v56, %v965_v2  ;;  %v3209_v0 = vmul.f32 %v5544_v26, %v925_v41  ;;  %v4293_v14 = vadd.f32 %v4292_v24, %v3247_v49  ;;  %v881_v41 = vld [vmem:[%s5496_s28 + $0x14c8] sm:$0xff]  ;;  %v968_v49 = vld [vmem:[%s5496_s28 + $0x1780] sm:$0xff] }
 0x1db   : > { %v4243_v60 = vadd.f32 %v4242_v53, %v3199_v42  ;;  %v4202_v10 = vadd.f32 %v4201_v34, %v3159_v23  ;;  %v4252_v47 = vadd.f32 %v4251_v33, %v3207_v27  ;;  %v3203_v58 = vmul.f32 %v8362_v63, %v7199_v30  ;;  %v928_v1 = vld [vmem:[%s5496_s28 + $0x1640] sm:$0xff] }
 0x1dc   : > { %v3162_v13 = vmul.f32 %v8407_v31, %v878_v29  ;;  %v3250_v2 = vmul.f32 %v8368_v19, %v966_v16  ;;  %v3210_v22 = vmul.f32 %v8412_v28, %v926_v37  ;;  %v4294_v27 = vadd.f32 %v4293_v14, %v3248_v9  ;;  %v929_v16 = vld [vmem:[%s5496_s28 + $0x1648] sm:$0xff]  ;;  %v8423_v14 = vld [vmem:[#allocation21_spill] sm:$0xff] }
 0x1dd   : > { %v4244_v42 = vadd.f32 %v4243_v60, %v3200_v61  ;;  %v4203_v23 = vadd.f32 %v4202_v10, %v3160_v48  ;;  %v4253_v53 = vadd.f32 %v4252_v47, %v3208_v44  ;;  %v7268_v30 = vsel %vm1307_vm0, %v887_v57, 0.0  ;;  %v969_v37 = vld [vmem:[%s5496_s28 + $0x1788] sm:$0xff]  ;;  %v1016_v44 = vld [vmem:[%s5496_s28 + $0x1900] sm:$0xff]  ;;  %v882_v57 = vld [vmem:[%s5496_s28 + $0x14d0] sm:$0xff] }
 0x1de   : > { %v3163_v29 = vmul.f32 %v8413_v62, %v879_v55  ;;  %v3251_v34 = vmul.f32 %v8417_v32, %v967_v3  ;;  %v3211_v61 = vmul.f32 %v8377_v38, %v927_v45  ;;  %v4295_v9 = vadd.f32 %v4294_v27, %v3249_v7  ;;  %v1017_v60 = vld [vmem:[%s5496_s28 + $0x1908] sm:$0xff]  ;;  %v8422_v10 = vld [vmem:[#allocation29_spill] sm:$0xff]  ;;  %v970_v7 = vld [vmem:[%s5496_s28 + $0x1790] sm:$0xff] }
 0x1df   : > { %v4245_v48 = vadd.f32 %v4244_v42, %v3201_v4  ;;  %v4204_v24 = vadd.f32 %v4203_v23, %v3161_v36  ;;  %v4254_v33 = vadd.f32 %v4253_v53, %v3209_v0  ;;  %v3164_v55 = vmul.f32 %v8358_v15, %v880_v54  ;;  %v883_v36 = vld [vmem:[%s5496_s28 + $0x14d8] sm:$0xff]  ;;  %v930_v23 = vld [vmem:[%s5496_s28 + $0x1650] sm:$0xff] }
 0x1e0   : > { %v3165_v3 = vmul.f32 %v8422_v10, %v881_v41  ;;  %v3252_v47 = vmul.f32 %v8423_v14, %v968_v49  ;;  %v3212_v45 = vmul.f32 %v5565_v40, %v928_v1  ;;  %v4296_v0 = vadd.f32 %v4295_v9, %v3250_v2  ;;  %v931_v54 = vld [vmem:[%s5496_s28 + $0x1658] sm:$0xff]  ;;  %v1018_v10 = vld [vmem:[%s5496_s28 + $0x1910] sm:$0xff]  ;;  %v8424_v49 = vld [vmem:[#allocation9_spill] sm:$0xff] }
 0x1e1   : > { %v4246_v4 = vadd.f32 %v4245_v48, %v3202_v59  ;;  %v4205_v42 = vadd.f32 %v4204_v24, %v3162_v13  ;;  %v4255_v27 = vadd.f32 %v4254_v33, %v3210_v22  ;;  %v3253_v53 = vmul.f32 %v8374_v39, %v969_v37  ;;  %v884_v13 = vld [vmem:[%s5496_s28 + $0x14e0] sm:$0xff]  ;;  %v971_v2 = vld [vmem:[%s5496_s28 + $0x1798] sm:$0xff] }
 0x1e2   : > { %v3213_v41 = vmul.f32 %v5571_v46, %v929_v16  ;;  %v3300_v14 = vmul.f32 %v8424_v49, %v1016_v44  ;;  %v3301_v59 = vmul.f32 %v5512_v8, %v1017_v60  ;;  %v4297_v24 = vadd.f32 %v4296_v0, %v3251_v34  ;;  %v1019_v9 = vld [vmem:[%s5496_s28 + $0x1918] sm:$0xff]  ;;  %v932_v44 = vld [vmem:[%s5496_s28 + $0x1660] sm:$0xff] }
 0x1e3   : > { %v4247_v1 = vadd.f32 %v4246_v4, %v3203_v58  ;;  %v4206_v48 = vadd.f32 %v4205_v42, %v3163_v29  ;;  %v4256_v22 = vadd.f32 %v4255_v27, %v3211_v61  ;;  %v3166_v37 = vmul.f32 %v8370_v11, %v882_v57  ;;  %v8425_v49 = vld [vmem:[#allocation17_spill] sm:$0xff]  ;;  %v885_v58 = vld [vmem:[%s5496_s28 + $0x14e8] sm:$0xff] }
 0x1e4   : > { %v3167_v16 = vmul.f32 %v8365_v17, %v883_v36  ;;  %v3254_v33 = vmul.f32 %v5607_v6, %v970_v7  ;;  %v3214_v60 = vmul.f32 %v8425_v49, %v930_v23  ;;  %v972_v4 = vld [vmem:[%s5496_s28 + $0x17a0] sm:$0xff]  ;;  %v4298_v34 = vadd.f32 %v4297_v24, %v3252_v47  ;;  %v933_v7 = vld [vmem:[%s5496_s28 + $0x1668] sm:$0xff]  ;;  %v8426_v23 = vld [vmem:[#allocation12_spill] sm:$0xff] }
 0x1e5   : > { %4248 = vadd.xlane.f32.xlu1 %v4247_v1  ;;  %v4207_v29 = vadd.f32 %v4206_v48, %v3164_v55  ;;  %v4257_v61 = vadd.f32 %v4256_v22, %v3212_v45  ;;  %v1020_v42 = vld [vmem:[%s5496_s28 + $0x1920] sm:$0xff]  ;;  %v3302_v0 = vmul.f32 %v8355_v5, %v1018_v10  ;;  %v3168_v57 = vmul.f32 %v8347_v20, %v884_v13  ;;  %v886_v49 = vld [vmem:[%s5496_s28 + $0x14f0] sm:$0xff]  ;;  %v973_v48 = vld [vmem:[%s5496_s28 + $0x17a8] sm:$0xff] }
 0x1e6   : > { %v3255_v36 = vmul.f32 %v8338_v25, %v971_v2  ;;  %v3215_v27 = vmul.f32 %v5579_v50, %v931_v54  ;;  %v3303_v1 = vmul.f32 %v8426_v23, %v1019_v9  ;;  %v4299_v47 = vadd.f32 %v4298_v34, %v3253_v53  ;;  %v1021_v24 = vld [vmem:[%s5496_s28 + $0x1928] sm:$0xff]  ;;  %v974_v23 = vld [vmem:[%s5496_s28 + $0x17b0] sm:$0xff] }
 0x1e7   : > { %v4208_v55 = vadd.f32 %v4207_v29, %v3165_v3  ;;  %v4258_v45 = vadd.f32 %v4257_v61, %v3213_v41  ;;  %v4349_v10 = vadd.f32 %v3301_v59, %v3300_v14  ;;  %v3169_v13 = vmul.f32 %v8348_v52, %v885_v58  ;;  %v934_v29 = vld [vmem:[%s5496_s28 + $0x1670] sm:$0xff]  ;;  %v935_v58 = vld [vmem:[%s5496_s28 + $0x1678] sm:$0xff] }
 0x1e8   : > { %v3256_v2 = vmul.f32 %v5614_v18, %v972_v4  ;;  %v3216_v22 = vmul.f32 %v5582_v51, %v932_v44  ;;  %v3304_v54 = vmul.f32 %v5535_v21, %v1020_v42  ;;  %v4300_v3 = vadd.f32 %v4299_v47, %v3254_v33  ;;  %v1022_v41 = vld [vmem:[%s5496_s28 + $0x1930] sm:$0xff]  ;;  %v975_v61 = vld [vmem:[%s5496_s28 + $0x17b8] sm:$0xff]  ;;  %v936_v47 = vld [vmem:[%s5496_s28 + $0x1680] sm:$0xff] }
 0x1e9   : > { %v4209_v9 = vadd.f32 %v4208_v55, %v3166_v37  ;;  %v4259_v53 = vadd.f32 %v4258_v45, %v3214_v60  ;;  %v4350_v34 = vadd.f32 %v4349_v10, %v3302_v0  ;;  %v3170_v14 = vmul.f32 %v8366_v12, %v886_v49  ;;  %v983_v33 = vld [vmem:[%s5496_s28 + $0x17f8] sm:$0xff]  ;;  %v977_v10 = vld [vmem:[%s5496_s28 + $0x17c8] sm:$0xff] }
 0x1ea   : > { %v3257_v59 = vmul.f32 %v8371_v35, %v973_v48  ;;  %v3217_v44 = vmul.f32 %v5588_v56, %v933_v7  ;;  %v3305_v4 = vmul.f32 %v5544_v26, %v1021_v24  ;;  %v4301_v42 = vadd.f32 %v4300_v3, %v3255_v36  ;;  %v1023_v55 = vld [vmem:[%s5496_s28 + $0x1938] sm:$0xff]  ;;  %v976_v24 = vld [vmem:[%s5496_s28 + $0x17c0] sm:$0xff]  ;;  %v937_v3 = vld [vmem:[%s5496_s28 + $0x1688] sm:$0xff] }
 0x1eb   : > { %v4210_v37 = vadd.f32 %v4209_v9, %v3167_v16  ;;  %v4260_v60 = vadd.f32 %v4259_v53, %v3215_v27  ;;  %v4351_v0 = vadd.f32 %v4350_v34, %v3303_v1  ;;  %v3171_v49 = vmul.f32 %v8362_v63, %v7268_v30  ;;  %v1024_v9 = vld [vmem:[%s5496_s28 + $0x1940] sm:$0xff] }
 0x1ec   : > { %v3258_v48 = vmul.f32 %v8407_v31, %v974_v23  ;;  %v3218_v7 = vmul.f32 %v8368_v19, %v934_v29  ;;  %v3306_v45 = vmul.f32 %v8412_v28, %v1022_v41  ;;  %v4302_v36 = vadd.f32 %v4301_v42, %v3256_v2  ;;  %v984_v34 = vld [vmem:[%s5496_s28 + $0x1800] sm:$0xff] }
 0x1ed   : > { %v4211_v16 = vadd.f32 %v4210_v37, %v3168_v57  ;;  %v4261_v27 = vadd.f32 %v4260_v60, %v3216_v22  ;;  %v4352_v1 = vadd.f32 %v4351_v0, %v3304_v54  ;;  %v7337_v30 = vsel %vm1307_vm0, %v983_v33, 0.0  ;;  %v1025_v22 = vld [vmem:[%s5496_s28 + $0x1948] sm:$0xff]  ;;  %v938_v60 = vld [vmem:[%s5496_s28 + $0x1690] sm:$0xff]  ;;  %v8428_v0 = vld [vmem:[#allocation21_spill] sm:$0xff] }
 0x1ee   : > { %v3259_v23 = vmul.f32 %v8413_v62, %v975_v61  ;;  %v3219_v29 = vmul.f32 %v8417_v32, %v935_v58  ;;  %v3307_v57 = vmul.f32 %v8377_v38, %v1023_v55  ;;  %v4303_v41 = vadd.f32 %v4302_v36, %v3257_v59  ;;  %v985_v37 = vld [vmem:[%s5496_s28 + $0x1808] sm:$0xff]  ;;  %v8427_v61 = vld [vmem:[#allocation29_spill] sm:$0xff]  ;;  %v978_v59 = vld [vmem:[%s5496_s28 + $0x17d0] sm:$0xff] }
 0x1ef   : > { %v4212_v53 = vadd.f32 %v4211_v16, %v3169_v13  ;;  %v4262_v2 = vadd.f32 %v4261_v27, %v3217_v44  ;;  %v4353_v54 = vadd.f32 %v4352_v1, %v3305_v4  ;;  %v3260_v33 = vmul.f32 %v8358_v15, %v976_v24  ;;  %v979_v44 = vld [vmem:[%s5496_s28 + $0x17d8] sm:$0xff]  ;;  %v1026_v36 = vld [vmem:[%s5496_s28 + $0x1950] sm:$0xff] }
 0x1f0   : > { %v3261_v42 = vmul.f32 %v8427_v61, %v977_v10  ;;  %v3220_v58 = vmul.f32 %v8428_v0, %v936_v47  ;;  %v3308_v55 = vmul.f32 %v5565_v40, %v1024_v9  ;;  %v4304_v16 = vadd.f32 %v4303_v41, %v3258_v48  ;;  %v939_v1 = vld [vmem:[%s5496_s28 + $0x1698] sm:$0xff]  ;;  %v986_v61 = vld [vmem:[%s5496_s28 + $0x1810] sm:$0xff]  ;;  %v8429_v47 = vld [vmem:[#allocation9_spill] sm:$0xff] }
 0x1f1   : > { %v4213_v13 = vadd.f32 %v4212_v53, %v3170_v14  ;;  %v4263_v4 = vadd.f32 %v4262_v2, %v3218_v7  ;;  %v4354_v27 = vadd.f32 %v4353_v54, %v3306_v45  ;;  %v3221_v24 = vmul.f32 %v8374_v39, %v937_v3  ;;  %v980_v53 = vld [vmem:[%s5496_s28 + $0x17e0] sm:$0xff]  ;;  %v1027_v41 = vld [vmem:[%s5496_s28 + $0x1958] sm:$0xff] }
 0x1f2   : > { %v3309_v10 = vmul.f32 %v5571_v46, %v1025_v22  ;;  %v3268_v0 = vmul.f32 %v8429_v47, %v984_v34  ;;  %v3269_v14 = vmul.f32 %v5512_v8, %v985_v37  ;;  %v4305_v48 = vadd.f32 %v4304_v16, %v3259_v23  ;;  %v987_v2 = vld [vmem:[%s5496_s28 + $0x1818] sm:$0xff]  ;;  %v940_v54 = vld [vmem:[%s5496_s28 + $0x16a0] sm:$0xff] }
 0x1f3   : > { %v4214_v9 = vadd.f32 %v4213_v13, %v3171_v49  ;;  %v4264_v7 = vadd.f32 %v4263_v4, %v3219_v29  ;;  %v4355_v45 = vadd.f32 %v4354_v27, %v3307_v57  ;;  %v3262_v3 = vmul.f32 %v8370_v11, %v978_v59  ;;  %v8430_v47 = vld [vmem:[#allocation17_spill] sm:$0xff]  ;;  %v981_v49 = vld [vmem:[%s5496_s28 + $0x17e8] sm:$0xff] }
 0x1f4   : > { %v3263_v22 = vmul.f32 %v8365_v17, %v979_v44  ;;  %v3222_v34 = vmul.f32 %v5607_v6, %v938_v60  ;;  %v3310_v37 = vmul.f32 %v8430_v47, %v1026_v36  ;;  %v4306_v23 = vadd.f32 %v4305_v48, %v3260_v33  ;;  %v1028_v13 = vld [vmem:[%s5496_s28 + $0x1960] sm:$0xff]  ;;  %v941_v44 = vld [vmem:[%s5496_s28 + $0x16a8] sm:$0xff]  ;;  %v8431_v36 = vld [vmem:[#allocation12_spill] sm:$0xff] }
 0x1f5   : > { %4215 = vadd.xlane.f32.xlu0 %v4214_v9  ;;  %v4265_v29 = vadd.f32 %v4264_v7, %v3220_v58  ;;  %v4356_v57 = vadd.f32 %v4355_v45, %v3308_v55  ;;  %v988_v16 = vld [vmem:[%s5496_s28 + $0x1820] sm:$0xff]  ;;  %v3270_v4 = vmul.f32 %v8355_v5, %v986_v61  ;;  %v3264_v59 = vmul.f32 %v8347_v20, %v980_v53  ;;  %v982_v47 = vld [vmem:[%s5496_s28 + $0x17f0] sm:$0xff]  ;;  %v1029_v48 = vld [vmem:[%s5496_s28 + $0x1968] sm:$0xff] }
 0x1f6   : > { %v3223_v27 = vmul.f32 %v8338_v25, %v939_v1  ;;  %v3311_v60 = vmul.f32 %v5579_v50, %v1027_v41  ;;  %v3271_v9 = vmul.f32 %v8431_v36, %v987_v2  ;;  %v4307_v33 = vadd.f32 %v4306_v23, %v3261_v42  ;;  %v989_v7 = vld [vmem:[%s5496_s28 + $0x1828] sm:$0xff]  ;;  %v942_v36 = vld [vmem:[%s5496_s28 + $0x16b0] sm:$0xff] }
 0x1f7   : > { %v4266_v58 = vadd.f32 %v4265_v29, %v3221_v24  ;;  %v4357_v55 = vadd.f32 %v4356_v57, %v3309_v10  ;;  %v4316_v61 = vadd.f32 %v3269_v14, %v3268_v0  ;;  %v3265_v53 = vmul.f32 %v8348_v52, %v981_v49  ;;  %v1030_v24 = vld [vmem:[%s5496_s28 + $0x1970] sm:$0xff]  ;;  %v943_v14 = vld [vmem:[%s5496_s28 + $0x16b8] sm:$0xff] }
 0x1f8   : > { %v3224_v45 = vmul.f32 %v5614_v18, %v940_v54  ;;  %v3312_v1 = vmul.f32 %v5582_v51, %v1028_v13  ;;  %v3272_v41 = vmul.f32 %v5535_v21, %v988_v16  ;;  %v4308_v2 = vadd.f32 %v4307_v33, %v3262_v3  ;;  %v990_v10 = vld [vmem:[%s5496_s28 + $0x1830] sm:$0xff]  ;;  %v951_v57 = vld [vmem:[%s5496_s28 + $0x16f8] sm:$0xff] }
 0x1f9   : > { %v4267_v42 = vadd.f32 %v4266_v58, %v3222_v34  ;;  %v4358_v23 = vadd.f32 %v4357_v55, %v3310_v37  ;;  %v4317_v29 = vadd.f32 %v4316_v61, %v3270_v4  ;;  %v3266_v0 = vmul.f32 %v8366_v12, %v982_v47  ;;  %v1031_v16 = vld [vmem:[%s5496_s28 + $0x1978] sm:$0xff]  ;;  %v944_v4 = vld [vmem:[%s5496_s28 + $0x16c0] sm:$0xff] }
 0x1fa   : > { %v3225_v54 = vmul.f32 %v8371_v35, %v941_v44  ;;  %v3313_v49 = vmul.f32 %v5588_v56, %v1029_v48  ;;  %v3273_v13 = vmul.f32 %v5544_v26, %v989_v7  ;;  %v4309_v3 = vadd.f32 %v4308_v2, %v3263_v22  ;;  %v991_v33 = vld [vmem:[%s5496_s28 + $0x1838] sm:$0xff]  ;;  %v945_v7 = vld [vmem:[%s5496_s28 + $0x16c8] sm:$0xff]  ;;  %v992_v61 = vld [vmem:[%s5496_s28 + $0x1840] sm:$0xff] }
 0x1fb   : > { %v4268_v34 = vadd.f32 %v4267_v42, %v3223_v27  ;;  %v4359_v37 = vadd.f32 %v4358_v23, %v3311_v60  ;;  %v4318_v58 = vadd.f32 %v4317_v29, %v3271_v9  ;;  %v3267_v47 = vmul.f32 %v8362_v63, %v7337_v30  ;;  %v1032_v60 = vld [vmem:[%s5496_s28 + $0x1980] sm:$0xff] }
 0x1fc   : > { %v3226_v44 = vmul.f32 %v8407_v31, %v942_v36  ;;  %v3314_v48 = vmul.f32 %v8368_v19, %v1030_v24  ;;  %v3274_v55 = vmul.f32 %v8412_v28, %v990_v10  ;;  %v4310_v22 = vadd.f32 %v4309_v3, %v3264_v59  ;;  %v993_v24 = vld [vmem:[%s5496_s28 + $0x1848] sm:$0xff] }
 0x1fd   : > { %v4269_v27 = vadd.f32 %v4268_v34, %v3224_v45  ;;  %v4360_v9 = vadd.f32 %v4359_v37, %v3312_v1  ;;  %v4319_v2 = vadd.f32 %v4318_v58, %v3272_v41  ;;  %v7406_v30 = vsel %vm1307_vm0, %v951_v57, 0.0  ;;  %v1033_v10 = vld [vmem:[%s5496_s28 + $0x1988] sm:$0xff]  ;;  %v1080_v41 = vld [vmem:[%s5496_s28 + $0x1b00] sm:$0xff]  ;;  %v946_v57 = vld [vmem:[%s5496_s28 + $0x16d0] sm:$0xff] }
 0x1fe   : > { %v3227_v36 = vmul.f32 %v8413_v62, %v943_v14  ;;  %v3315_v42 = vmul.f32 %v8417_v32, %v1031_v16  ;;  %v3275_v59 = vmul.f32 %v8377_v38, %v991_v33  ;;  %v4311_v45 = vadd.f32 %v4310_v22, %v3265_v53  ;;  %v1081_v3 = vld [vmem:[%s5496_s28 + $0x1b08] sm:$0xff]  ;;  %v8432_v34 = vld [vmem:[#allocation29_spill] sm:$0xff] }
 0x1ff   : > { %v4270_v23 = vadd.f32 %v4269_v27, %v3225_v54  ;;  %v4361_v1 = vadd.f32 %v4360_v9, %v3313_v49  ;;  %v4320_v29 = vadd.f32 %v4319_v2, %v3273_v13  ;;  %v3228_v14 = vmul.f32 %v8358_v15, %v944_v4  ;;  %v8433_v37 = vld [vmem:[#allocation21_spill] sm:$0xff]  ;;  %v947_v54 = vld [vmem:[%s5496_s28 + $0x16d8] sm:$0xff]  ;;  %v1034_v49 = vld [vmem:[%s5496_s28 + $0x1990] sm:$0xff] }
 0x200   : > { %v3229_v16 = vmul.f32 %v8432_v34, %v945_v7  ;;  %v3316_v58 = vmul.f32 %v8433_v37, %v1032_v60  ;;  %v3276_v33 = vmul.f32 %v5565_v40, %v992_v61  ;;  %v4312_v53 = vadd.f32 %v4311_v45, %v3266_v0  ;;  %v994_v27 = vld [vmem:[%s5496_s28 + $0x1850] sm:$0xff]  ;;  %v995_v4 = vld [vmem:[%s5496_s28 + $0x1858] sm:$0xff]  ;;  %v8434_v60 = vld [vmem:[#allocation9_spill] sm:$0xff] }
 0x201   : > { %v4271_v22 = vadd.f32 %v4270_v23, %v3226_v44  ;;  %v4362_v13 = vadd.f32 %v4361_v1, %v3314_v48  ;;  %v4321_v9 = vadd.f32 %v4320_v29, %v3274_v55  ;;  %v3317_v2 = vmul.f32 %v8374_v39, %v1033_v10  ;;  %v1082_v34 = vld [vmem:[%s5496_s28 + $0x1b10] sm:$0xff]  ;;  %v948_v44 = vld [vmem:[%s5496_s28 + $0x16e0] sm:$0xff]  ;;  %v1035_v48 = vld [vmem:[%s5496_s28 + $0x1998] sm:$0xff] }
 0x202   : > { %v3277_v7 = vmul.f32 %v5571_v46, %v993_v24  ;;  %v3364_v37 = vmul.f32 %v8434_v60, %v1080_v41  ;;  %v3365_v0 = vmul.f32 %v5512_v8, %v1081_v3  ;;  %v4313_v61 = vadd.f32 %v4312_v53, %v3267_v47  ;;  %v1083_v1 = vld [vmem:[%s5496_s28 + $0x1b18] sm:$0xff]  ;;  %v996_v41 = vld [vmem:[%s5496_s28 + $0x1860] sm:$0xff]  ;;  %v949_v47 = vld [vmem:[%s5496_s28 + $0x16e8] sm:$0xff] }
 0x203   : > { %v4272_v45 = vadd.f32 %v4271_v22, %v3227_v36  ;;  %v4363_v23 = vadd.f32 %v4362_v13, %v3315_v42  ;;  %v4322_v55 = vadd.f32 %v4321_v9, %v3275_v59  ;;  %v3230_v10 = vmul.f32 %v8370_v11, %v946_v57  ;;  %v8435_v60 = vld [vmem:[#allocation17_spill] sm:$0xff] }
 0x204   : > { %v3231_v24 = vmul.f32 %v8365_v17, %v947_v54  ;;  %v3318_v29 = vmul.f32 %v5607_v6, %v1034_v49  ;;  %v3278_v3 = vmul.f32 %v8435_v60, %v994_v27  ;;  %4314 = vadd.xlane.f32.xlu1 %v4313_v61  ;;  %v1036_v53 = vld [vmem:[%s5496_s28 + $0x19a0] sm:$0xff]  ;;  %v3366_v13 = vmul.f32 %v8355_v5, %v1082_v34  ;;  %v997_v49 = vld [vmem:[%s5496_s28 + $0x1868] sm:$0xff]  ;;  %v8436_v27 = vld [vmem:[#allocation12_spill] sm:$0xff] }
 0x205   : > { %v4273_v36 = vadd.f32 %v4272_v45, %v3228_v14  ;;  %v4364_v42 = vadd.f32 %v4363_v23, %v3316_v58  ;;  %v4323_v59 = vadd.f32 %v4322_v55, %v3276_v33  ;;  %v1084_v22 = vld [vmem:[%s5496_s28 + $0x1b20] sm:$0xff]  ;;  %v3232_v57 = vmul.f32 %v8347_v20, %v948_v44  ;;  %v950_v60 = vld [vmem:[%s5496_s28 + $0x16f0] sm:$0xff]  ;;  %v1037_v45 = vld [vmem:[%s5496_s28 + $0x19a8] sm:$0xff] }
 0x206   : > { %v3319_v54 = vmul.f32 %v8338_v25, %v1035_v48  ;;  %v3279_v9 = vmul.f32 %v5579_v50, %v995_v4  ;;  %v3367_v61 = vmul.f32 %v8436_v27, %v1083_v1  ;;  %v1085_v23 = vld [vmem:[%s5496_s28 + $0x1b28] sm:$0xff]  ;;  %v4415_v34 = vadd.f32 %v3365_v0, %v3364_v37  ;;  %v1038_v27 = vld [vmem:[%s5496_s28 + $0x19b0] sm:$0xff] }
 0x207   : > { %v4274_v14 = vadd.f32 %v4273_v36, %v3229_v16  ;;  %v4365_v58 = vadd.f32 %v4364_v42, %v3317_v2  ;;  %v4324_v33 = vadd.f32 %v4323_v59, %v3277_v7  ;;  %v3233_v44 = vmul.f32 %v8348_v52, %v949_v47  ;;  %v998_v36 = vld [vmem:[%s5496_s28 + $0x1870] sm:$0xff]  ;;  %v999_v47 = vld [vmem:[%s5496_s28 + $0x1878] sm:$0xff] }
 0x208   : > { %v3320_v48 = vmul.f32 %v5614_v18, %v1036_v53  ;;  %v3280_v55 = vmul.f32 %v5582_v51, %v996_v41  ;;  %v3368_v4 = vmul.f32 %v5535_v21, %v1084_v22  ;;  %v1086_v7 = vld [vmem:[%s5496_s28 + $0x1b30] sm:$0xff]  ;;  %v4416_v42 = vadd.f32 %v4415_v34, %v3366_v13  ;;  %v1039_v59 = vld [vmem:[%s5496_s28 + $0x19b8] sm:$0xff]  ;;  %v1041_v34 = vld [vmem:[%s5496_s28 + $0x19c8] sm:$0xff] }
 0x209   : > { %v4275_v1 = vadd.f32 %v4274_v14, %v3230_v10  ;;  %v4366_v16 = vadd.f32 %v4365_v58, %v3318_v29  ;;  %v4325_v2 = vadd.f32 %v4324_v33, %v3278_v3  ;;  %v3234_v37 = vmul.f32 %v8366_v12, %v950_v60  ;;  %v1047_v29 = vld [vmem:[%s5496_s28 + $0x19f8] sm:$0xff]  ;;  %v1000_v58 = vld [vmem:[%s5496_s28 + $0x1880] sm:$0xff] }
 0x20a   : > { %v3321_v0 = vmul.f32 %v8371_v35, %v1037_v45  ;;  %v3281_v41 = vmul.f32 %v5588_v56, %v997_v49  ;;  %v3369_v53 = vmul.f32 %v5544_v26, %v1085_v23  ;;  %v1087_v14 = vld [vmem:[%s5496_s28 + $0x1b38] sm:$0xff]  ;;  %v4417_v13 = vadd.f32 %v4416_v42, %v3367_v61  ;;  %v1040_v23 = vld [vmem:[%s5496_s28 + $0x19c0] sm:$0xff] }
 0x20b   : > { %v4276_v10 = vadd.f32 %v4275_v1, %v3231_v24  ;;  %v4367_v22 = vadd.f32 %v4366_v16, %v3319_v54  ;;  %v4326_v3 = vadd.f32 %v4325_v2, %v3279_v9  ;;  %v3235_v60 = vmul.f32 %v8362_v63, %v7406_v30  ;;  %v1088_v1 = vld [vmem:[%s5496_s28 + $0x1b40] sm:$0xff]  ;;  %v1001_v16 = vld [vmem:[%s5496_s28 + $0x1888] sm:$0xff] }
 0x20c   : > { %v3322_v45 = vmul.f32 %v8407_v31, %v1038_v27  ;;  %v3282_v49 = vmul.f32 %v8368_v19, %v998_v36  ;;  %v3370_v33 = vmul.f32 %v8412_v28, %v1086_v7  ;;  %v4418_v61 = vadd.f32 %v4417_v13, %v3368_v4  ;;  %v1048_v42 = vld [vmem:[%s5496_s28 + $0x1a00] sm:$0xff] }
 0x20d   : > { %v4277_v24 = vadd.f32 %v4276_v10, %v3232_v57  ;;  %v4368_v54 = vadd.f32 %v4367_v22, %v3320_v48  ;;  %v4327_v9 = vadd.f32 %v4326_v3, %v3280_v55  ;;  %v7475_v30 = vsel %vm1307_vm0, %v1047_v29, 0.0  ;;  %v1089_v55 = vld [vmem:[%s5496_s28 + $0x1b48] sm:$0xff]  ;;  %v1002_v3 = vld [vmem:[%s5496_s28 + $0x1890] sm:$0xff]  ;;  %v8438_v13 = vld [vmem:[#allocation21_spill] sm:$0xff] }
 0x20e   : > { %v3323_v27 = vmul.f32 %v8413_v62, %v1039_v59  ;;  %v3283_v36 = vmul.f32 %v8417_v32, %v999_v47  ;;  %v3371_v57 = vmul.f32 %v8377_v38, %v1087_v14  ;;  %v4419_v4 = vadd.f32 %v4418_v61, %v3369_v53  ;;  %v1049_v10 = vld [vmem:[%s5496_s28 + $0x1a08] sm:$0xff]  ;;  %v8437_v59 = vld [vmem:[#allocation29_spill] sm:$0xff]  ;;  %v1003_v61 = vld [vmem:[%s5496_s28 + $0x1898] sm:$0xff] }
 0x20f   : > { %v4278_v2 = vadd.f32 %v4277_v24, %v3233_v44  ;;  %v4369_v7 = vadd.f32 %v4368_v54, %v3321_v0  ;;  %v4328_v48 = vadd.f32 %v4327_v9, %v3281_v41  ;;  %v3324_v29 = vmul.f32 %v8358_v15, %v1040_v23  ;;  %v1042_v0 = vld [vmem:[%s5496_s28 + $0x19d0] sm:$0xff]  ;;  %v1043_v41 = vld [vmem:[%s5496_s28 + $0x19d8] sm:$0xff] }
 0x210   : > { %v3325_v22 = vmul.f32 %v8437_v59, %v1041_v34  ;;  %v3284_v47 = vmul.f32 %v8438_v13, %v1000_v58  ;;  %v3372_v14 = vmul.f32 %v5565_v40, %v1088_v1  ;;  %v1090_v54 = vld [vmem:[%s5496_s28 + $0x1b50] sm:$0xff]  ;;  %v4420_v9 = vadd.f32 %v4419_v4, %v3370_v33  ;;  %v8439_v58 = vld [vmem:[#allocation9_spill] sm:$0xff] }
 0x211   : > { %v4279_v44 = vadd.f32 %v4278_v2, %v3234_v37  ;;  %v4370_v24 = vadd.f32 %v4369_v7, %v3322_v45  ;;  %v4329_v53 = vadd.f32 %v4328_v48, %v3282_v49  ;;  %v3285_v23 = vmul.f32 %v8374_v39, %v1001_v16  ;;  %v1050_v59 = vld [vmem:[%s5496_s28 + $0x1a10] sm:$0xff]  ;;  %v1044_v2 = vld [vmem:[%s5496_s28 + $0x19e0] sm:$0xff]  ;;  %v1091_v7 = vld [vmem:[%s5496_s28 + $0x1b58] sm:$0xff] }
 0x212   : > { %v3373_v34 = vmul.f32 %v5571_v46, %v1089_v55  ;;  %v3332_v13 = vmul.f32 %v8439_v58, %v1048_v42  ;;  %v3333_v37 = vmul.f32 %v5512_v8, %v1049_v10  ;;  %v4421_v33 = vadd.f32 %v4420_v9, %v3371_v57  ;;  %v1051_v48 = vld [vmem:[%s5496_s28 + $0x1a18] sm:$0xff]  ;;  %v1004_v4 = vld [vmem:[%s5496_s28 + $0x18a0] sm:$0xff] }
 0x213   : > { %v4280_v1 = vadd.f32 %v4279_v44, %v3235_v60  ;;  %v4371_v45 = vadd.f32 %v4370_v24, %v3323_v27  ;;  %v4330_v49 = vadd.f32 %v4329_v53, %v3283_v36  ;;  %v3326_v16 = vmul.f32 %v8370_v11, %v1042_v0  ;;  %v8440_v58 = vld [vmem:[#allocation17_spill] sm:$0xff]  ;;  %v1045_v60 = vld [vmem:[%s5496_s28 + $0x19e8] sm:$0xff] }
 0x214   : > { %v3327_v55 = vmul.f32 %v8365_v17, %v1043_v41  ;;  %v3286_v42 = vmul.f32 %v5607_v6, %v1002_v3  ;;  %v3374_v10 = vmul.f32 %v8440_v58, %v1090_v54  ;;  %v1092_v44 = vld [vmem:[%s5496_s28 + $0x1b60] sm:$0xff]  ;;  %v4422_v57 = vadd.f32 %v4421_v33, %v3372_v14  ;;  %v1005_v41 = vld [vmem:[%s5496_s28 + $0x18a8] sm:$0xff]  ;;  %v8441_v54 = vld [vmem:[#allocation12_spill] sm:$0xff] }
 0x215   : > { %4281 = vadd.xlane.f32.xlu0 %v4280_v1  ;;  %v4372_v27 = vadd.f32 %v4371_v45, %v3324_v29  ;;  %v4331_v36 = vadd.f32 %v4330_v49, %v3284_v47  ;;  %v1052_v24 = vld [vmem:[%s5496_s28 + $0x1a20] sm:$0xff]  ;;  %v3334_v53 = vmul.f32 %v8355_v5, %v1050_v59  ;;  %v3328_v0 = vmul.f32 %v8347_v20, %v1044_v2  ;;  %v1046_v58 = vld [vmem:[%s5496_s28 + $0x19f0] sm:$0xff]  ;;  %v1093_v45 = vld [vmem:[%s5496_s28 + $0x1b68] sm:$0xff] }
 0x216   : > { %v3287_v9 = vmul.f32 %v8338_v25, %v1003_v61  ;;  %v3375_v3 = vmul.f32 %v5579_v50, %v1091_v7  ;;  %v3335_v1 = vmul.f32 %v8441_v54, %v1051_v48  ;;  %v4423_v14 = vadd.f32 %v4422_v57, %v3373_v34  ;;  %v1053_v49 = vld [vmem:[%s5496_s28 + $0x1a28] sm:$0xff]  ;;  %v1006_v54 = vld [vmem:[%s5496_s28 + $0x18b0] sm:$0xff]  ;;  %v1015_v57 = vld [vmem:[%s5496_s28 + $0x18f8] sm:$0xff] }
 0x217   : > { %v4373_v29 = vadd.f32 %v4372_v27, %v3325_v22  ;;  %v4332_v47 = vadd.f32 %v4331_v36, %v3285_v23  ;;  %v4382_v59 = vadd.f32 %v3333_v37, %v3332_v13  ;;  %v3329_v2 = vmul.f32 %v8348_v52, %v1045_v60  ;;  %v1094_v23 = vld [vmem:[%s5496_s28 + $0x1b70] sm:$0xff]  ;;  %v1007_v37 = vld [vmem:[%s5496_s28 + $0x18b8] sm:$0xff] }
 0x218   : > { %v3288_v33 = vmul.f32 %v5614_v18, %v1004_v4  ;;  %v3376_v61 = vmul.f32 %v5582_v51, %v1092_v44  ;;  %v3336_v7 = vmul.f32 %v5535_v21, %v1052_v24  ;;  %v4424_v27 = vadd.f32 %v4423_v14, %v3374_v10  ;;  %v1054_v34 = vld [vmem:[%s5496_s28 + $0x1a30] sm:$0xff]  ;;  %v1095_v24 = vld [vmem:[%s5496_s28 + $0x1b78] sm:$0xff] }
 0x219   : > { %v4374_v48 = vadd.f32 %v4373_v29, %v3326_v16  ;;  %v4333_v22 = vadd.f32 %v4332_v47, %v3286_v42  ;;  %v4383_v36 = vadd.f32 %v4382_v59, %v3334_v53  ;;  %v3330_v13 = vmul.f32 %v8366_v12, %v1046_v58  ;;  %v1055_v29 = vld [vmem:[%s5496_s28 + $0x1a38] sm:$0xff]  ;;  %v1008_v53 = vld [vmem:[%s5496_s28 + $0x18c0] sm:$0xff] }
 0x21a   : > { %v3289_v4 = vmul.f32 %v8371_v35, %v1005_v41  ;;  %v3377_v60 = vmul.f32 %v5588_v56, %v1093_v45  ;;  %v3337_v44 = vmul.f32 %v5544_v26, %v1053_v49  ;;  %v4425_v10 = vadd.f32 %v4424_v27, %v3375_v3  ;;  %v1009_v49 = vld [vmem:[%s5496_s28 + $0x18c8] sm:$0xff]  ;;  %v1096_v3 = vld [vmem:[%s5496_s28 + $0x1b80] sm:$0xff] }
 0x21b   : > { %v4375_v16 = vadd.f32 %v4374_v48, %v3327_v55  ;;  %v4334_v42 = vadd.f32 %v4333_v22, %v3287_v9  ;;  %v4384_v47 = vadd.f32 %v4383_v36, %v3335_v1  ;;  %v3331_v58 = vmul.f32 %v8362_v63, %v7475_v30  ;;  %v1056_v59 = vld [vmem:[%s5496_s28 + $0x1a40] sm:$0xff] }
 0x21c   : > { %v3290_v41 = vmul.f32 %v8407_v31, %v1006_v54  ;;  %v3378_v45 = vmul.f32 %v8368_v19, %v1094_v23  ;;  %v3338_v14 = vmul.f32 %v8412_v28, %v1054_v34  ;;  %v4426_v1 = vadd.f32 %v4425_v10, %v3376_v61  ;;  %v1057_v23 = vld [vmem:[%s5496_s28 + $0x1a48] sm:$0xff]  ;;  %v8443_v10 = vld [vmem:[#allocation21_spill] sm:$0xff] }
 0x21d   : > { %v4376_v55 = vadd.f32 %v4375_v16, %v3328_v0  ;;  %v4335_v9 = vadd.f32 %v4334_v42, %v3288_v33  ;;  %v4385_v48 = vadd.f32 %v4384_v47, %v3336_v7  ;;  %v7544_v30 = vsel %vm1307_vm0, %v1015_v57, 0.0  ;;  %v1097_v34 = vld [vmem:[%s5496_s28 + $0x1b88] sm:$0xff]  ;;  %v1144_v7 = vld [vmem:[%s5496_s28 + $0x1d00] sm:$0xff]  ;;  %v1010_v57 = vld [vmem:[%s5496_s28 + $0x18d0] sm:$0xff] }
 0x21e   : > { %v3291_v54 = vmul.f32 %v8413_v62, %v1007_v37  ;;  %v3379_v22 = vmul.f32 %v8417_v32, %v1095_v24  ;;  %v3339_v0 = vmul.f32 %v8377_v38, %v1055_v29  ;;  %v4427_v61 = vadd.f32 %v4426_v1, %v3377_v60  ;;  %v1145_v16 = vld [vmem:[%s5496_s28 + $0x1d08] sm:$0xff]  ;;  %v8442_v42 = vld [vmem:[#allocation29_spill] sm:$0xff]  ;;  %v1011_v60 = vld [vmem:[%s5496_s28 + $0x18d8] sm:$0xff] }
 0x21f   : > { %v4377_v27 = vadd.f32 %v4376_v55, %v3329_v2  ;;  %v4336_v33 = vadd.f32 %v4335_v9, %v3289_v4  ;;  %v4386_v36 = vadd.f32 %v4385_v48, %v3337_v44  ;;  %v3292_v37 = vmul.f32 %v8358_v15, %v1008_v53  ;;  %v7558_v2 = vpop.xlane.xlu1 %3621  ;;  %v1098_v55 = vld [vmem:[%s5496_s28 + $0x1b90] sm:$0xff] }
 0x220   : > { %v3293_v24 = vmul.f32 %v8442_v42, %v1009_v49  ;;  %v3380_v47 = vmul.f32 %v8443_v10, %v1096_v3  ;;  %v3340_v29 = vmul.f32 %v5565_v40, %v1056_v59  ;;  %8444 = vst [vmem:[#allocation37_spill] sm:$0xff] %v7558_v2  ;;  %v4428_v9 = vadd.f32 %v4427_v61, %v3378_v45  ;;  %v1058_v1 = vld [vmem:[%s5496_s28 + $0x1a50] sm:$0xff]  ;;  %v1059_v49 = vld [vmem:[%s5496_s28 + $0x1a58] sm:$0xff]  ;;  %v8445_v59 = vld [vmem:[#allocation9_spill] sm:$0xff] }
 0x221   : > { %v4378_v4 = vadd.f32 %v4377_v27, %v3330_v13  ;;  %v4337_v44 = vadd.f32 %v4336_v33, %v3290_v41  ;;  %v4387_v48 = vadd.f32 %v4386_v36, %v3338_v14  ;;  %v3381_v53 = vmul.f32 %v8374_v39, %v1097_v34  ;;  %v1146_v10 = vld [vmem:[%s5496_s28 + $0x1d10] sm:$0xff]  ;;  %v1012_v41 = vld [vmem:[%s5496_s28 + $0x18e0] sm:$0xff]  ;;  %v1099_v45 = vld [vmem:[%s5496_s28 + $0x1b98] sm:$0xff] }
 0x222   : > { %v3341_v3 = vmul.f32 %v5571_v46, %v1057_v23  ;;  %v3428_v40 = vmul.f32 %v8445_v59, %v1144_v7  ;;  %v3429_v13 = vmul.f32 %v5512_v8, %v1145_v16  ;;  %v4429_v61 = vadd.f32 %v4428_v9, %v3379_v22  ;;  %v1147_v36 = vld [vmem:[%s5496_s28 + $0x1d18] sm:$0xff]  ;;  %v1060_v46 = vld [vmem:[%s5496_s28 + $0x1a60] sm:$0xff] }
 0x223   : > { %v4379_v27 = vadd.f32 %v4378_v4, %v3331_v58  ;;  %v4338_v33 = vadd.f32 %v4337_v44, %v3291_v54  ;;  %v4388_v14 = vadd.f32 %v4387_v48, %v3339_v0  ;;  %v3294_v34 = vmul.f32 %v8370_v11, %v1010_v57  ;;  %v8446_v7 = vld [vmem:[#allocation17_spill] sm:$0xff]  ;;  %v1013_v58 = vld [vmem:[%s5496_s28 + $0x18e8] sm:$0xff] }
 0x224   : > { %v3295_v23 = vmul.f32 %v8365_v17, %v1011_v60  ;;  %v3382_v2 = vmul.f32 %v5607_v6, %v1098_v55  ;;  %v3342_v59 = vmul.f32 %v8446_v7, %v1058_v1  ;;  %v1100_v16 = vld [vmem:[%s5496_s28 + $0x1ba0] sm:$0xff]  ;;  %v4430_v4 = vadd.f32 %v4429_v61, %v3380_v47  ;;  %v1061_v55 = vld [vmem:[%s5496_s28 + $0x1a68] sm:$0xff]  ;;  %v8447_v1 = vld [vmem:[#allocation12_spill] sm:$0xff] }
 0x225   : > { %4380 = vadd.xlane.f32.xlu1 %v4379_v27  ;;  %v4339_v54 = vadd.f32 %v4338_v33, %v3292_v37  ;;  %v4389_v22 = vadd.f32 %v4388_v14, %v3340_v29  ;;  %v1148_v0 = vld [vmem:[%s5496_s28 + $0x1d20] sm:$0xff]  ;;  %v3430_v44 = vmul.f32 %v8355_v5, %v1146_v10  ;;  %v3296_v57 = vmul.f32 %v8347_v20, %v1012_v41  ;;  %v7586_v27 = vpop.xlane.xlu0 %3555  ;;  %v7588_v37 = vpop.xlane.xlu1 %3654  ;;  %v1014_v47 = vld [vmem:[%s5496_s28 + $0x18f0] sm:$0xff]  ;;  %v1101_v33 = vld [vmem:[%s5496_s28 + $0x1ba8] sm:$0xff] }
 0x226   : > { %v3383_v60 = vmul.f32 %v8338_v25, %v1099_v45  ;;  %v3343_v9 = vmul.f32 %v5579_v50, %v1059_v49  ;;  %v3431_v48 = vmul.f32 %v8447_v1, %v1147_v36  ;;  %8448 = vst [vmem:[#allocation38_spill] sm:$0xff] %v7586_v27  ;;  %8449 = vst [vmem:[#allocation39_spill] sm:$0xff] %v7588_v37  ;;  %v1149_v41 = vld [vmem:[%s5496_s28 + $0x1d28] sm:$0xff]  ;;  %v1102_v1 = vld [vmem:[%s5496_s28 + $0x1bb0] sm:$0xff] }
 0x227   : > { %v4340_v29 = vadd.f32 %v4339_v54, %v3293_v24  ;;  %v4431_v10 = vadd.f32 %v4430_v4, %v3381_v53  ;;  %v4390_v61 = vadd.f32 %v4389_v22, %v3341_v3  ;;  %v4481_v45 = vadd.f32 %v3429_v13, %v3428_v40  ;;  %v1062_v54 = vld [vmem:[%s5496_s28 + $0x1a70] sm:$0xff] }
 0x228   : > { %v3297_v14 = vmul.f32 %v8348_v52, %v1013_v58  ;;  %v3384_v49 = vmul.f32 %v5614_v18, %v1100_v16  ;;  %v3344_v36 = vmul.f32 %v5582_v51, %v1060_v46  ;;  %v3432_v27 = vmul.f32 %v5535_v21, %v1148_v0  ;;  %v1150_v3 = vld [vmem:[%s5496_s28 + $0x1d30] sm:$0xff]  ;;  %v1063_v58 = vld [vmem:[%s5496_s28 + $0x1a78] sm:$0xff] }
 0x229   : > { %v4341_v37 = vadd.f32 %v4340_v29, %v3294_v34  ;;  %v4432_v24 = vadd.f32 %v4431_v10, %v3382_v2  ;;  %v4391_v53 = vadd.f32 %v4390_v61, %v3342_v59  ;;  %v4482_v4 = vadd.f32 %v4481_v45, %v3430_v44  ;;  %v1103_v34 = vld [vmem:[%s5496_s28 + $0x1bb8] sm:$0xff]  ;;  %v1152_v45 = vld [vmem:[%s5496_s28 + $0x1d40] sm:$0xff] }
 0x22a   : > { %v3298_v40 = vmul.f32 %v8366_v12, %v1014_v47  ;;  %v3385_v13 = vmul.f32 %v8371_v35, %v1101_v33  ;;  %v3345_v16 = vmul.f32 %v5588_v56, %v1061_v55  ;;  %v3433_v46 = vmul.f32 %v5544_v26, %v1149_v41  ;;  %v1111_v0 = vld [vmem:[%s5496_s28 + $0x1bf8] sm:$0xff]  ;;  %v1064_v33 = vld [vmem:[%s5496_s28 + $0x1a80] sm:$0xff] }
 0x22b   : > { %v4342_v22 = vadd.f32 %v4341_v37, %v3295_v23  ;;  %v4433_v2 = vadd.f32 %v4432_v24, %v3383_v60  ;;  %v4392_v59 = vadd.f32 %v4391_v53, %v3343_v9  ;;  %v1151_v29 = vld [vmem:[%s5496_s28 + $0x1d38] sm:$0xff]  ;;  %v4483_v10 = vadd.f32 %v4482_v4, %v3431_v48  ;;  %v7614_v23 = vpop.xlane.xlu0 %3588  ;;  %v7616_v37 = vpop.xlane.xlu1 %3720  ;;  %v1104_v9 = vld [vmem:[%s5496_s28 + $0x1bc0] sm:$0xff]  ;;  %v1105_v48 = vld [vmem:[%s5496_s28 + $0x1bc8] sm:$0xff] }
 0x22c   : > { %v3299_v44 = vmul.f32 %v8362_v63, %v7544_v30  ;;  %v3386_v47 = vmul.f32 %v8407_v31, %v1102_v1  ;;  %v3346_v55 = vmul.f32 %v8368_v19, %v1062_v54  ;;  %v3434_v61 = vmul.f32 %v8412_v28, %v1150_v3  ;;  %8450 = vst [vmem:[#allocation40_spill] sm:$0xff] %v7614_v23  ;;  %v1065_v53 = vld [vmem:[%s5496_s28 + $0x1a88] sm:$0xff]  ;;  %v8453_v23 = vld [vmem:[#allocation15_spill] sm:$0xff] }
 0x22d   : > { %8451 = vst [vmem:[#allocation47_spill] sm:$0xff] %v7616_v37  ;;  %v4343_v60 = vadd.f32 %v4342_v22, %v3296_v57  ;;  %v4434_v41 = vadd.f32 %v4433_v2, %v3384_v49  ;;  %v4393_v30 = vadd.f32 %v4392_v59, %v3344_v36  ;;  %v4484_v1 = vadd.f32 %v4483_v10, %v3432_v27  ;;  %v1153_v36 = vld [vmem:[%s5496_s28 + $0x1d48] sm:$0xff]  ;;  %v1112_v2 = vld [vmem:[%s5496_s28 + $0x1c00] sm:$0xff]  ;;  %v1066_v10 = vld [vmem:[%s5496_s28 + $0x1a90] sm:$0xff] }
 0x22e   : > { %v7623_v24 = vsel %vm1307_vm0, %v1111_v0, 0.0  ;;  %v3387_v54 = vmul.f32 %v8413_v62, %v1103_v34  ;;  %v3347_v3 = vmul.f32 %v8417_v32, %v1063_v58  ;;  %v3435_v57 = vmul.f32 %v8377_v38, %v1151_v29  ;;  %v1113_v59 = vld [vmem:[%s5496_s28 + $0x1c08] sm:$0xff]  ;;  %v8452_v37 = vld [vmem:[#allocation21_spill] sm:$0xff] }
 0x22f   : > { %v4344_v4 = vadd.f32 %v4343_v60, %v3297_v14  ;;  %v4435_v22 = vadd.f32 %v4434_v41, %v3385_v13  ;;  %v4394_v49 = vadd.f32 %v4393_v30, %v3345_v16  ;;  %v4485_v27 = vadd.f32 %v4484_v1, %v3433_v46  ;;  %v1106_v14 = vld [vmem:[%s5496_s28 + $0x1bd0] sm:$0xff]  ;;  %v1107_v13 = vld [vmem:[%s5496_s28 + $0x1bd8] sm:$0xff] }
 0x230   : > { %v3388_v0 = vmul.f32 %v8358_v15, %v1104_v9  ;;  %v3389_v34 = vmul.f32 %v8442_v42, %v1105_v48  ;;  %v3348_v58 = vmul.f32 %v8452_v37, %v1064_v33  ;;  %v3436_v32 = vmul.f32 %v8453_v23, %v1152_v45  ;;  %v1154_v46 = vld [vmem:[%s5496_s28 + $0x1d50] sm:$0xff]  ;;  %v1067_v30 = vld [vmem:[%s5496_s28 + $0x1a98] sm:$0xff]  ;;  %v8455_v33 = vld [vmem:[#allocation9_spill] sm:$0xff]  ;;  %v7646_v45 = vpop.xlane.xlu0 %3687 }
 0x231   : > { %v4345_v29 = vadd.f32 %v4344_v4, %v3298_v40  ;;  %v4436_v16 = vadd.f32 %v4435_v22, %v3386_v47  ;;  %v4395_v60 = vadd.f32 %v4394_v49, %v3346_v55  ;;  %v4486_v41 = vadd.f32 %v4485_v27, %v3434_v61  ;;  %v8454_v1 = vld [vmem:[#allocation16_spill] sm:$0xff]  ;;  %v1114_v42 = vld [vmem:[%s5496_s28 + $0x1c10] sm:$0xff]  ;;  %8456 = vst [vmem:[#allocation41_spill] sm:$0xff] %v7646_v45  ;;  %v7648_v47 = vpop.xlane.xlu1 %3786  ;;  %v1108_v4 = vld [vmem:[%s5496_s28 + $0x1be0] sm:$0xff] }
 0x232   : > { %v3349_v9 = vmul.f32 %v8374_v39, %v1065_v53  ;;  %v3437_v48 = vmul.f32 %v8454_v1, %v1153_v36  ;;  %v3396_v37 = vmul.f32 %v8455_v33, %v1112_v2  ;;  %v3397_v40 = vmul.f32 %v5512_v8, %v1113_v59  ;;  %8457 = vst [vmem:[#allocation42_spill] sm:$0xff] %v7648_v47  ;;  %v1155_v53 = vld [vmem:[%s5496_s28 + $0x1d58] sm:$0xff]  ;;  %v1068_v59 = vld [vmem:[%s5496_s28 + $0x1aa0] sm:$0xff] }
 0x233   : > { %v4346_v55 = vadd.f32 %v4345_v29, %v3299_v44  ;;  %v4437_v61 = vadd.f32 %v4436_v16, %v3387_v54  ;;  %v4396_v22 = vadd.f32 %v4395_v60, %v3347_v3  ;;  %v4487_v49 = vadd.f32 %v4486_v41, %v3435_v57  ;;  %v1115_v36 = vld [vmem:[%s5496_s28 + $0x1c18] sm:$0xff]  ;;  %v1109_v44 = vld [vmem:[%s5496_s28 + $0x1be8] sm:$0xff]  ;;  %v1156_v29 = vld [vmem:[%s5496_s28 + $0x1d60] sm:$0xff] }
 0x234   : > { %v3390_v27 = vmul.f32 %v8370_v11, %v1106_v14  ;;  %v3391_v2 = vmul.f32 %v8365_v17, %v1107_v13  ;;  %v3350_v45 = vmul.f32 %v5607_v6, %v1066_v10  ;;  %v3438_v47 = vmul.f32 %v8446_v7, %v1154_v46  ;;  %v1116_v16 = vld [vmem:[%s5496_s28 + $0x1c20] sm:$0xff]  ;;  %v1069_v13 = vld [vmem:[%s5496_s28 + $0x1aa8] sm:$0xff]  ;;  %v8458_v6 = vld [vmem:[#allocation12_spill] sm:$0xff] }
 0x235   : > { %4347 = vadd.xlane.f32.xlu0 %v4346_v55  ;;  %v4438_v54 = vadd.f32 %v4437_v61, %v3388_v0  ;;  %v4397_v3 = vadd.f32 %v4396_v22, %v3348_v58  ;;  %v4488_v57 = vadd.f32 %v4487_v49, %v3436_v32  ;;  %v3398_v60 = vmul.f32 %v8355_v5, %v1114_v42  ;;  %v1110_v55 = vld [vmem:[%s5496_s28 + $0x1bf0] sm:$0xff]  ;;  %v1157_v58 = vld [vmem:[%s5496_s28 + $0x1d68] sm:$0xff] }
 0x236   : > { %v3392_v14 = vmul.f32 %v8347_v20, %v1108_v4  ;;  %v3351_v41 = vmul.f32 %v8338_v25, %v1067_v30  ;;  %v3439_v10 = vmul.f32 %v5579_v50, %v1155_v53  ;;  %v3399_v46 = vmul.f32 %v8458_v6, %v1115_v36  ;;  %v1117_v22 = vld [vmem:[%s5496_s28 + $0x1c28] sm:$0xff]  ;;  %v7674_v36 = vpop.xlane.xlu0 %3753  ;;  %v7676_v6 = vpop.xlane.xlu1 %3852 }
 0x237   : > { %v4439_v0 = vadd.f32 %v4438_v54, %v3389_v34  ;;  %v4398_v61 = vadd.f32 %v4397_v3, %v3349_v9  ;;  %v4489_v32 = vadd.f32 %v4488_v57, %v3437_v48  ;;  %v4448_v42 = vadd.f32 %v3397_v40, %v3396_v37  ;;  %8459 = vst [vmem:[#allocation43_spill] sm:$0xff] %v7674_v36  ;;  %v1070_v9 = vld [vmem:[%s5496_s28 + $0x1ab0] sm:$0xff]  ;;  %v1071_v3 = vld [vmem:[%s5496_s28 + $0x1ab8] sm:$0xff] }
 0x238   : > { %v3393_v4 = vmul.f32 %v8348_v52, %v1109_v44  ;;  %v3352_v49 = vmul.f32 %v5614_v18, %v1068_v59  ;;  %v3440_v30 = vmul.f32 %v5582_v51, %v1156_v29  ;;  %v3400_v53 = vmul.f32 %v5535_v21, %v1116_v16  ;;  %8460 = vst [vmem:[#allocation44_spill] sm:$0xff] %v7676_v6  ;;  %v1158_v54 = vld [vmem:[%s5496_s28 + $0x1d70] sm:$0xff] }
 0x239   : > { %v4440_v34 = vadd.f32 %v4439_v0, %v3390_v27  ;;  %v4399_v48 = vadd.f32 %v4398_v61, %v3350_v45  ;;  %v4490_v37 = vadd.f32 %v4489_v32, %v3438_v47  ;;  %v1118_v40 = vld [vmem:[%s5496_s28 + $0x1c30] sm:$0xff]  ;;  %v4449_v44 = vadd.f32 %v4448_v42, %v3398_v60  ;;  %v1079_v0 = vld [vmem:[%s5496_s28 + $0x1af8] sm:$0xff] }
 0x23a   : > { %v3394_v59 = vmul.f32 %v8366_v12, %v1110_v55  ;;  %v3353_v29 = vmul.f32 %v8371_v35, %v1069_v13  ;;  %v3441_v57 = vmul.f32 %v5588_v56, %v1157_v58  ;;  %v3401_v16 = vmul.f32 %v5544_v26, %v1117_v22  ;;  %v1159_v61 = vld [vmem:[%s5496_s28 + $0x1d78] sm:$0xff]  ;;  %v1072_v55 = vld [vmem:[%s5496_s28 + $0x1ac0] sm:$0xff] }
 0x23b   : > { %v4441_v27 = vadd.f32 %v4440_v34, %v3391_v2  ;;  %v4400_v45 = vadd.f32 %v4399_v48, %v3351_v41  ;;  %v4491_v47 = vadd.f32 %v4490_v37, %v3439_v10  ;;  %v1119_v32 = vld [vmem:[%s5496_s28 + $0x1c38] sm:$0xff]  ;;  %v4450_v6 = vadd.f32 %v4449_v44, %v3399_v46  ;;  %v1073_v2 = vld [vmem:[%s5496_s28 + $0x1ac8] sm:$0xff]  ;;  %v1160_v41 = vld [vmem:[%s5496_s28 + $0x1d80] sm:$0xff]  ;;  %v7708_v44 = vpop.xlane.xlu1 %3918 }
 0x23c   : > { %v3395_v60 = vmul.f32 %v8362_v63, %v7623_v24  ;;  %v3354_v13 = vmul.f32 %v8407_v31, %v1070_v9  ;;  %v3442_v58 = vmul.f32 %v8368_v19, %v1158_v54  ;;  %v3402_v22 = vmul.f32 %v8412_v28, %v1118_v40  ;;  %v1120_v46 = vld [vmem:[%s5496_s28 + $0x1c40] sm:$0xff]  ;;  %v8461_v54 = vld [vmem:[#allocation20_spill] sm:$0xff]  ;;  %v1121_v40 = vld [vmem:[%s5496_s28 + $0x1c48] sm:$0xff]  ;;  %8463 = vst [vmem:[#allocation46_spill] sm:$0xff] %v7708_v44 }
 0x23d   : > { %v4442_v42 = vadd.f32 %v4441_v27, %v3392_v14  ;;  %v4401_v34 = vadd.f32 %v4400_v45, %v3352_v49  ;;  %v4492_v10 = vadd.f32 %v4491_v47, %v3440_v30  ;;  %v4451_v48 = vadd.f32 %v4450_v6, %v3400_v53  ;;  %v7706_v49 = vpop.xlane.xlu0 %3819  ;;  %v1161_v6 = vld [vmem:[%s5496_s28 + $0x1d88] sm:$0xff]  ;;  %v1208_v45 = vld [vmem:[%s5496_s28 + $0x1f00] sm:$0xff] }
 0x23e   : > { %v7700_v24 = vsel %vm1307_vm0, %v1079_v0, 0.0  ;;  %v3355_v9 = vmul.f32 %v8413_v62, %v1071_v3  ;;  %v3443_v37 = vmul.f32 %v8461_v54, %v1159_v61  ;;  %v3403_v14 = vmul.f32 %v8377_v38, %v1119_v32  ;;  %8462 = vst [vmem:[#allocation45_spill] sm:$0xff] %v7706_v49  ;;  %v1209_v3 = vld [vmem:[%s5496_s28 + $0x1f08] sm:$0xff]  ;;  %v1074_v61 = vld [vmem:[%s5496_s28 + $0x1ad0] sm:$0xff]  ;;  %v8464_v32 = vld [vmem:[#allocation29_spill] sm:$0xff] }
 0x23f   : > { %v4443_v30 = vadd.f32 %v4442_v42, %v3393_v4  ;;  %v4402_v27 = vadd.f32 %v4401_v34, %v3353_v29  ;;  %v4493_v53 = vadd.f32 %v4492_v10, %v3441_v57  ;;  %v4452_v0 = vadd.f32 %v4451_v48, %v3401_v16  ;;  %v8465_v38 = vld [vmem:[#allocation21_spill] sm:$0xff]  ;;  %v1075_v29 = vld [vmem:[%s5496_s28 + $0x1ad8] sm:$0xff]  ;;  %v1162_v57 = vld [vmem:[%s5496_s28 + $0x1d90] sm:$0xff] }
 0x240   : > { %v3356_v47 = vmul.f32 %v8358_v15, %v1072_v55  ;;  %v3357_v36 = vmul.f32 %v8464_v32, %v1073_v2  ;;  %v3444_v49 = vmul.f32 %v8465_v38, %v1160_v41  ;;  %v3404_v44 = vmul.f32 %v8453_v23, %v1120_v46  ;;  %v1122_v34 = vld [vmem:[%s5496_s28 + $0x1c50] sm:$0xff]  ;;  %v1123_v55 = vld [vmem:[%s5496_s28 + $0x1c58] sm:$0xff] }
 0x241   : > { %v4444_v4 = vadd.f32 %v4443_v30, %v3394_v59  ;;  %v4403_v42 = vadd.f32 %v4402_v27, %v3354_v13  ;;  %v4494_v16 = vadd.f32 %v4493_v53, %v3442_v58  ;;  %v4453_v10 = vadd.f32 %v4452_v0, %v3402_v22  ;;  %v1210_v32 = vld [vmem:[%s5496_s28 + $0x1f10] sm:$0xff]  ;;  %v1076_v30 = vld [vmem:[%s5496_s28 + $0x1ae0] sm:$0xff]  ;;  %v1163_v27 = vld [vmem:[%s5496_s28 + $0x1d98] sm:$0xff] }
 0x242   : > { %v3445_v48 = vmul.f32 %v8374_v39, %v1161_v6  ;;  %v3405_v2 = vmul.f32 %v8454_v1, %v1121_v40  ;;  %v3492_v41 = vmul.f32 %v8455_v33, %v1208_v45  ;;  %v3493_v46 = vmul.f32 %v5512_v8, %v1209_v3  ;;  %v1211_v53 = vld [vmem:[%s5496_s28 + $0x1f18] sm:$0xff]  ;;  %v8466_v40 = vld [vmem:[#allocation23_spill] sm:$0xff]  ;;  %v1124_v45 = vld [vmem:[%s5496_s28 + $0x1c60] sm:$0xff] }
 0x243   : > { %v4445_v59 = vadd.f32 %v4444_v4, %v3395_v60  ;;  %v4404_v13 = vadd.f32 %v4403_v42, %v3355_v9  ;;  %v4495_v58 = vadd.f32 %v4494_v16, %v3443_v37  ;;  %v4454_v22 = vadd.f32 %v4453_v10, %v3403_v14  ;;  %v7735_v60 = vpop.xlane.xlu0 %3885  ;;  %v7737_v4 = vpop.xlane.xlu1 %3984  ;;  %v1077_v9 = vld [vmem:[%s5496_s28 + $0x1ae8] sm:$0xff]  ;;  %v1164_v14 = vld [vmem:[%s5496_s28 + $0x1da0] sm:$0xff] }
 0x244   : > { %v3358_v6 = vmul.f32 %v8370_v11, %v1074_v61  ;;  %v3359_v0 = vmul.f32 %v8365_v17, %v1075_v29  ;;  %v3446_v1 = vmul.f32 %v8466_v40, %v1162_v57  ;;  %v3406_v3 = vmul.f32 %v8446_v7, %v1122_v34  ;;  %8467 = vst [vmem:[#allocation33_spill] sm:$0xff] %v7735_v60  ;;  %v1212_v29 = vld [vmem:[%s5496_s28 + $0x1f20] sm:$0xff]  ;;  %v1125_v10 = vld [vmem:[%s5496_s28 + $0x1c68] sm:$0xff]  ;;  %v1078_v7 = vld [vmem:[%s5496_s28 + $0x1af0] sm:$0xff] }
 0x245   : > { %8468 = vst [vmem:[#allocation10_spill] sm:$0xff] %v7737_v4  ;;  %4446 = vadd.xlane.f32.xlu1 %v4445_v59  ;;  %v4405_v37 = vadd.f32 %v4404_v13, %v3356_v47  ;;  %v4496_v61 = vadd.f32 %v4495_v58, %v3444_v49  ;;  %v4455_v42 = vadd.f32 %v4454_v22, %v3404_v44  ;;  %v8469_v4 = vld [vmem:[#allocation12_spill] sm:$0xff]  ;;  %v1165_v13 = vld [vmem:[%s5496_s28 + $0x1da8] sm:$0xff] }
 0x246   : > { %v3494_v16 = vmul.f32 %v8355_v5, %v1210_v32  ;;  %v3360_v57 = vmul.f32 %v8347_v20, %v1076_v30  ;;  %v3447_v34 = vmul.f32 %v8338_v25, %v1163_v27  ;;  %v3407_v60 = vmul.f32 %v5579_v50, %v1123_v55  ;;  %v1213_v58 = vld [vmem:[%s5496_s28 + $0x1f28] sm:$0xff] }
 0x247   : > { %v3495_v59 = vmul.f32 %v8469_v4, %v1211_v53  ;;  %v4406_v47 = vadd.f32 %v4405_v37, %v3357_v36  ;;  %v4497_v49 = vadd.f32 %v4496_v61, %v3445_v48  ;;  %v4456_v44 = vadd.f32 %v4455_v42, %v3405_v2  ;;  %v1166_v53 = vld [vmem:[%s5496_s28 + $0x1db0] sm:$0xff]  ;;  %v1175_v42 = vld [vmem:[%s5496_s28 + $0x1df8] sm:$0xff] }
 0x248   : > { %v4547_v32 = vadd.f32 %v3493_v46, %v3492_v41  ;;  %v3361_v30 = vmul.f32 %v8348_v52, %v1077_v9  ;;  %v3448_v27 = vmul.f32 %v5614_v18, %v1164_v14  ;;  %v3408_v22 = vmul.f32 %v5582_v51, %v1124_v45  ;;  %v1126_v36 = vld [vmem:[%s5496_s28 + $0x1c70] sm:$0xff]  ;;  %v1127_v9 = vld [vmem:[%s5496_s28 + $0x1c78] sm:$0xff] }
 0x249   : > { %v3496_v55 = vmul.f32 %v5535_v21, %v1212_v29  ;;  %v4407_v50 = vadd.f32 %v4406_v47, %v3358_v6  ;;  %v4498_v4 = vadd.f32 %v4497_v49, %v3446_v1  ;;  %v4457_v48 = vadd.f32 %v4456_v44, %v3406_v3  ;;  %v1214_v2 = vld [vmem:[%s5496_s28 + $0x1f30] sm:$0xff]  ;;  %v7763_v6 = vpop.xlane.xlu0 %3951  ;;  %v7765_v1 = vpop.xlane.xlu1 %4050  ;;  %v1167_v3 = vld [vmem:[%s5496_s28 + $0x1db8] sm:$0xff]  ;;  %v1128_v49 = vld [vmem:[%s5496_s28 + $0x1c80] sm:$0xff] }
 0x24a   : > { %v4548_v37 = vadd.f32 %v4547_v32, %v3494_v16  ;;  %v3362_v41 = vmul.f32 %v8366_v12, %v1078_v7  ;;  %v3449_v46 = vmul.f32 %v8371_v35, %v1165_v13  ;;  %v3409_v45 = vmul.f32 %v5588_v56, %v1125_v10  ;;  %v1215_v16 = vld [vmem:[%s5496_s28 + $0x1f38] sm:$0xff]  ;;  %v1169_v32 = vld [vmem:[%s5496_s28 + $0x1dc8] sm:$0xff]  ;;  %4593 = vst.msk [vmem:[%s7837_s21 + $0x60] sm:$0xff] %vm4580_vm1, %v7763_v6 }
 0x24b   : > { %v3497_v14 = vmul.f32 %v5544_v26, %v1213_v58  ;;  %v4408_v61 = vadd.f32 %v4407_v50, %v3359_v0  ;;  %v4499_v29 = vadd.f32 %v4498_v4, %v3447_v34  ;;  %v4458_v7 = vadd.f32 %v4457_v48, %v3407_v60  ;;  %v1168_v0 = vld [vmem:[%s5496_s28 + $0x1dc0] sm:$0xff]  ;;  %4596 = vst.msk [vmem:[%s7837_s21 + $0x78] sm:$0xff] %vm4580_vm1, %v7765_v1 }
 0x24c   : > { %v4549_v47 = vadd.f32 %v4548_v37, %v3495_v59  ;;  %v3363_v10 = vmul.f32 %v8362_v63, %v7700_v24  ;;  %v3450_v13 = vmul.f32 %v8407_v31, %v1166_v53  ;;  %v3410_v44 = vmul.f32 %v8368_v19, %v1126_v36  ;;  %v1216_v34 = vld [vmem:[%s5496_s28 + $0x1f40] sm:$0xff]  ;;  %v1129_v36 = vld [vmem:[%s5496_s28 + $0x1c88] sm:$0xff] }
 0x24d   : > { %v3498_v58 = vmul.f32 %v8412_v28, %v1214_v2  ;;  %v4409_v50 = vadd.f32 %v4408_v61, %v3360_v57  ;;  %v4500_v60 = vadd.f32 %v4499_v29, %v3448_v27  ;;  %v4459_v4 = vadd.f32 %v4458_v7, %v3408_v22  ;;  %v8470_v2 = vld [vmem:[#allocation14_spill] sm:$0xff] }
 0x24e   : > { %v4550_v59 = vadd.f32 %v4549_v47, %v3496_v55  ;;  %v7781_v24 = vsel %vm1307_vm0, %v1175_v42, 0.0  ;;  %v3451_v53 = vmul.f32 %v8413_v62, %v1167_v3  ;;  %v3411_v48 = vmul.f32 %v8461_v54, %v1127_v9  ;;  %v1217_v22 = vld [vmem:[%s5496_s28 + $0x1f48] sm:$0xff]  ;;  %v1176_v55 = vld [vmem:[%s5496_s28 + $0x1e00] sm:$0xff] }
 0x24f   : > { %v3499_v57 = vmul.f32 %v8470_v2, %v1215_v16  ;;  %v4410_v37 = vadd.f32 %v4409_v50, %v3361_v30  ;;  %v4501_v61 = vadd.f32 %v4500_v60, %v3449_v46  ;;  %v4460_v27 = vadd.f32 %v4459_v4, %v3409_v45  ;;  %v1177_v7 = vld [vmem:[%s5496_s28 + $0x1e08] sm:$0xff]  ;;  %v8471_v47 = vld [vmem:[#allocation29_spill] sm:$0xff]  ;;  %v7795_v30 = vpop.xlane.xlu0 %4017  ;;  %v7797_v46 = vpop.xlane.xlu1 %4116  ;;  %v1171_v50 = vld [vmem:[%s5496_s28 + $0x1dd8] sm:$0xff] }
 0x250   : > { %v4551_v29 = vadd.f32 %v4550_v59, %v3497_v14  ;;  %v3452_v42 = vmul.f32 %v8358_v15, %v1168_v0  ;;  %v3453_v3 = vmul.f32 %v8471_v47, %v1169_v32  ;;  %v3412_v9 = vmul.f32 %v8465_v38, %v1128_v49  ;;  %v1170_v14 = vld [vmem:[%s5496_s28 + $0x1dd0] sm:$0xff]  ;;  %v1131_v59 = vld [vmem:[%s5496_s28 + $0x1c98] sm:$0xff]  ;;  %v1172_v15 = vld [vmem:[%s5496_s28 + $0x1de0] sm:$0xff]  ;;  %4595 = vst.msk [vmem:[%s7837_s21 + $0x70] sm:$0xff] %vm4580_vm1, %v7795_v30 }
 0x251   : > { %v3500_v16 = vmul.f32 %v8453_v23, %v1216_v34  ;;  %v4411_v45 = vadd.f32 %v4410_v37, %v3362_v41  ;;  %v4502_v60 = vadd.f32 %v4501_v61, %v3450_v13  ;;  %v4461_v0 = vadd.f32 %v4460_v27, %v3410_v44  ;;  %v1218_v32 = vld [vmem:[%s5496_s28 + $0x1f50] sm:$0xff]  ;;  %v8472_v47 = vld [vmem:[#allocation16_spill] sm:$0xff]  ;;  %4598 = vst.msk [vmem:[%s7837_s21 + $0x88] sm:$0xff] %vm4580_vm1, %v7797_v46 }
 0x252   : > { %v4552_v4 = vadd.f32 %v4551_v29, %v3498_v58  ;;  %v3413_v49 = vmul.f32 %v8374_v39, %v1129_v36  ;;  %v3501_v34 = vmul.f32 %v8472_v47, %v1217_v22  ;;  %v1178_v23 = vld [vmem:[%s5496_s28 + $0x1e10] sm:$0xff]  ;;  %v3460_v38 = vmul.f32 %v8455_v33, %v1176_v55  ;;  %v1219_v61 = vld [vmem:[%s5496_s28 + $0x1f58] sm:$0xff]  ;;  %v8473_v29 = vld [vmem:[#allocation17_spill] sm:$0xff] }
 0x253   : > { %v3461_v41 = vmul.f32 %v5512_v8, %v1177_v7  ;;  %v4412_v37 = vadd.f32 %v4411_v45, %v3363_v10  ;;  %v4503_v13 = vadd.f32 %v4502_v60, %v3451_v53  ;;  %v4462_v44 = vadd.f32 %v4461_v0, %v3411_v48  ;;  %v1179_v58 = vld [vmem:[%s5496_s28 + $0x1e18] sm:$0xff]  ;;  %v1132_v10 = vld [vmem:[%s5496_s28 + $0x1ca0] sm:$0xff]  ;;  %v8474_v60 = vld [vmem:[#allocation18_spill] sm:$0xff] }
 0x254   : > { %v4553_v27 = vadd.f32 %v4552_v4, %v3499_v57  ;;  %v3454_v36 = vmul.f32 %v8370_v11, %v1170_v14  ;;  %v3455_v22 = vmul.f32 %v8365_v17, %v1171_v50  ;;  %v3414_v33 = vmul.f32 %v8466_v40, %v1130_v43  ;;  %v1220_v48 = vld [vmem:[%s5496_s28 + $0x1f60] sm:$0xff]  ;;  %v1133_v50 = vld [vmem:[%s5496_s28 + $0x1ca8] sm:$0xff]  ;;  %v4084_v4 = vpop.xlane.xlu0 %4083  ;;  %v1135_v30 = vld [vmem:[%s5496_s28 + $0x1cb8] sm:$0xff] }
 0x255   : > { %v3502_v55 = vmul.f32 %v8473_v29, %v1218_v32  ;;  %4413 = vadd.xlane.f32.xlu0 %v4412_v37  ;;  %v4504_v8 = vadd.f32 %v4503_v13, %v3452_v42  ;;  %v4463_v53 = vadd.f32 %v4462_v44, %v3412_v9  ;;  %v1180_v7 = vld [vmem:[%s5496_s28 + $0x1e20] sm:$0xff]  ;;  %v3462_v45 = vmul.f32 %v8355_v5, %v1178_v23  ;;  %v8475_v32 = vld [vmem:[#allocation12_spill] sm:$0xff]  ;;  %v4183_v37 = vpop.xlane.xlu1 %4182  ;;  %v1173_v9 = vld [vmem:[%s5496_s28 + $0x1de8] sm:$0xff] }
 0x256   : > { %v4554_v57 = vadd.f32 %v4553_v27, %v3500_v16  ;;  %v3456_v14 = vmul.f32 %v8347_v20, %v1172_v15  ;;  %v3415_v43 = vmul.f32 %v8338_v25, %v1131_v59  ;;  %v3503_v0 = vmul.f32 %v8474_v60, %v1219_v61  ;;  %v1221_v44 = vld [vmem:[%s5496_s28 + $0x1f68] sm:$0xff]  ;;  %v1134_v27 = vld [vmem:[%s5496_s28 + $0x1cb0] sm:$0xff]  ;;  %4597 = vst.msk [vmem:[%s7837_s21 + $0x80] sm:$0xff] %vm4580_vm1, %v4084_v4 }
 0x257   : > { %v3463_v42 = vmul.f32 %v8475_v32, %v1179_v58  ;;  %v4505_v13 = vadd.f32 %v4504_v8, %v3453_v3  ;;  %v4464_v16 = vadd.f32 %v4463_v53, %v3413_v49  ;;  %v1181_v23 = vld [vmem:[%s5496_s28 + $0x1e28] sm:$0xff]  ;;  %v4514_v15 = vadd.f32 %v3461_v41, %v3460_v38  ;;  %v1174_v58 = vld [vmem:[%s5496_s28 + $0x1df0] sm:$0xff]  ;;  %v8479_v41 = vld [vmem:[#allocation40_spill] sm:$0xff]  ;;  %4600 = vst.msk [vmem:[%s7837_s21 + $0x98] sm:$0xff] %vm4580_vm1, %v4183_v37 }
 0x258   : > { %v4555_v5 = vadd.f32 %v4554_v57, %v3501_v34  ;;  %v3416_v59 = vmul.f32 %v5614_v18, %v1132_v10  ;;  %v3504_v61 = vmul.f32 %v5582_v51, %v1220_v48  ;;  %v3464_v20 = vmul.f32 %v5535_v21, %v1180_v7  ;;  %v1222_v25 = vld [vmem:[%s5496_s28 + $0x1f70] sm:$0xff]  ;;  %v8476_v34 = vld [vmem:[#allocation37_spill] sm:$0xff]  ;;  %v8477_v21 = vld [vmem:[#allocation38_spill] sm:$0xff]  ;;  %4582 = vst.msk [vmem:[%s7837_s21 + $0x8] sm:$0xff] %vm4580_vm1, %v8479_v41 }
 0x259   : > { %v4506_v32 = vadd.f32 %v4505_v13, %v3454_v36  ;;  %v4465_v60 = vadd.f32 %v4464_v16, %v3414_v33  ;;  %v1182_v8 = vld [vmem:[%s5496_s28 + $0x1e30] sm:$0xff]  ;;  %v4515_v49 = vadd.f32 %v4514_v15, %v3462_v45  ;;  %4583 = vst.msk [vmem:[%s7837_s21 + $0x10] sm:$0xff] %vm4580_vm1, %v8476_v34  ;;  %4581 = vst.msk [vmem:[%s7837_s21] sm:$0xff] %vm4580_vm1, %v8477_v21  ;;  %v8481_v33 = vld [vmem:[#allocation41_spill] sm:$0xff] }
 0x25a   : > { %v4556_v3 = vadd.f32 %v4555_v5, %v3502_v55  ;;  %v8478_v38 = vld [vmem:[#allocation39_spill] sm:$0xff]  ;;  %4585 = vst.msk [vmem:[%s7837_s21 + $0x20] sm:$0xff] %vm4580_vm1, %v8481_v33  ;;  %v8482_v55 = vld [vmem:[#allocation42_spill] sm:$0xff]  ;;  %v8484_v53 = vld [vmem:[#allocation44_spill] sm:$0xff]  ;;  %v3457_v13 = vmul.f32 %v8348_v52, %v1173_v9  ;;  %v3417_v16 = vmul.f32 %v8371_v35, %v1133_v50  ;;  %v3505_v6 = vmul.f32 %v5588_v56, %v1221_v44 }
 0x25b   : > { %4584 = vst.msk [vmem:[%s7837_s21 + $0x18] sm:$0xff] %vm4580_vm1, %v8478_v38  ;;  %v8480_v36 = vld [vmem:[#allocation47_spill] sm:$0xff]  ;;  %4588 = vst.msk [vmem:[%s7837_s21 + $0x38] sm:$0xff] %vm4580_vm1, %v8482_v55  ;;  %v8485_v48 = vld [vmem:[#allocation45_spill] sm:$0xff]  ;;  %v3465_v1 = vmul.f32 %v5544_v26, %v1181_v23  ;;  %v4507_v5 = vadd.f32 %v4506_v32, %v3455_v22  ;;  %v4466_v15 = vadd.f32 %v4465_v60, %v3415_v43 }
 0x25c   : > { %4586 = vst.msk [vmem:[%s7837_s21 + $0x28] sm:$0xff] %vm4580_vm1, %v8480_v36  ;;  %v8483_v10 = vld [vmem:[#allocation43_spill] sm:$0xff]  ;;  %4590 = vst.msk [vmem:[%s7837_s21 + $0x48] sm:$0xff] %vm4580_vm1, %v8484_v53  ;;  %v8486_v57 = vld [vmem:[#allocation46_spill] sm:$0xff]  ;;  %v4557_v46 = vadd.f32 %v4556_v3, %v3503_v0  ;;  %v4516_v4 = vadd.f32 %v4515_v49, %v3463_v42  ;;  %v3458_v37 = vmul.f32 %v8366_v12, %v1174_v58 }
 0x25d   : > { %4587 = vst.msk [vmem:[%s7837_s21 + $0x30] sm:$0xff] %vm4580_vm1, %v8483_v10  ;;  %4589 = vst.msk [vmem:[%s7837_s21 + $0x40] sm:$0xff] %vm4580_vm1, %v8485_v48  ;;  %v8487_v7 = vld [vmem:[#allocation33_spill] sm:$0xff]  ;;  %v8488_v45 = vld [vmem:[#allocation10_spill] sm:$0xff]  ;;  %v3418_v9 = vmul.f32 %v8407_v31, %v1134_v27  ;;  %v3506_v50 = vmul.f32 %v8368_v19, %v1222_v25  ;;  %v3466_v44 = vmul.f32 %v8412_v28, %v1182_v8 }
 0x25e   : > { %4592 = vst.msk [vmem:[%s7837_s21 + $0x58] sm:$0xff] %vm4580_vm1, %v8486_v57  ;;  %4591 = vst.msk [vmem:[%s7837_s21 + $0x50] sm:$0xff] %vm4580_vm1, %v8487_v7  ;;  %v1223_v34 = vld [vmem:[%s5496_s28 + $0x1f78] sm:$0xff]  ;;  %v4508_v38 = vadd.f32 %v4507_v5, %v3456_v14  ;;  %v1136_v26 = vld [vmem:[%s5496_s28 + $0x1cc0] sm:$0xff]  ;;  %v4467_v22 = vadd.f32 %v4466_v15, %v3416_v59  ;;  %v4558_v43 = vadd.f32 %v4557_v46, %v3504_v61 }
 0x25f   : > { %4594 = vst.msk [vmem:[%s7837_s21 + $0x68] sm:$0xff] %vm4580_vm1, %v8488_v45  ;;  %v1183_v21 = vld [vmem:[%s5496_s28 + $0x1e38] sm:$0xff]  ;;  %v1224_v23 = vld [vmem:[%s5496_s28 + $0x1f80] sm:$0xff]  ;;  %v4517_v0 = vadd.f32 %v4516_v4, %v3464_v20  ;;  %v3459_v42 = vmul.f32 %v8362_v63, %v7781_v24  ;;  %v3419_v58 = vmul.f32 %v8413_v62, %v1135_v30  ;;  %v3507_v25 = vmul.f32 %v8461_v54, %v1223_v34  ;;  %v1137_v14 = vld [vmem:[%s5496_s28 + $0x1cc8] sm:$0xff] }
 0x260   : > { %v1184_v60 = vld [vmem:[%s5496_s28 + $0x1e40] sm:$0xff]  ;;  %v3467_v27 = vmul.f32 %v8470_v2, %v1183_v21  ;;  %v4509_v28 = vadd.f32 %v4508_v38, %v3457_v13  ;;  %v4468_v32 = vadd.f32 %v4467_v22, %v3417_v16  ;;  %v1225_v59 = vld [vmem:[%s5496_s28 + $0x1f88] sm:$0xff]  ;;  %v4559_v3 = vadd.f32 %v4558_v43, %v3505_v6  ;;  %v8489_v20 = vld [vmem:[#allocation28_spill] sm:$0xff] }
 0x261   : > { %v1185_v61 = vld [vmem:[%s5496_s28 + $0x1e48] sm:$0xff]  ;;  %v4518_v8 = vadd.f32 %v4517_v0, %v3465_v1  ;;  %v3420_v49 = vmul.f32 %v8489_v20, %v1136_v26  ;;  %v8490_v41 = vld [vmem:[#allocation21_spill] sm:$0xff]  ;;  %v8491_v36 = vld [vmem:[#allocation15_spill] sm:$0xff]  ;;  %v3509_v13 = vmul.f32 %v8374_v39, %v1225_v59 }
 0x262   : > { %v3508_v24 = vmul.f32 %v8490_v41, %v1224_v23  ;;  %v3468_v33 = vmul.f32 %v8491_v36, %v1184_v60  ;;  %v4510_v55 = vadd.f32 %v4509_v28, %v3458_v37  ;;  %v1138_v10 = vld [vmem:[%s5496_s28 + $0x1cd0] sm:$0xff]  ;;  %v4469_v2 = vadd.f32 %v4468_v32, %v3418_v9  ;;  %v8492_v7 = vld [vmem:[#allocation29_spill] sm:$0xff]  ;;  %v4150_v1 = vpop.xlane.xlu0 %4149  ;;  %v1139_v30 = vld [vmem:[%s5496_s28 + $0x1cd8] sm:$0xff] }
 0x263   : > { %v1226_v53 = vld [vmem:[%s5496_s28 + $0x1f90] sm:$0xff]  ;;  %v4560_v48 = vadd.f32 %v4559_v3, %v3506_v50  ;;  %v4519_v57 = vadd.f32 %v4518_v8, %v3466_v44  ;;  %v3421_v45 = vmul.f32 %v8492_v7, %v1137_v14  ;;  %v3469_v6 = vmul.f32 %v8472_v47, %v1185_v61  ;;  %v1227_v34 = vld [vmem:[%s5496_s28 + $0x1f98] sm:$0xff]  ;;  %4599 = vst.msk [vmem:[%s7837_s21 + $0x90] sm:$0xff] %vm4580_vm1, %v4150_v1  ;;  %v1140_v47 = vld [vmem:[%s5496_s28 + $0x1ce0] sm:$0xff] }
 0x264   : > { %v1186_v16 = vld [vmem:[%s5496_s28 + $0x1e50] sm:$0xff]  ;;  %v4511_v5 = vadd.f32 %v4510_v55, %v3459_v42  ;;  %v4470_v15 = vadd.f32 %v4469_v2, %v3419_v58  ;;  %v3422_v4 = vmul.f32 %v8370_v11, %v1138_v10  ;;  %v3510_v37 = vmul.f32 %v8466_v40, %v1226_v53  ;;  %v1187_v9 = vld [vmem:[%s5496_s28 + $0x1e58] sm:$0xff]  ;;  %v1228_v44 = vld [vmem:[%s5496_s28 + $0x1fa0] sm:$0xff] }
 0x265   : > { %v4561_v46 = vadd.f32 %v4560_v48, %v3507_v25  ;;  %v4520_v21 = vadd.f32 %v4519_v57, %v3467_v27  ;;  %v3470_v26 = vmul.f32 %v8473_v29, %v1186_v16  ;;  %v3423_v23 = vmul.f32 %v8365_v17, %v1139_v30  ;;  %v8493_v43 = vld [vmem:[#allocation24_spill] sm:$0xff]  ;;  %v1188_v0 = vld [vmem:[%s5496_s28 + $0x1e60] sm:$0xff]  ;;  %v1141_v42 = vld [vmem:[%s5496_s28 + $0x1ce8] sm:$0xff] }
 0x266   : > { %4512 = vadd.xlane.f32.xlu1 %v4511_v5  ;;  %v4471_v50 = vadd.f32 %v4470_v15, %v3420_v49  ;;  %v3511_v60 = vmul.f32 %v8493_v43, %v1227_v34  ;;  %v1143_v58 = vld [vmem:[%s5496_s28 + $0x1cf8] sm:$0xff]  ;;  %v1229_v27 = vld [vmem:[%s5496_s28 + $0x1fa8] sm:$0xff]  ;;  %v3512_v29 = vmul.f32 %v5614_v18, %v1228_v44  ;;  %v1142_v49 = vld [vmem:[%s5496_s28 + $0x1cf0] sm:$0xff]  ;;  %v3472_v55 = vmul.f32 %v5582_v51, %v1188_v0 }
 0x267   : > { %v4562_v38 = vadd.f32 %v4561_v46, %v3508_v24  ;;  %v4521_v22 = vadd.f32 %v4520_v21, %v3468_v33  ;;  %v8494_v14 = vld [vmem:[#allocation18_spill] sm:$0xff]  ;;  %v8495_v3 = vld [vmem:[#allocation32_spill] sm:$0xff]  ;;  %v1230_v36 = vld [vmem:[%s5496_s28 + $0x1fb0] sm:$0xff]  ;;  %v2235_v53 = vsel %vm1307_vm0, %v1143_v58, 0.0  ;;  %v3425_v48 = vmul.f32 %v8348_v52, %v1141_v42 }
 0x268   : > { %v4472_v25 = vadd.f32 %v4471_v50, %v3421_v45  ;;  %v3471_v32 = vmul.f32 %v8494_v14, %v1187_v9  ;;  %v3424_v61 = vmul.f32 %v8495_v3, %v1140_v47  ;;  %v1189_v8 = vld [vmem:[%s5496_s28 + $0x1e68] sm:$0xff]  ;;  %v3513_v57 = vmul.f32 %v8371_v35, %v1229_v27  ;;  %v1190_v45 = vld [vmem:[%s5496_s28 + $0x1e70] sm:$0xff]  ;;  %v1231_v16 = vld [vmem:[%s5496_s28 + $0x1fb8] sm:$0xff] }
 0x269   : > { %v4563_v28 = vadd.f32 %v4562_v38, %v3509_v13  ;;  %v4522_v59 = vadd.f32 %v4521_v22, %v3469_v6  ;;  %v3473_v1 = vmul.f32 %v5588_v56, %v1189_v8  ;;  %v3426_v30 = vmul.f32 %v8366_v12, %v1142_v49  ;;  %v1191_v15 = vld [vmem:[%s5496_s28 + $0x1e78] sm:$0xff]  ;;  %v1232_v46 = vld [vmem:[%s5496_s28 + $0x1fc0] sm:$0xff]  ;;  %v1233_v44 = vld [vmem:[%s5496_s28 + $0x1fc8] sm:$0xff] }
 0x26a   : > { %v4473_v24 = vadd.f32 %v4472_v25, %v3422_v4  ;;  %v3514_v51 = vmul.f32 %v8407_v31, %v1230_v36  ;;  %v3474_v4 = vmul.f32 %v8368_v19, %v1190_v45  ;;  %v3427_v9 = vmul.f32 %v8362_v63, %v2235_v53  ;;  %v1192_v56 = vld [vmem:[%s5496_s28 + $0x1e80] sm:$0xff]  ;;  %v1193_v19 = vld [vmem:[%s5496_s28 + $0x1e88] sm:$0xff]  ;;  %v1234_v25 = vld [vmem:[%s5496_s28 + $0x1fd0] sm:$0xff] }
 0x26b   : > { %v4564_v33 = vadd.f32 %v4563_v28, %v3510_v37  ;;  %v4523_v10 = vadd.f32 %v4522_v59, %v3470_v26  ;;  %v3515_v47 = vmul.f32 %v8413_v62, %v1231_v16  ;;  %v3475_v26 = vmul.f32 %v8461_v54, %v1191_v15  ;;  %v1194_v28 = vld [vmem:[%s5496_s28 + $0x1e90] sm:$0xff]  ;;  %v1197_v45 = vld [vmem:[%s5496_s28 + $0x1ea8] sm:$0xff] }
 0x26c   : > { %v4474_v13 = vadd.f32 %v4473_v24, %v3423_v23  ;;  %v3516_v23 = vmul.f32 %v8489_v20, %v1232_v46  ;;  %v3476_v42 = vmul.f32 %v8490_v41, %v1192_v56  ;;  %v3517_v27 = vmul.f32 %v8492_v7, %v1233_v44  ;;  %v1195_v41 = vld [vmem:[%s5496_s28 + $0x1e98] sm:$0xff] }
 0x26d   : > { %v4565_v6 = vadd.f32 %v4564_v33, %v3511_v60  ;;  %v4524_v5 = vadd.f32 %v4523_v10, %v3471_v32  ;;  %v3477_v59 = vmul.f32 %v8374_v39, %v1193_v19  ;;  %v3518_v8 = vmul.f32 %v8370_v11, %v1234_v25  ;;  %v1236_v33 = vld [vmem:[%s5496_s28 + $0x1fe0] sm:$0xff]  ;;  %v1202_v19 = vld [vmem:[%s5496_s28 + $0x1ed0] sm:$0xff] }
 0x26e   : > { %v4475_v34 = vadd.f32 %v4474_v13, %v3424_v61  ;;  %v3478_v24 = vmul.f32 %v8466_v40, %v1194_v28  ;;  %v3479_v53 = vmul.f32 %v8493_v43, %v1195_v41  ;;  %v1239_v13 = vld [vmem:[%s5496_s28 + $0x1ff8] sm:$0xff]  ;;  %v3520_v16 = vmul.f32 %v8495_v3, %v1236_v33 }
 0x26f   : > { %v4566_v21 = vadd.f32 %v4565_v6, %v3512_v29  ;;  %v4525_v37 = vadd.f32 %v4524_v5, %v3472_v55  ;;  %v1235_v29 = vld [vmem:[%s5496_s28 + $0x1fd8] sm:$0xff]  ;;  %v1196_v55 = vld [vmem:[%s5496_s28 + $0x1ea0] sm:$0xff]  ;;  %v1238_v5 = vld [vmem:[%s5496_s28 + $0x1ff0] sm:$0xff]  ;;  %v3481_v43 = vmul.f32 %v8371_v35, %v1197_v45  ;;  %v2331_v46 = vsel %vm1307_vm0, %v1239_v13, 0.0 }
 0x270   : > { %v4476_v50 = vadd.f32 %v4475_v34, %v3425_v48  ;;  %v3519_v39 = vmul.f32 %v8365_v17, %v1235_v29  ;;  %v3480_v40 = vmul.f32 %v5614_v18, %v1196_v55  ;;  %v3523_v56 = vmul.f32 %v8362_v63, %v2331_v46 }
 0x271   : > { %v4567_v38 = vadd.f32 %v4566_v21, %v3513_v57  ;;  %v4526_v22 = vadd.f32 %v4525_v37, %v3473_v1  ;;  %v1237_v57 = vld [vmem:[%s5496_s28 + $0x1fe8] sm:$0xff]  ;;  %v1199_v21 = vld [vmem:[%s5496_s28 + $0x1eb8] sm:$0xff] }
 0x272   : > { %v4477_v60 = vadd.f32 %v4476_v50, %v3426_v30  ;;  %v4249_v14 = vpop.xlane.xlu1 %4248  ;;  %v1198_v30 = vld [vmem:[%s5496_s28 + $0x1eb0] sm:$0xff]  ;;  %v3483_v35 = vmul.f32 %v8413_v62, %v1199_v21  ;;  %v3486_v62 = vmul.f32 %v8370_v11, %v1202_v19 }
 0x273   : > { %v4568_v0 = vadd.f32 %v4567_v38, %v3514_v51  ;;  %v4527_v58 = vadd.f32 %v4526_v22, %v3474_v4  ;;  %4602 = vst.msk [vmem:[%s7837_s21 + $0xa8] sm:$0xff] %vm4580_vm1, %v4249_v14  ;;  %v3521_v51 = vmul.f32 %v8348_v52, %v1237_v57  ;;  %v3522_v4 = vmul.f32 %v8366_v12, %v1238_v5  ;;  %v1201_v38 = vld [vmem:[%s5496_s28 + $0x1ec8] sm:$0xff] }
 0x274   : > { %v4478_v54 = vadd.f32 %v4477_v60, %v3427_v9  ;;  %v3482_v18 = vmul.f32 %v8407_v31, %v1198_v30  ;;  %v1205_v14 = vld [vmem:[%s5496_s28 + $0x1ee8] sm:$0xff] }
 0x275   : > { %v4569_v32 = vadd.f32 %v4568_v0, %v3515_v47  ;;  %v4528_v61 = vadd.f32 %v4527_v58, %v3475_v26  ;;  %v1200_v47 = vld [vmem:[%s5496_s28 + $0x1ec0] sm:$0xff]  ;;  %v3485_v0 = vmul.f32 %v8492_v7, %v1201_v38  ;;  %v1203_v58 = vld [vmem:[%s5496_s28 + $0x1ed8] sm:$0xff]  ;;  %v1206_v7 = vld [vmem:[%s5496_s28 + $0x1ef0] sm:$0xff] }
 0x276   : > { %4479 = vadd.xlane.f32.xlu0 %v4478_v54  ;;  %v3484_v22 = vmul.f32 %v8489_v20, %v1200_v47  ;;  %v3487_v28 = vmul.f32 %v8365_v17, %v1203_v58  ;;  %v1207_v54 = vld [vmem:[%s5496_s28 + $0x1ef8] sm:$0xff]  ;;  %v3490_v41 = vmul.f32 %v8366_v12, %v1206_v7 }
 0x277   : > { %v4570_v49 = vadd.f32 %v4569_v32, %v3516_v23  ;;  %v4529_v36 = vadd.f32 %v4528_v61, %v3476_v42  ;;  %v3489_v61 = vmul.f32 %v8348_v52, %v1205_v14  ;;  %v2299_v11 = vsel %vm1307_vm0, %v1207_v54, 0.0 }
 0x279   : > { %v4571_v10 = vadd.f32 %v4570_v49, %v3517_v27  ;;  %v4530_v48 = vadd.f32 %v4529_v36, %v3477_v59  ;;  %v1204_v27 = vld [vmem:[%s5496_s28 + $0x1ee0] sm:$0xff] }
 0x27a   : > { %v3488_v32 = vmul.f32 %v8495_v3, %v1204_v27 }
 0x27b   : > { %v4572_v6 = vadd.f32 %v4571_v10, %v3518_v8  ;;  %v4531_v1 = vadd.f32 %v4530_v48, %v3478_v24  ;;  %v3491_v8 = vmul.f32 %v8362_v63, %v2299_v11 }
 0x27d   : > { %v4573_v15 = vadd.f32 %v4572_v6, %v3519_v39  ;;  %v4532_v34 = vadd.f32 %v4531_v1, %v3479_v53 }
 0x27f   : > { %v4574_v37 = vadd.f32 %v4573_v15, %v3520_v16  ;;  %v4533_v9 = vadd.f32 %v4532_v34, %v3480_v40 }
 0x281   : > { %v4575_v50 = vadd.f32 %v4574_v37, %v3521_v51  ;;  %v4534_v44 = vadd.f32 %v4533_v9, %v3481_v43 }
 0x282   : > { %v4216_v31 = vpop.xlane.xlu0 %4215 }
 0x283   : > { %v4576_v26 = vadd.f32 %v4575_v50, %v3522_v4  ;;  %v4535_v23 = vadd.f32 %v4534_v44, %v3482_v18  ;;  %4601 = vst.msk [vmem:[%s7837_s21 + $0xa0] sm:$0xff] %vm4580_vm1, %v4216_v31 }
 0x285   : > { %v4577_v60 = vadd.f32 %v4576_v26, %v3523_v56  ;;  %v4536_v42 = vadd.f32 %v4535_v23, %v3483_v35 }
 0x287   : > { %4578 = vadd.xlane.f32.xlu1 %v4577_v60  ;;  %v4537_v25 = vadd.f32 %v4536_v42, %v3484_v22 }
 0x289   : > { %v4538_v20 = vadd.f32 %v4537_v25, %v3485_v0 }
 0x28b   : > { %v4539_v59 = vadd.f32 %v4538_v20, %v3486_v62 }
 0x28d   : > { %v4540_v29 = vadd.f32 %v4539_v59, %v3487_v28 }
 0x28f   : > { %v4541_v17 = vadd.f32 %v4540_v29, %v3488_v32 }
 0x291   : > { %v4542_v49 = vadd.f32 %v4541_v17, %v3489_v61  ;;  %v4315_v24 = vpop.xlane.xlu1 %4314 }
 0x292   : > { %4604 = vst.msk [vmem:[%s7837_s21 + $0xb8] sm:$0xff] %vm4580_vm1, %v4315_v24 }
 0x293   : > { %v4543_v3 = vadd.f32 %v4542_v49, %v3490_v41 }
 0x295   : > { %v4544_v36 = vadd.f32 %v4543_v3, %v3491_v8 }
 0x297   : > { %4545 = vadd.xlane.f32.xlu0 %v4544_v36 }
 0x2a2   : > { %v4282_v52 = vpop.xlane.xlu0 %4281 }
 0x2a3   : > { %4603 = vst.msk [vmem:[%s7837_s21 + $0xb0] sm:$0xff] %vm4580_vm1, %v4282_v52 }
 0x2b2   : > { %v4381_v12 = vpop.xlane.xlu1 %4380 }
 0x2b3   : > { %4606 = vst.msk [vmem:[%s7837_s21 + $0xc8] sm:$0xff] %vm4580_vm1, %v4381_v12 }
 0x2c2   : > { %v4348_v2 = vpop.xlane.xlu0 %4347 }
 0x2c3   : > { %4605 = vst.msk [vmem:[%s7837_s21 + $0xc0] sm:$0xff] %vm4580_vm1, %v4348_v2 }
 0x2d2   : > { %v4447_v63 = vpop.xlane.xlu1 %4446 }
 0x2d3   : > { %4608 = vst.msk [vmem:[%s7837_s21 + $0xd8] sm:$0xff] %vm4580_vm1, %v4447_v63 }
 0x2e2   : > { %v4414_v33 = vpop.xlane.xlu0 %4413 }
 0x2e3   : > { %4607 = vst.msk [vmem:[%s7837_s21 + $0xd0] sm:$0xff] %vm4580_vm1, %v4414_v33 }
 0x2f3   : > { %v4513_v55 = vpop.xlane.xlu1 %4512 }
 0x2f4   : > { %4610 = vst.msk [vmem:[%s7837_s21 + $0xe8] sm:$0xff] %vm4580_vm1, %v4513_v55 }
 0x303   : > { %v4480_v39 = vpop.xlane.xlu0 %4479 }
 0x304   : > { %4609 = vst.msk [vmem:[%s7837_s21 + $0xe0] sm:$0xff] %vm4580_vm1, %v4480_v39 }
 0x314   : > { %v4579_v10 = vpop.xlane.xlu1 %4578 }
 0x315   : > { %4612 = vst.msk [vmem:[%s7837_s21 + $0xf8] sm:$0xff] %vm4580_vm1, %v4579_v10 }
 0x31f   : > { %4619 = sbr.rel (!%p8497_p6) target bundleno = 862 (0x35e), region = 40 }
 0x324   : > { %v4546_v53 = vpop.xlane.xlu0 %4545 }
 0x325   : > { %4611 = vst.msk [vmem:[%s7837_s21 + $0xf0] sm:$0xff] %vm4580_vm1, %v4546_v53 }
 0x326   : > { %s8513_s4 = smov (!%p4622_p7, %s4621_s4), 32 }
 0x327   : > { %s5008_s15 = sshll.u32 %s8513_s4, 7 }
 0x328   : > { %p5011_p9 = scmp.eq.s32.totalorder %s5008_s15, 0 }
 0x329   : > { %s8051_s23 = sshrl.u32 (!%p5011_p9), %s8513_s4, 5 }
 0x32a   : > { %4630 = sbr.rel (%p5011_p9) target bundleno = 862 (0x35e), region = 44  ;;  %p5012_p11 = scmp.le.s32.totalorder (!%p5011_p9), %s8051_s23, 0 }
 0x331   : > { %4924 = sbr.rel (%p5012_p11) target bundleno = 841 (0x349), region = 128  ;;  %s8498_s12 = smov (!%p5012_p11), %s8045_s9 }
 0x332   : > { %s8499_s17 = smov (!%p5012_p11), %s7837_s21  ;;  %s8060_s19 = smov (!%p5012_p11), 0  }
 0x333   : > { %s8062_s25 = smov (!%p5012_p11), 0  }
 0x338 LB: >> { %v4754_v48 = vld [vmem:[%s5305_s17] sm:$0xff]  ;;  %v4756_v57 = vld [vmem:[%s5305_s17 + $0x8] sm:$0xff]  ;;  %v4758_v45 = vld [vmem:[%s5305_s17 + $0x10] sm:$0xff]  ;;  %s4818_s27 = sadd.s32 1, %s5309_s19  ;;  %s4748_s25 = sadd.s32 1, %s5313_s25   ;;  %s5313_s25 = sphi %s8062_s25, %s4748_s25   ;;  %s5309_s19 = sphi %s8060_s19, %s8502_s19   ;;  %s5305_s17 = sphi %s8499_s17, %s8501_s17   ;;  %s5301_s12 = sphi %s8498_s12, %s8500_s12  }
 0x339   : >> { %4755 = vst [vmem:[%s5301_s12] sm:$0xff] %v4754_v48  ;;  %4757 = vst [vmem:[%s5301_s12 + $0x8] sm:$0xff] %v4756_v57  ;;  %v4760_v13 = vld [vmem:[%s5305_s17 + $0x18] sm:$0xff]  ;;  %v4762_v16 = vld [vmem:[%s5305_s17 + $0x20] sm:$0xff]  ;;  %p4819_p13 = scmp.ge.s32.totalorder %s4818_s27, %s8051_s23  ;;  %p4747_p1 = scmp.ge.s32.totalorder %s4748_s25, %s8051_s23 }
 0x33a   : >> { %4759 = vst [vmem:[%s5301_s12 + $0x10] sm:$0xff] %v4758_v45  ;;  %v4764_v6 = vld [vmem:[%s5305_s17 + $0x28] sm:$0xff]  ;;  %4761 = vst [vmem:[%s5301_s12 + $0x18] sm:$0xff] %v4760_v13  ;;  %v4766_v40 = vld [vmem:[%s5305_s17 + $0x30] sm:$0xff] }
 0x33b   : >> { %4763 = vst [vmem:[%s5301_s12 + $0x20] sm:$0xff] %v4762_v16  ;;  %4765 = vst [vmem:[%s5301_s12 + $0x28] sm:$0xff] %v4764_v6  ;;  %v4768_v1 = vld [vmem:[%s5305_s17 + $0x38] sm:$0xff]  ;;  %v4770_v5 = vld [vmem:[%s5305_s17 + $0x40] sm:$0xff]  ;;  %s8515_s27 = smov (%p4819_p13, %s4818_s27), 0 }
 0x33c   : >> { %4767 = vst [vmem:[%s5301_s12 + $0x30] sm:$0xff] %v4766_v40  ;;  %4769 = vst [vmem:[%s5301_s12 + $0x38] sm:$0xff] %v4768_v1  ;;  %v4772_v30 = vld [vmem:[%s5305_s17 + $0x48] sm:$0xff]  ;;  %v4774_v51 = vld [vmem:[%s5305_s17 + $0x50] sm:$0xff]  ;;  %s5013_s26 = sshll.u32 %s8515_s27, 8  ;;  %s8502_s19 = smov %s8515_s27 }
 0x33d   : >> { %4771 = vst [vmem:[%s5301_s12 + $0x40] sm:$0xff] %v4770_v5  ;;  %v4776_v15 = vld [vmem:[%s5305_s17 + $0x58] sm:$0xff]  ;;  %4773 = vst [vmem:[%s5301_s12 + $0x48] sm:$0xff] %v4772_v30  ;;  %v4778_v43 = vld [vmem:[%s5305_s17 + $0x60] sm:$0xff]  ;;  %s8118_s18 = scalar_lea.vmem %s7837_s21, %s5013_s26 [#allocation6]   ;;  %s4824_s30 = scalar_lea.vmem %s8045_s9, %s5013_s26  }
 0x33e   : >> { %4775 = vst [vmem:[%s5301_s12 + $0x50] sm:$0xff] %v4774_v51  ;;  %4777 = vst [vmem:[%s5301_s12 + $0x58] sm:$0xff] %v4776_v15  ;;  %v4780_v34 = vld [vmem:[%s5305_s17 + $0x68] sm:$0xff]  ;;  %v4782_v46 = vld [vmem:[%s5305_s17 + $0x70] sm:$0xff] }
 0x33f   : >> { %4779 = vst [vmem:[%s5301_s12 + $0x60] sm:$0xff] %v4778_v43  ;;  %4781 = vst [vmem:[%s5301_s12 + $0x68] sm:$0xff] %v4780_v34  ;;  %v4784_v21 = vld [vmem:[%s5305_s17 + $0x78] sm:$0xff]  ;;  %v4786_v4 = vld [vmem:[%s5305_s17 + $0x80] sm:$0xff] }
 0x340   : >> { %4783 = vst [vmem:[%s5301_s12 + $0x70] sm:$0xff] %v4782_v46  ;;  %v4788_v37 = vld [vmem:[%s5305_s17 + $0x88] sm:$0xff]  ;;  %4785 = vst [vmem:[%s5301_s12 + $0x78] sm:$0xff] %v4784_v21  ;;  %v4790_v18 = vld [vmem:[%s5305_s17 + $0x90] sm:$0xff] }
 0x341   : >> { %4787 = vst [vmem:[%s5301_s12 + $0x80] sm:$0xff] %v4786_v4  ;;  %4789 = vst [vmem:[%s5301_s12 + $0x88] sm:$0xff] %v4788_v37  ;;  %v4792_v9 = vld [vmem:[%s5305_s17 + $0x98] sm:$0xff]  ;;  %v4794_v47 = vld [vmem:[%s5305_s17 + $0xa0] sm:$0xff] }
 0x342   : >> { %4791 = vst [vmem:[%s5301_s12 + $0x90] sm:$0xff] %v4790_v18  ;;  %4793 = vst [vmem:[%s5301_s12 + $0x98] sm:$0xff] %v4792_v9  ;;  %v4796_v56 = vld [vmem:[%s5305_s17 + $0xa8] sm:$0xff]  ;;  %v4798_v50 = vld [vmem:[%s5305_s17 + $0xb0] sm:$0xff]  ;;  %4750 = sbr.rel (!%p4747_p1) target bundleno = 824 (0x338), region = 134 }
 0x343   : >> { %4795 = vst [vmem:[%s5301_s12 + $0xa0] sm:$0xff] %v4794_v47  ;;  %v4800_v35 = vld [vmem:[%s5305_s17 + $0xb8] sm:$0xff]  ;;  %4797 = vst [vmem:[%s5301_s12 + $0xa8] sm:$0xff] %v4796_v56  ;;  %v4802_v44 = vld [vmem:[%s5305_s17 + $0xc0] sm:$0xff] }
 0x344   : >> { %4799 = vst [vmem:[%s5301_s12 + $0xb0] sm:$0xff] %v4798_v50  ;;  %4801 = vst [vmem:[%s5301_s12 + $0xb8] sm:$0xff] %v4800_v35  ;;  %v4804_v38 = vld [vmem:[%s5305_s17 + $0xc8] sm:$0xff]  ;;  %v4806_v26 = vld [vmem:[%s5305_s17 + $0xd0] sm:$0xff] }
 0x345   : >> { %4803 = vst [vmem:[%s5301_s12 + $0xc0] sm:$0xff] %v4802_v44  ;;  %4805 = vst [vmem:[%s5301_s12 + $0xc8] sm:$0xff] %v4804_v38  ;;  %v4808_v22 = vld [vmem:[%s5305_s17 + $0xd8] sm:$0xff]  ;;  %v4810_v23 = vld [vmem:[%s5305_s17 + $0xe0] sm:$0xff] }
 0x346   : >> { %4807 = vst [vmem:[%s5301_s12 + $0xd0] sm:$0xff] %v4806_v26  ;;  %v4812_v19 = vld [vmem:[%s5305_s17 + $0xe8] sm:$0xff]  ;;  %4809 = vst [vmem:[%s5301_s12 + $0xd8] sm:$0xff] %v4808_v22  ;;  %v4814_v31 = vld [vmem:[%s5305_s17 + $0xf0] sm:$0xff] }
 0x347   : >> { %4811 = vst [vmem:[%s5301_s12 + $0xe0] sm:$0xff] %v4810_v23  ;;  %4813 = vst [vmem:[%s5301_s12 + $0xe8] sm:$0xff] %v4812_v19  ;;  %v4816_v60 = vld [vmem:[%s5305_s17 + $0xf8] sm:$0xff]  ;;  %s8501_s17 = smov %s8118_s18 }
 0x348   : >> { %4815 = vst [vmem:[%s5301_s12 + $0xf0] sm:$0xff] %v4814_v31  ;;  %4817 = vst [vmem:[%s5301_s12 + $0xf8] sm:$0xff] %v4816_v60  ;;  %s8500_s12 = smov %s4824_s30 }
 0x349 PF: > { %s8159_s3 = sand.u32 31, %s8513_s4   ;;  %s5027_s6 = sshll.u32 %s8051_s23, 8 }
 0x34a   : > { %s4829_s7 = scalar_lea.vmem %s7837_s21, %s5027_s6 [#allocation6]   ;;  %s4831_s28 = scalar_lea.vmem %s8045_s9, %s5027_s6  }
 0x34b   : > { %p5018_p4 = scmp.le.s32.totalorder %s8159_s3, 0 }
 0x34c   : > { %s5315_s20 = smov (!%p5018_p4), %s4831_s28   ;;  %s5319_s24 = smov (!%p5018_p4), %s4829_s7  }
 0x34d   : > { %4938 = sbr.rel (%p5018_p4) target bundleno = 862 (0x35e), region = 139  ;;  %s5323_s29 = smov (!%p5018_p4), 0  }
 0x34e   : > { %s5327_s5 = smov (!%p5018_p4), 0  }
 0x354 LB: >> { %v4841_v0 = vld [vmem:[%s5321_s24] sm:$0xff]  ;;  %s4843_s4 = sadd.s32 1, %s5325_s29  ;;  %s4835_s5 = sadd.s32 1, %s5329_s5   ;;  %s5329_s5 = sphi %s5327_s5, %s4835_s5   ;;  %s5325_s29 = sphi %s5323_s29, %s5324_s29   ;;  %s5321_s24 = sphi %s5319_s24, %s4848_s24   ;;  %s5317_s20 = sphi %s5315_s20, %s4849_s20  }
 0x355   : >> { %4842 = vst [vmem:[%s5317_s20] sm:$0xff] %v4841_v0  ;;  %p4844_p5 = scmp.ge.s32.totalorder %s4843_s4, %s8159_s3  ;;  %p4834_p8 = scmp.ge.s32.totalorder %s4835_s5, %s8159_s3 }
 0x357   : >> { %s8517_s4 = smov (%p4844_p5, %s4843_s4), 0  ;;  %4837 = sbr.rel (!%p4834_p8) target bundleno = 852 (0x354), region = 145 }
 0x358   : >> { %s5019_s21 = sshll.u32 %s8517_s4, 3  ;;  %s5324_s29 = smov %s8517_s4  }
 0x359   : >> { %s4848_s24 = scalar_lea.vmem %s4829_s7, %s5019_s21 [#allocation6]   ;;  %s4849_s20 = scalar_lea.vmem %s4831_s28, %s5019_s21  }
 0x35e PF: > { %s16_s14 = sadd.s32 1, %s5297_s14   ;;  %s8503_s9 = smov %s5281_s10 }
 0x35f   : > { %p13_p10 = scmp.ge.s32.totalorder %s16_s14, 6   ;;  %s8504_s10 = smov %s5285_s11 }
 0x360   : > { %s8505_s11 = smov %s5405_s22  ;;  %s8506_s12 = smov %s5293_s13 }
 0x361   : > { %s8507_s13 = smov %s8509_s16  ;;  %15 = sbr.rel (!%p13_p10) target bundleno = 5 (0x5), region = 156 }
 0x368   :  { %4865 = vsyncpa [#allocation3], 1 }
 0x369   :  { %4867 = vsyncpa [#allocation3 + $0x1], 1 }
 0x36a   :  { %4868 = vsyncpa [#allocation5], 1 }
 0x36b   :  { %4870 = vsyncpa [#allocation5 + $0x1], 1 }

</bundles_post_ra>
